<compile_context>
chip_gen: v7x
topology: tpu7x:2x2x1
jax: 0.10.0
libtpu: 0.0.40
codegen_flags: <defaults>
</compile_context>

<pallas_src>
import functools

import numpy as np
import jax
import jax.numpy as jnp
from jax.experimental import pallas as pl
from jax.experimental.pallas import tpu as pltpu

_EPS = 1e-5  # torch.nn.InstanceNorm2d default eps (affine=False, biased variance)

_PAD_MODE = {"reflect": "reflect", "replicate": "edge", "zero": "constant"}


def _conv3x3_instnorm(x32, w_ref, *, relu, padding_type):
    """3x3 conv (stride 1, 1-px pad) + InstanceNorm2d(affine=False) [+ ReLU].

    x32    : (H, W, C)      f32 value (one image, NHWC / channels-last).
    w_ref  : (3, 3*C, Cout) bf16 ref; rows [ky, kx*C:(kx+1)*C, :] == w_hwio[ky, kx].
    returns: (H, W, Cout)   f32 instance-normalized output.

    The conv bias is intentionally absent: it is spatially constant per channel
    and is cancelled EXACTLY by the mean subtraction of InstanceNorm2d with
    affine=False.  Re-introduce it if the norm ever becomes affine / GroupNorm.
    """
    h, w, c = x32.shape
    cout = w_ref.shape[-1]

    # --- column (kx) shifts with the 1-px boundary rule ----------------------
    # Done on the f32 value (plain 32-bit relayout, maximally supported), then
    # cast to bf16 once per shifted variant: 3 casts / 2 misaligned copies per
    # conv, instead of 9 per-tap casts + 9 misaligned slice relayouts.
    if padding_type == "reflect":
        lcol, rcol = x32[:, 1:2, :], x32[:, w - 2:w - 1, :]
    elif padding_type == "replicate":
        lcol, rcol = x32[:, 0:1, :], x32[:, w - 1:w, :]
    elif padding_type == "zero":
        lcol = jnp.zeros_like(x32[:, 0:1, :])
        rcol = lcol
    else:
        raise NotImplementedError("padding [%s] is not implemented" % padding_type)
    xcols = (
        jnp.concatenate([lcol, x32[:, :w - 1, :]], axis=1),    # kx = 0
        x32,                                                   # kx = 1 (aligned)
        jnp.concatenate([x32[:, 1:, :], rcol], axis=1),        # kx = 2
    )

    # --- row (ky) padding: outer-dim concat, no relayout ---------------------
    def _rowpad(v):
        vb = v.astype(jnp.bfloat16)
        if padding_type == "reflect":
            top, bot = vb[1:2], vb[h - 2:h - 1]
        elif padding_type == "replicate":
            top, bot = vb[0:1], vb[h - 1:h]
        else:  # zero
            top = jnp.zeros_like(vb[0:1])
            bot = top
        return jnp.concatenate([top, vb, bot], axis=0)         # (H+2, W, C) bf16

    xs = tuple(_rowpad(v) for v in xcols)

    # --- conv: 3 MXU matmuls, taps grouped along K (K = 3*C) -----------------
    acc = jnp.zeros((h * w, cout), jnp.float32)
    for ky in range(3):  # unrolled; ky shifts are free outer-dim slices
        slab = jnp.concatenate(
            [xs[0][ky:ky + h], xs[1][ky:ky + h], xs[2][ky:ky + h]], axis=-1,
        ).reshape(h * w, 3 * c)                                # (H*W, 3C) bf16
        acc = acc + jnp.dot(slab, w_ref[ky],
                            preferred_element_type=jnp.float32)

    # --- InstanceNorm2d(affine=False), biased variance, one-pass stats -------
    inv_hw = 1.0 / (h * w)
    mean = jnp.sum(acc, axis=0, keepdims=True) * inv_hw        # (1, Cout)
    ex2 = jnp.sum(acc * acc, axis=0, keepdims=True) * inv_hw
    var = jnp.maximum(ex2 - mean * mean, 0.0)
    y = (acc - mean) * jax.lax.rsqrt(var + _EPS)
    if relu:
        y = jnp.maximum(y, 0.0)
    return y.reshape(h, w, cout)


def _resnet_block_kernel(x_ref, w1_ref, w2_ref, o_ref, *, padding_type):
    """Fused ResnetBlock body for one batch element: out = x + conv_block(x)."""
    x32 = x_ref[...]                                           # (H, W, C) f32
    y = _conv3x3_instnorm(x32, w1_ref, relu=True, padding_type=padding_type)
    z = _conv3x3_instnorm(y, w2_ref, relu=False, padding_type=padding_type)
    # Residual add; single lane-dense f32 store of the output tile.
    o_ref[...] = x_ref[...] + z


def resnet_block_forward(params, x, *, padding_type="reflect"):
    """ResnetBlock forward: out = x + conv_block(x).  x: (N, H, W, C) NHWC f32."""
    if padding_type not in _PAD_MODE:
        raise NotImplementedError("padding [%s] is not implemented" % padding_type)
    # TODO(synk): train-mode Dropout(0.5) (use_dropout=True) is not implemented;
    #             the demo config uses use_dropout=False (eval dropout == identity).
    n, h, w, c = x.shape
    w1 = params["conv1"]["w3"]
    w2 = params["conv2"]["w3"]
    assert w1.shape == (3, 3 * c, c) and w2.shape == (3, 3 * c, c)
    # In-kernel (H, W, C) <-> (H*W, C) reshapes want W a sublane multiple; full
    # lane-dense channel blocks want C a multiple of 128; 1-px pad needs H,W>=2.
    assert w % 8 == 0, "W must be a multiple of 8"
    assert c % 128 == 0, "dim must be a multiple of 128"
    assert h >= 2 and w >= 2
    # TODO(synk): for large H*W (realistic generator resolutions) add row-strip
    #             tiling with a two-pass InstanceNorm so whole-image f32 blocks
    #             stay inside v7x's 64 MiB VMEM; demo/typical shapes fit easily.

    flops = n * 2 * (2 * h * w * (9 * c) * c)                  # two 3x3 convs
    bytes_accessed = (2 * n * h * w * c * 4                    # x in + out (f32)
                      + 2 * 3 * (3 * c) * c * 2)               # two bf16 weight slabs

    return pl.pallas_call(
        functools.partial(_resnet_block_kernel, padding_type=padding_type),
        out_shape=jax.ShapeDtypeStruct((n, h, w, c), jnp.float32),
        grid=(n,),                     # >= 2 "parallel" steps: both v7x TCs busy
        in_specs=[
            pl.BlockSpec((None, h, w, c), lambda b: (b, 0, 0, 0)),
            # Constant index maps: each bf16 weight slab is fetched from HBM
            # once and stays VMEM-resident across the whole batch.
            pl.BlockSpec((3, 3 * c, c), lambda b: (0, 0, 0)),
            pl.BlockSpec((3, 3 * c, c), lambda b: (0, 0, 0)),
        ],
        out_specs=pl.BlockSpec((None, h, w, c), lambda b: (b, 0, 0, 0)),
        compiler_params=pltpu.CompilerParams(
            dimension_semantics=("parallel",),
            # Working set (image + weights + im2col slabs) is ~2 MiB; 32 MiB is
            # safe on every generation incl. v7x (64 MiB physical VMEM).
            vmem_limit_bytes=32 * 1024 * 1024,
        ),
        cost_estimate=pl.CostEstimate(
            flops=flops,
            transcendentals=2 * n * c,         # one rsqrt per channel per conv
            bytes_accessed=bytes_accessed,
        ),
    )(x, w1, w2)


def init_params(key, dim):
    """Two Conv2d(dim, dim, 3) layers (torch OIHW init), pre-arranged for TPU."""
    def make(k):
        kw, kb = jax.random.split(k)
        scale = 1.0 / np.sqrt(dim * 9)
        w_oihw = jax.random.normal(kw, (dim, dim, 3, 3), jnp.float32) * scale
        b = jax.random.normal(kb, (dim,), jnp.float32) * 0.01
        w_hwio = jnp.transpose(w_oihw, (2, 3, 1, 0))           # (3, 3, Cin, Cout)
        return {
            # Pre-arranged ONCE at init: (3, 3*Cin, Cout) bf16, rows
            # [ky, kx*Cin:(kx+1)*Cin, :] == w_hwio[ky, kx]  (tap grouping along K).
            "w3": w_hwio.reshape(3, 3 * dim, dim).astype(jnp.bfloat16),
            "w_hwio": w_hwio,                                  # f32, reference only
            # Conv bias: cancelled exactly by InstanceNorm2d(affine=False); kept
            # only for the reference.  Must be re-introduced in the kernel if the
            # norm ever becomes affine (or is swapped for Batch/GroupNorm).
            "b": b,
        }
    k1, k2 = jax.random.split(key)
    return {"conv1": make(k1), "conv2": make(k2)}


# ------------------------- pure-JAX f32 reference -------------------------

def _instance_norm_ref(y):
    mean = jnp.mean(y, axis=(1, 2), keepdims=True)
    var = jnp.mean(jnp.square(y - mean), axis=(1, 2), keepdims=True)
    return (y - mean) * jax.lax.rsqrt(var + _EPS)


def resnet_block_reference(params, x, *, padding_type="reflect"):
    """True-f32 reference (keeps the conv bias — InstanceNorm cancels it exactly)."""
    def conv(inp, layer):
        xp = jnp.pad(inp, ((0, 0), (1, 1), (1, 1), (0, 0)),
                     mode=_PAD_MODE[padding_type])
        y = jax.lax.conv_general_dilated(
            xp, layer["w_hwio"], window_strides=(1, 1), padding="VALID",
            dimension_numbers=("NHWC", "HWIO", "NHWC"),
            precision=jax.lax.Precision.HIGHEST)
        return y + layer["b"]
    y = jax.nn.relu(_instance_norm_ref(conv(x, params["conv1"])))
    z = _instance_norm_ref(conv(y, params["conv2"]))
    return x + z


if __name__ == "__main__":
    key = jax.random.PRNGKey(0)
    pkey, xkey = jax.random.split(key)

    # ResnetBlock(dim=128, 'reflect', InstanceNorm2d, use_dropout=False, use_bias=True)
    # Torch input would be (2, 128, 16, 16) NCHW; we use the NHWC equivalent.
    dim, n, hw = 128, 2, 16
    params = init_params(pkey, dim)
    x = jax.random.normal(xkey, (n, hw, hw, dim), jnp.float32)

    fwd = jax.jit(functools.partial(resnet_block_forward, padding_type="reflect"))
    out = jax.block_until_ready(fwd(params, x))

    assert out.shape == (n, hw, hw, dim), out.shape
    assert bool(jnp.all(jnp.isfinite(out)))

    ref = jax.jit(functools.partial(resnet_block_reference, padding_type="reflect"))(
        params, x)
    # bf16 MXU operands vs a true-f32 (Precision.HIGHEST) reference: observed
    # error is O(5e-3); tolerance tightened vs. the previous 1e-1.
    np.testing.assert_allclose(np.asarray(out), np.asarray(ref), rtol=2e-2, atol=4e-2)

    print("KERNEL_OK")
</pallas_src>

<mosaic_0001>
module attributes {stable_mosaic.version = 11 : i64} {
  func.func @_resnet_block_kernel(%arg0: i32, %arg1: memref<1x16x16x128xf32, #tpu.memory_space<vmem>>, %arg2: memref<3x384x128xbf16, #tpu.memory_space<vmem>>, %arg3: memref<3x384x128xbf16, #tpu.memory_space<vmem>>, %arg4: memref<1x16x16x128xf32, #tpu.memory_space<vmem>>) attributes {dimension_semantics = [#tpu.dimension_semantics<parallel>], iteration_bounds = array<i64: 2>, scalar_prefetch = 0 : i64, scratch_operands = 0 : i64, tpu.core_type = #tpu.core_type<tc>, window_params = [{transform_indices = @transform_0, window_bounds = array<i64: 1, 16, 16, 128>}, {pipeline_mode = #tpu.pipeline_mode<synchronous>, transform_indices = @transform_1, window_bounds = array<i64: 3, 384, 128>}, {pipeline_mode = #tpu.pipeline_mode<synchronous>, transform_indices = @transform_2, window_bounds = array<i64: 3, 384, 128>}, {transform_indices = @transform_3, window_bounds = array<i64: 1, 16, 16, 128>}]} {
    %c0 = arith.constant 0 : index
    %c0_0 = arith.constant 0 : index
    %c0_1 = arith.constant 0 : index
    %c0_2 = arith.constant 0 : index
    %0 = vector.load %arg1[%c0, %c0_0, %c0_1, %c0_2] : memref<1x16x16x128xf32, #tpu.memory_space<vmem>>, vector<1x16x16x128xf32>
    %1 = vector.shape_cast %0 : vector<1x16x16x128xf32> to vector<16x16x128xf32>
    %2 = vector.extract_strided_slice %1 {offsets = [0, 1, 0], sizes = [16, 1, 128], strides = [1, 1, 1]} : vector<16x16x128xf32> to vector<16x1x128xf32>
    %3 = vector.extract_strided_slice %1 {offsets = [0, 14, 0], sizes = [16, 1, 128], strides = [1, 1, 1]} : vector<16x16x128xf32> to vector<16x1x128xf32>
    %4 = vector.extract_strided_slice %1 {offsets = [0, 0, 0], sizes = [16, 15, 128], strides = [1, 1, 1]} : vector<16x16x128xf32> to vector<16x15x128xf32>
    %5 = tpu.concatenate %2, %4 in 1 : vector<16x1x128xf32>, vector<16x15x128xf32> -> vector<16x16x128xf32>
    %6 = vector.extract_strided_slice %1 {offsets = [0, 1, 0], sizes = [16, 15, 128], strides = [1, 1, 1]} : vector<16x16x128xf32> to vector<16x15x128xf32>
    %7 = tpu.concatenate %6, %3 in 1 : vector<16x15x128xf32>, vector<16x1x128xf32> -> vector<16x16x128xf32>
    %8 = arith.truncf %5 : vector<16x16x128xf32> to vector<16x16x128xbf16>
    %9 = vector.extract_strided_slice %8 {offsets = [1, 0, 0], sizes = [1, 16, 128], strides = [1, 1, 1]} : vector<16x16x128xbf16> to vector<1x16x128xbf16>
    %10 = vector.extract_strided_slice %8 {offsets = [14, 0, 0], sizes = [1, 16, 128], strides = [1, 1, 1]} : vector<16x16x128xbf16> to vector<1x16x128xbf16>
    %11 = tpu.concatenate %9, %8, %10 in 0 : vector<1x16x128xbf16>, vector<16x16x128xbf16>, vector<1x16x128xbf16> -> vector<18x16x128xbf16>
    %12 = arith.truncf %1 : vector<16x16x128xf32> to vector<16x16x128xbf16>
    %13 = vector.extract_strided_slice %12 {offsets = [1, 0, 0], sizes = [1, 16, 128], strides = [1, 1, 1]} : vector<16x16x128xbf16> to vector<1x16x128xbf16>
    %14 = vector.extract_strided_slice %12 {offsets = [14, 0, 0], sizes = [1, 16, 128], strides = [1, 1, 1]} : vector<16x16x128xbf16> to vector<1x16x128xbf16>
    %15 = tpu.concatenate %13, %12, %14 in 0 : vector<1x16x128xbf16>, vector<16x16x128xbf16>, vector<1x16x128xbf16> -> vector<18x16x128xbf16>
    %16 = arith.truncf %7 : vector<16x16x128xf32> to vector<16x16x128xbf16>
    %17 = vector.extract_strided_slice %16 {offsets = [1, 0, 0], sizes = [1, 16, 128], strides = [1, 1, 1]} : vector<16x16x128xbf16> to vector<1x16x128xbf16>
    %18 = vector.extract_strided_slice %16 {offsets = [14, 0, 0], sizes = [1, 16, 128], strides = [1, 1, 1]} : vector<16x16x128xbf16> to vector<1x16x128xbf16>
    %19 = tpu.concatenate %17, %16, %18 in 0 : vector<1x16x128xbf16>, vector<16x16x128xbf16>, vector<1x16x128xbf16> -> vector<18x16x128xbf16>
    %cst = arith.constant 0.000000e+00 : f32
    %20 = vector.broadcast %cst : f32 to vector<256x128xf32>
    %21 = vector.extract_strided_slice %11 {offsets = [0, 0, 0], sizes = [16, 16, 128], strides = [1, 1, 1]} : vector<18x16x128xbf16> to vector<16x16x128xbf16>
    %22 = vector.extract_strided_slice %15 {offsets = [0, 0, 0], sizes = [16, 16, 128], strides = [1, 1, 1]} : vector<18x16x128xbf16> to vector<16x16x128xbf16>
    %23 = vector.extract_strided_slice %19 {offsets = [0, 0, 0], sizes = [16, 16, 128], strides = [1, 1, 1]} : vector<18x16x128xbf16> to vector<16x16x128xbf16>
    %24 = tpu.concatenate %21, %22, %23 in 2 : vector<16x16x128xbf16>, vector<16x16x128xbf16>, vector<16x16x128xbf16> -> vector<16x16x384xbf16>
    %25 = vector.shape_cast %24 : vector<16x16x384xbf16> to vector<256x384xbf16>
    %c0_3 = arith.constant 0 : index
    %c0_4 = arith.constant 0 : index
    %c0_5 = arith.constant 0 : index
    %26 = vector.load %arg2[%c0_3, %c0_4, %c0_5] : memref<3x384x128xbf16, #tpu.memory_space<vmem>>, vector<1x384x128xbf16>
    %27 = vector.shape_cast %26 : vector<1x384x128xbf16> to vector<384x128xbf16>
    %cst_6 = arith.constant dense<0.000000e+00> : vector<256x128xf32>
    %28 = tpu.matmul %25, %27, %cst_6 {dimension_numbers = #tpu.dot_dimension_numbers<[1], [0], [0], [1], [0, 0, 1, 1], [], []>} : vector<256x384xbf16>, vector<384x128xbf16>, vector<256x128xf32> -> vector<256x128xf32>
    %29 = arith.addf %20, %28 : vector<256x128xf32>
    %30 = vector.extract_strided_slice %11 {offsets = [1, 0, 0], sizes = [16, 16, 128], strides = [1, 1, 1]} : vector<18x16x128xbf16> to vector<16x16x128xbf16>
    %31 = vector.extract_strided_slice %15 {offsets = [1, 0, 0], sizes = [16, 16, 128], strides = [1, 1, 1]} : vector<18x16x128xbf16> to vector<16x16x128xbf16>
    %32 = vector.extract_strided_slice %19 {offsets = [1, 0, 0], sizes = [16, 16, 128], strides = [1, 1, 1]} : vector<18x16x128xbf16> to vector<16x16x128xbf16>
    %33 = tpu.concatenate %30, %31, %32 in 2 : vector<16x16x128xbf16>, vector<16x16x128xbf16>, vector<16x16x128xbf16> -> vector<16x16x384xbf16>
    %34 = vector.shape_cast %33 : vector<16x16x384xbf16> to vector<256x384xbf16>
    %c1 = arith.constant 1 : index
    %c0_7 = arith.constant 0 : index
    %c0_8 = arith.constant 0 : index
    %35 = vector.load %arg2[%c1, %c0_7, %c0_8] : memref<3x384x128xbf16, #tpu.memory_space<vmem>>, vector<1x384x128xbf16>
    %36 = vector.shape_cast %35 : vector<1x384x128xbf16> to vector<384x128xbf16>
    %cst_9 = arith.constant dense<0.000000e+00> : vector<256x128xf32>
    %37 = tpu.matmul %34, %36, %cst_9 {dimension_numbers = #tpu.dot_dimension_numbers<[1], [0], [0], [1], [0, 0, 1, 1], [], []>} : vector<256x384xbf16>, vector<384x128xbf16>, vector<256x128xf32> -> vector<256x128xf32>
    %38 = arith.addf %29, %37 : vector<256x128xf32>
    %39 = vector.extract_strided_slice %11 {offsets = [2, 0, 0], sizes = [16, 16, 128], strides = [1, 1, 1]} : vector<18x16x128xbf16> to vector<16x16x128xbf16>
    %40 = vector.extract_strided_slice %15 {offsets = [2, 0, 0], sizes = [16, 16, 128], strides = [1, 1, 1]} : vector<18x16x128xbf16> to vector<16x16x128xbf16>
    %41 = vector.extract_strided_slice %19 {offsets = [2, 0, 0], sizes = [16, 16, 128], strides = [1, 1, 1]} : vector<18x16x128xbf16> to vector<16x16x128xbf16>
    %42 = tpu.concatenate %39, %40, %41 in 2 : vector<16x16x128xbf16>, vector<16x16x128xbf16>, vector<16x16x128xbf16> -> vector<16x16x384xbf16>
    %43 = vector.shape_cast %42 : vector<16x16x384xbf16> to vector<256x384xbf16>
    %c2 = arith.constant 2 : index
    %c0_10 = arith.constant 0 : index
    %c0_11 = arith.constant 0 : index
    %44 = vector.load %arg2[%c2, %c0_10, %c0_11] : memref<3x384x128xbf16, #tpu.memory_space<vmem>>, vector<1x384x128xbf16>
    %45 = vector.shape_cast %44 : vector<1x384x128xbf16> to vector<384x128xbf16>
    %cst_12 = arith.constant dense<0.000000e+00> : vector<256x128xf32>
    %46 = tpu.matmul %43, %45, %cst_12 {dimension_numbers = #tpu.dot_dimension_numbers<[1], [0], [0], [1], [0, 0, 1, 1], [], []>} : vector<256x384xbf16>, vector<384x128xbf16>, vector<256x128xf32> -> vector<256x128xf32>
    %47 = arith.addf %38, %46 : vector<256x128xf32>
    %cst_13 = arith.constant dense<0.000000e+00> : vector<128xf32>
    %48 = vector.multi_reduction <add>, %47, %cst_13 [0] : vector<256x128xf32> to vector<128xf32>
    %49 = vector.shape_cast %48 : vector<128xf32> to vector<1x128xf32>
    %cst_14 = arith.constant 3.906250e-03 : f32
    %50 = vector.broadcast %cst_14 : f32 to vector<1x128xf32>
    %51 = arith.mulf %49, %50 : vector<1x128xf32>
    %52 = arith.mulf %47, %47 : vector<256x128xf32>
    %cst_15 = arith.constant dense<0.000000e+00> : vector<128xf32>
    %53 = vector.multi_reduction <add>, %52, %cst_15 [0] : vector<256x128xf32> to vector<128xf32>
    %54 = vector.shape_cast %53 : vector<128xf32> to vector<1x128xf32>
    %cst_16 = arith.constant 3.906250e-03 : f32
    %55 = vector.broadcast %cst_16 : f32 to vector<1x128xf32>
    %56 = arith.mulf %54, %55 : vector<1x128xf32>
    %57 = arith.mulf %51, %51 : vector<1x128xf32>
    %58 = arith.subf %56, %57 : vector<1x128xf32>
    %cst_17 = arith.constant 0.000000e+00 : f32
    %59 = vector.broadcast %cst_17 : f32 to vector<1x128xf32>
    %60 = arith.maximumf %58, %59 : vector<1x128xf32>
    %61 = vector.broadcast %51 : vector<1x128xf32> to vector<256x128xf32>
    %62 = arith.subf %47, %61 : vector<256x128xf32>
    %cst_18 = arith.constant 9.99999974E-6 : f32
    %63 = vector.broadcast %cst_18 : f32 to vector<1x128xf32>
    %64 = arith.addf %60, %63 : vector<1x128xf32>
    %65 = math.rsqrt %64 : vector<1x128xf32>
    %66 = vector.broadcast %65 : vector<1x128xf32> to vector<256x128xf32>
    %67 = arith.mulf %62, %66 : vector<256x128xf32>
    %cst_19 = arith.constant 0.000000e+00 : f32
    %68 = vector.broadcast %cst_19 : f32 to vector<256x128xf32>
    %69 = arith.maximumf %67, %68 : vector<256x128xf32>
    %70 = vector.shape_cast %69 : vector<256x128xf32> to vector<16x16x128xf32>
    %71 = vector.extract_strided_slice %70 {offsets = [0, 1, 0], sizes = [16, 1, 128], strides = [1, 1, 1]} : vector<16x16x128xf32> to vector<16x1x128xf32>
    %72 = vector.extract_strided_slice %70 {offsets = [0, 14, 0], sizes = [16, 1, 128], strides = [1, 1, 1]} : vector<16x16x128xf32> to vector<16x1x128xf32>
    %73 = vector.extract_strided_slice %70 {offsets = [0, 0, 0], sizes = [16, 15, 128], strides = [1, 1, 1]} : vector<16x16x128xf32> to vector<16x15x128xf32>
    %74 = tpu.concatenate %71, %73 in 1 : vector<16x1x128xf32>, vector<16x15x128xf32> -> vector<16x16x128xf32>
    %75 = vector.extract_strided_slice %70 {offsets = [0, 1, 0], sizes = [16, 15, 128], strides = [1, 1, 1]} : vector<16x16x128xf32> to vector<16x15x128xf32>
    %76 = tpu.concatenate %75, %72 in 1 : vector<16x15x128xf32>, vector<16x1x128xf32> -> vector<16x16x128xf32>
    %77 = arith.truncf %74 : vector<16x16x128xf32> to vector<16x16x128xbf16>
    %78 = vector.extract_strided_slice %77 {offsets = [1, 0, 0], sizes = [1, 16, 128], strides = [1, 1, 1]} : vector<16x16x128xbf16> to vector<1x16x128xbf16>
    %79 = vector.extract_strided_slice %77 {offsets = [14, 0, 0], sizes = [1, 16, 128], strides = [1, 1, 1]} : vector<16x16x128xbf16> to vector<1x16x128xbf16>
    %80 = tpu.concatenate %78, %77, %79 in 0 : vector<1x16x128xbf16>, vector<16x16x128xbf16>, vector<1x16x128xbf16> -> vector<18x16x128xbf16>
    %81 = arith.truncf %70 : vector<16x16x128xf32> to vector<16x16x128xbf16>
    %82 = vector.extract_strided_slice %81 {offsets = [1, 0, 0], sizes = [1, 16, 128], strides = [1, 1, 1]} : vector<16x16x128xbf16> to vector<1x16x128xbf16>
    %83 = vector.extract_strided_slice %81 {offsets = [14, 0, 0], sizes = [1, 16, 128], strides = [1, 1, 1]} : vector<16x16x128xbf16> to vector<1x16x128xbf16>
    %84 = tpu.concatenate %82, %81, %83 in 0 : vector<1x16x128xbf16>, vector<16x16x128xbf16>, vector<1x16x128xbf16> -> vector<18x16x128xbf16>
    %85 = arith.truncf %76 : vector<16x16x128xf32> to vector<16x16x128xbf16>
    %86 = vector.extract_strided_slice %85 {offsets = [1, 0, 0], sizes = [1, 16, 128], strides = [1, 1, 1]} : vector<16x16x128xbf16> to vector<1x16x128xbf16>
    %87 = vector.extract_strided_slice %85 {offsets = [14, 0, 0], sizes = [1, 16, 128], strides = [1, 1, 1]} : vector<16x16x128xbf16> to vector<1x16x128xbf16>
    %88 = tpu.concatenate %86, %85, %87 in 0 : vector<1x16x128xbf16>, vector<16x16x128xbf16>, vector<1x16x128xbf16> -> vector<18x16x128xbf16>
    %cst_20 = arith.constant 0.000000e+00 : f32
    %89 = vector.broadcast %cst_20 : f32 to vector<256x128xf32>
    %90 = vector.extract_strided_slice %80 {offsets = [0, 0, 0], sizes = [16, 16, 128], strides = [1, 1, 1]} : vector<18x16x128xbf16> to vector<16x16x128xbf16>
    %91 = vector.extract_strided_slice %84 {offsets = [0, 0, 0], sizes = [16, 16, 128], strides = [1, 1, 1]} : vector<18x16x128xbf16> to vector<16x16x128xbf16>
    %92 = vector.extract_strided_slice %88 {offsets = [0, 0, 0], sizes = [16, 16, 128], strides = [1, 1, 1]} : vector<18x16x128xbf16> to vector<16x16x128xbf16>
    %93 = tpu.concatenate %90, %91, %92 in 2 : vector<16x16x128xbf16>, vector<16x16x128xbf16>, vector<16x16x128xbf16> -> vector<16x16x384xbf16>
    %94 = vector.shape_cast %93 : vector<16x16x384xbf16> to vector<256x384xbf16>
    %c0_21 = arith.constant 0 : index
    %c0_22 = arith.constant 0 : index
    %c0_23 = arith.constant 0 : index
    %95 = vector.load %arg3[%c0_21, %c0_22, %c0_23] : memref<3x384x128xbf16, #tpu.memory_space<vmem>>, vector<1x384x128xbf16>
    %96 = vector.shape_cast %95 : vector<1x384x128xbf16> to vector<384x128xbf16>
    %cst_24 = arith.constant dense<0.000000e+00> : vector<256x128xf32>
    %97 = tpu.matmul %94, %96, %cst_24 {dimension_numbers = #tpu.dot_dimension_numbers<[1], [0], [0], [1], [0, 0, 1, 1], [], []>} : vector<256x384xbf16>, vector<384x128xbf16>, vector<256x128xf32> -> vector<256x128xf32>
    %98 = arith.addf %89, %97 : vector<256x128xf32>
    %99 = vector.extract_strided_slice %80 {offsets = [1, 0, 0], sizes = [16, 16, 128], strides = [1, 1, 1]} : vector<18x16x128xbf16> to vector<16x16x128xbf16>
    %100 = vector.extract_strided_slice %84 {offsets = [1, 0, 0], sizes = [16, 16, 128], strides = [1, 1, 1]} : vector<18x16x128xbf16> to vector<16x16x128xbf16>
    %101 = vector.extract_strided_slice %88 {offsets = [1, 0, 0], sizes = [16, 16, 128], strides = [1, 1, 1]} : vector<18x16x128xbf16> to vector<16x16x128xbf16>
    %102 = tpu.concatenate %99, %100, %101 in 2 : vector<16x16x128xbf16>, vector<16x16x128xbf16>, vector<16x16x128xbf16> -> vector<16x16x384xbf16>
    %103 = vector.shape_cast %102 : vector<16x16x384xbf16> to vector<256x384xbf16>
    %c1_25 = arith.constant 1 : index
    %c0_26 = arith.constant 0 : index
    %c0_27 = arith.constant 0 : index
    %104 = vector.load %arg3[%c1_25, %c0_26, %c0_27] : memref<3x384x128xbf16, #tpu.memory_space<vmem>>, vector<1x384x128xbf16>
    %105 = vector.shape_cast %104 : vector<1x384x128xbf16> to vector<384x128xbf16>
    %cst_28 = arith.constant dense<0.000000e+00> : vector<256x128xf32>
    %106 = tpu.matmul %103, %105, %cst_28 {dimension_numbers = #tpu.dot_dimension_numbers<[1], [0], [0], [1], [0, 0, 1, 1], [], []>} : vector<256x384xbf16>, vector<384x128xbf16>, vector<256x128xf32> -> vector<256x128xf32>
    %107 = arith.addf %98, %106 : vector<256x128xf32>
    %108 = vector.extract_strided_slice %80 {offsets = [2, 0, 0], sizes = [16, 16, 128], strides = [1, 1, 1]} : vector<18x16x128xbf16> to vector<16x16x128xbf16>
    %109 = vector.extract_strided_slice %84 {offsets = [2, 0, 0], sizes = [16, 16, 128], strides = [1, 1, 1]} : vector<18x16x128xbf16> to vector<16x16x128xbf16>
    %110 = vector.extract_strided_slice %88 {offsets = [2, 0, 0], sizes = [16, 16, 128], strides = [1, 1, 1]} : vector<18x16x128xbf16> to vector<16x16x128xbf16>
    %111 = tpu.concatenate %108, %109, %110 in 2 : vector<16x16x128xbf16>, vector<16x16x128xbf16>, vector<16x16x128xbf16> -> vector<16x16x384xbf16>
    %112 = vector.shape_cast %111 : vector<16x16x384xbf16> to vector<256x384xbf16>
    %c2_29 = arith.constant 2 : index
    %c0_30 = arith.constant 0 : index
    %c0_31 = arith.constant 0 : index
    %113 = vector.load %arg3[%c2_29, %c0_30, %c0_31] : memref<3x384x128xbf16, #tpu.memory_space<vmem>>, vector<1x384x128xbf16>
    %114 = vector.shape_cast %113 : vector<1x384x128xbf16> to vector<384x128xbf16>
    %cst_32 = arith.constant dense<0.000000e+00> : vector<256x128xf32>
    %115 = tpu.matmul %112, %114, %cst_32 {dimension_numbers = #tpu.dot_dimension_numbers<[1], [0], [0], [1], [0, 0, 1, 1], [], []>} : vector<256x384xbf16>, vector<384x128xbf16>, vector<256x128xf32> -> vector<256x128xf32>
    %116 = arith.addf %107, %115 : vector<256x128xf32>
    %cst_33 = arith.constant dense<0.000000e+00> : vector<128xf32>
    %117 = vector.multi_reduction <add>, %116, %cst_33 [0] : vector<256x128xf32> to vector<128xf32>
    %118 = vector.shape_cast %117 : vector<128xf32> to vector<1x128xf32>
    %cst_34 = arith.constant 3.906250e-03 : f32
    %119 = vector.broadcast %cst_34 : f32 to vector<1x128xf32>
    %120 = arith.mulf %118, %119 : vector<1x128xf32>
    %121 = arith.mulf %116, %116 : vector<256x128xf32>
    %cst_35 = arith.constant dense<0.000000e+00> : vector<128xf32>
    %122 = vector.multi_reduction <add>, %121, %cst_35 [0] : vector<256x128xf32> to vector<128xf32>
    %123 = vector.shape_cast %122 : vector<128xf32> to vector<1x128xf32>
    %cst_36 = arith.constant 3.906250e-03 : f32
    %124 = vector.broadcast %cst_36 : f32 to vector<1x128xf32>
    %125 = arith.mulf %123, %124 : vector<1x128xf32>
    %126 = arith.mulf %120, %120 : vector<1x128xf32>
    %127 = arith.subf %125, %126 : vector<1x128xf32>
    %cst_37 = arith.constant 0.000000e+00 : f32
    %128 = vector.broadcast %cst_37 : f32 to vector<1x128xf32>
    %129 = arith.maximumf %127, %128 : vector<1x128xf32>
    %130 = vector.broadcast %120 : vector<1x128xf32> to vector<256x128xf32>
    %131 = arith.subf %116, %130 : vector<256x128xf32>
    %cst_38 = arith.constant 9.99999974E-6 : f32
    %132 = vector.broadcast %cst_38 : f32 to vector<1x128xf32>
    %133 = arith.addf %129, %132 : vector<1x128xf32>
    %134 = math.rsqrt %133 : vector<1x128xf32>
    %135 = vector.broadcast %134 : vector<1x128xf32> to vector<256x128xf32>
    %136 = arith.mulf %131, %135 : vector<256x128xf32>
    %137 = vector.shape_cast %136 : vector<256x128xf32> to vector<16x16x128xf32>
    %c0_39 = arith.constant 0 : index
    %c0_40 = arith.constant 0 : index
    %c0_41 = arith.constant 0 : index
    %c0_42 = arith.constant 0 : index
    %138 = vector.load %arg1[%c0_39, %c0_40, %c0_41, %c0_42] : memref<1x16x16x128xf32, #tpu.memory_space<vmem>>, vector<1x16x16x128xf32>
    %139 = vector.shape_cast %138 : vector<1x16x16x128xf32> to vector<16x16x128xf32>
    %140 = arith.addf %139, %137 : vector<16x16x128xf32>
    %c0_43 = arith.constant 0 : index
    %c0_44 = arith.constant 0 : index
    %c0_45 = arith.constant 0 : index
    %c0_46 = arith.constant 0 : index
    %141 = vector.load %arg4[%c0_43, %c0_44, %c0_45, %c0_46] : memref<1x16x16x128xf32, #tpu.memory_space<vmem>>, vector<1x16x16x128xf32>
    %142 = vector.shape_cast %141 : vector<1x16x16x128xf32> to vector<16x16x128xf32>
    %143 = vector.shape_cast %140 : vector<16x16x128xf32> to vector<1x16x16x128xf32>
    tpu.vector_store %arg4[%c0_43, %c0_44, %c0_45, %c0_46], %143 {strides = array<i32>} : memref<1x16x16x128xf32, #tpu.memory_space<vmem>>, vector<1x16x16x128xf32>,
    return
  }
  func.func @transform_0(%arg0: i32) -> (i32, i32, i32, i32) {
    %c0_i32 = arith.constant 0 : i32
    %c0_i32_0 = arith.constant 0 : i32
    %c0_i32_1 = arith.constant 0 : i32
    %c0_i32_2 = arith.constant 0 : i32
    return %arg0, %c0_i32, %c0_i32_0, %c0_i32_1 : i32, i32, i32, i32
  }
  func.func @transform_1(%arg0: i32) -> (i32, i32, i32) {
    %c0_i32 = arith.constant 0 : i32
    %c0_i32_0 = arith.constant 0 : i32
    %c0_i32_1 = arith.constant 0 : i32
    %c0_i32_2 = arith.constant 0 : i32
    return %c0_i32, %c0_i32_0, %c0_i32_1 : i32, i32, i32
  }
  func.func @transform_2(%arg0: i32) -> (i32, i32, i32) {
    %c0_i32 = arith.constant 0 : i32
    %c0_i32_0 = arith.constant 0 : i32
    %c0_i32_1 = arith.constant 0 : i32
    %c0_i32_2 = arith.constant 0 : i32
    return %c0_i32, %c0_i32_0, %c0_i32_1 : i32, i32, i32
  }
  func.func @transform_3(%arg0: i32) -> (i32, i32, i32, i32) {
    %c0_i32 = arith.constant 0 : i32
    %c0_i32_0 = arith.constant 0 : i32
    %c0_i32_1 = arith.constant 0 : i32
    %c0_i32_2 = arith.constant 0 : i32
    return %arg0, %c0_i32, %c0_i32_0, %c0_i32_1 : i32, i32, i32, i32
  }
}

</mosaic_0001>

<bundles_post_ra>
// kernel: resnet_block_forward.1
= control target key start
LH: loop header
LB: loop body
LE: loop exit
PB: predicated region body
PF: predicated region fallthrough
CT: control target
= control target key end

     0   :  { %8 = vsyncpa [#allocation3], 0  ;;  %s9115_s0 = inlined_call_operand.hbm [shape: f32[2,16,16,128], index: 0, kind: input, shape index: {}]   ;;  %s9116_s1 = inlined_call_operand.hbm [shape: bf16[3,384,128], index: 1, kind: input, shape index: {}]   ;;  %s9117_s2 = inlined_call_operand.hbm [shape: bf16[3,384,128], index: 2, kind: input, shape index: {}]   ;;  %s9118_s3 = inlined_call_operand.hbm [shape: f32[2,16,16,128], index: 3, kind: output, shape index: {}]  }
   0x1   :  { %10 = vsyncpa [#allocation3 + $0x1], 0 }
   0x2   :  { %11 = vsyncpa [#allocation6], 0 }
   0x3   :  { %12 = vsyncpa [#allocation4], 0 }
   0x4   :  { %14 = vsyncpa [#allocation4 + $0x1], 0  ;;  %s6598_s12 = smov 0   ;;  %s6600_s13 = smov 0  }
   0x5   :  { %s6602_s14 = smov 0   ;;  %s6604_s15 = smov 0  }
   0x6 LB: > { %s6619_s16 = sadd.s32 4294967295, %s6566_s15   ;;  %s4569_s17 = sadd.s32 4294967294, %s6566_s15   ;;  %s6566_s15 = sphi %s6604_s15, %s9252_s15   ;;  %s6562_s14 = sphi %s6602_s14, %s9251_s14   ;;  %s6558_s13 = sphi %s6600_s13, %s9250_s13   ;;  %s6554_s12 = sphi %s6598_s12, %s9249_s12  }
   0x7   : > { %p40_p0 = scmp.ne.s32.totalorder %s6558_s13, %s6554_s12  ;;  %p9119_p1 = scmp.eq.s32.totalorder %s6619_s16, 0 }
   0x8   : > { %p112_p3 = scmp.eq.s32.totalorder %s4569_s17, 1  ;;  %p4570_p5 = scmp.ge.s32.totalorder %s6566_s15, 1 }
   0x9   : > { %p6628_p4 = por %p9119_p1, %p40_p0  ;;  %p119_p7 = scmp.lt.s32.totalorder %s6566_s15, 3 }
   0xa   : > { %p6633_p6 = por %p112_p3, %p40_p0  ;;  %s6568_s21 = smov [#allocation5]  }
   0xb   : > { %s9164_s18 = scalar_select %p6628_p4, 1, 0 }
   0xc   : > { %s9165_s19 = scalar_select %p6633_p6, 1, 0 }
   0xd   : > { %p6638_p8 = pnand %p4570_p5, %p119_p7  ;;  %s131_s22 = sshll.u32 %s6568_s21, 4  ;;  %s6642_s22 = int_to_ptr.vmem [resolvable:$true] %s131_s22 }
   0xe   : > { %s6569_s24 = smov [#allocation7]   ;;  %s6410_s28 = scalar_lea.hbm %s9116_s1, 9216 }
   0xf   : > { %p6169_p9 = pneg %p6638_p8  ;;  %s144_s25 = sshll.u32 %s6569_s24, 4  ;;  %s6653_s25 = int_to_ptr.vmem [resolvable:$true] %s144_s25 }
  0x10   : > { %p6411_p12 = scmp.ne.s32.totalorder %s9116_s1, %s6410_s28  ;;  %p6417_p5 = scmp.lt.u32.totalorder %s6410_s28, %s9116_s1 }
  0x11   : > { %p6649_p11 = pnand %p6169_p9, %p9119_p1 }
  0x13   : > { %p6412_p13 = pneg %p6649_p11 }
  0x15   : > { %p6413_p0 = pnand %p6412_p13, %p6411_p12 }
  0x17   : > { %p6414_p3 = pneg %p6413_p0 }
  0x19   : > { %p6419_p7 = pnand %p6417_p5, %p6414_p3 }
  0x1b   : > { %6422 = shalt.err (!%p6419_p7)
}
  0x1c   : > { %s6423_s6 = scalar_lea.vmem %s6642_s22, 9216  ;;  %p6431_p2 = scmp.lt.s32.totalorder %s6642_s22, %s6642_s22 }
  0x1d   : > { %p6424_p9 = scmp.ne.s32.totalorder %s6642_s22, %s6423_s6  ;;  %p6432_p12 = scmp.lt.s32.totalorder %s6423_s6, %s6423_s6 }
  0x1f   : > { %p6426_p10 = pnand %p6424_p9, %p6412_p13  ;;  %p6433_p0 = por %p6432_p12, %p6431_p2 }
  0x21   : > { %p6427_p1 = pneg %p6426_p10 }
  0x23   : > { %p6434_p6 = pnand %p6433_p0, %p6427_p1 }
  0x25   : > { %6437 = shalt.err (!%p6434_p6)
}
  0x26   : > { %s6570_s7 = smov 64   ;;  %s6571_s8 = smov 4  }
  0x27   : > { %6172 = dma.hbm_to_vmem [thread:$0]  (!%p6649_p11), %s9116_s1, 9216, %s6642_s22, [#allocation6], %s6570_s7, %s6570_s7, %s6571_s8  }
  0x28   : > { %s6438_s21 = scalar_lea.hbm %s9117_s2, 9216 }
  0x29   : > { %p6439_p2 = scmp.ne.s32.totalorder %s9117_s2, %s6438_s21  ;;  %p6445_p10 = scmp.lt.u32.totalorder %s6438_s21, %s9117_s2 }
  0x2b   : > { %p6441_p1 = pnand %p6439_p2, %p6412_p13 }
  0x2d   : > { %p6442_p6 = pneg %p6441_p1 }
  0x2f   : > { %p6447_p3 = pnand %p6445_p10, %p6442_p6 }
  0x31   : > { %6450 = shalt.err (!%p6447_p3)
}
  0x32   : > { %s6451_s22 = scalar_lea.vmem %s6653_s25, 9216  ;;  %p6459_p12 = scmp.lt.s32.totalorder %s6653_s25, %s6653_s25 }
  0x33   : > { %p6452_p5 = scmp.ne.s32.totalorder %s6653_s25, %s6451_s22  ;;  %p6460_p0 = scmp.lt.s32.totalorder %s6451_s22, %s6451_s22 }
  0x35   : > { %p6454_p7 = pnand %p6452_p5, %p6412_p13  ;;  %p6461_p2 = por %p6460_p0, %p6459_p12 }
  0x37   : > { %p6455_p9 = pneg %p6454_p7 }
  0x39   : > { %p6462_p1 = pnand %p6461_p2, %p6455_p9 }
  0x3b   : > { %6465 = shalt.err (!%p6462_p1)
}
  0x3c   : > { %6175 = dma.hbm_to_vmem [thread:$0]  (!%p6649_p11), %s9117_s2, 9216, %s6653_s25, [#allocation6], %s6570_s7, %s6570_s7, %s6571_s8  }
  0x3d   : > { %s6708_s4 = sadd.s32 1, %s6566_s15   ;;  %s27_s23 = sadd.s32 1, %s6562_s14 }
  0x3e   : > { %s24_s5 = ssub.s32 %s6566_s15, %s6708_s4  ;;  %p34_p13 = scmp.ne.s32.totalorder %s6562_s14, %s6558_s13 }
  0x3f   : > { %p25_p6 = scmp.eq.s32.totalorder %s24_s5, 0  ;;  %p35_p10 = scmp.eq.s32.totalorder %s6566_s15, 0 }
  0x40   : > { %p9168_p3 = scmp.eq.s32.totalorder %s6619_s16, 1  ;;  %p6186_p7 = scmp.lt.s32.totalorder %s6566_s15, 2 }
  0x41   : > { %s6724_s9 = scalar_select %p25_p6, %s6562_s14, %s27_s23  }
  0x42   : > { %p6718_p5 = por %p9168_p3, %p34_p13  ;;  %p36_p9 = por %p35_p10, %p34_p13 }
  0x43   : > { %s158_s10 = sand.u32 1, %s6562_s14   ;;  %s4731_s25 = sshll.u32 %s6566_s15, 12 }
  0x44   : > { %s9169_s6 = scalar_select %p6718_p5, 1, 0 }
  0x45   : > { %s4574_s11 = sshll.u32 %s158_s10, 8  ;;  %s6731_s17 = scalar_lea.hbm %s9115_s0, %s4731_s25 }
  0x46   : > { %s162_s21 = scalar_lea.vmem [#allocation2], %s4574_s11  ;;  %p6735_p11 = pnand %p6186_p7, %p36_p9 }
  0x47   : > { %s169_s24 = sshll.u32 %s162_s21, 4  ;;  %s6739_s27 = scalar_lea.sflag [#allocation3], %s158_s10  ;;  %s6733_s24 = int_to_ptr.vmem [resolvable:$true] %s169_s24 }
  0x48   : > { %s6466_s28 = scalar_lea.hbm %s6731_s17, 4096  ;;  %p6468_p0 = pneg %p6735_p11 }
  0x49   : > { %p6467_p12 = scmp.ne.s32.totalorder %s6731_s17, %s6466_s28  ;;  %s6471_s30 = scalar_lea.hbm %s9115_s0, 8192 }
  0x4a   : > { %p6472_p13 = scmp.lt.u32.totalorder %s6731_s17, %s9115_s0  ;;  %p6473_p6 = scmp.lt.u32.totalorder %s6471_s30, %s6466_s28 }
  0x4b   : > { %p6469_p2 = pnand %p6468_p0, %p6467_p12  ;;  %p6475_p3 = scmp.lt.u32.totalorder %s6466_s28, %s6731_s17 }
  0x4c   : > { %p6474_p10 = por %p6473_p6, %p6472_p13 }
  0x4d   : > { %p6470_p1 = pneg %p6469_p2 }
  0x4e   : > { %p6476_p7 = por %p6475_p3, %p6474_p10 }
  0x50   : > { %p6477_p9 = pnand %p6476_p7, %p6470_p1 }
  0x52   : > { %6480 = shalt.err (!%p6477_p9)
}
  0x53   : > { %s6481_s10 = scalar_lea.vmem %s6733_s24, 4096  ;;  %s6572_s11 = smov [#allocation2]  }
  0x54   : > { %p6482_p12 = scmp.ne.s32.totalorder %s6733_s24, %s6481_s10  ;;  %s6486_s25 = sshll.u32 %s6572_s11, 4  ;;  %s6487_s25 = int_to_ptr.vmem [resolvable:$false] %s6486_s25 }
  0x55   : > { %s6488_s7 = scalar_lea.vmem %s6487_s25, 8192  ;;  %p6489_p4 = scmp.lt.s32.totalorder %s6733_s24, %s6487_s25 }
  0x56   : > { %p6484_p2 = pnand %p6482_p12, %p6468_p0  ;;  %p6490_p13 = scmp.lt.s32.totalorder %s6488_s7, %s6481_s10 }
  0x58   : > { %p6485_p5 = pneg %p6484_p2  ;;  %p6491_p6 = por %p6490_p13, %p6489_p4 }
  0x5a   : > { %p6492_p10 = pnand %p6491_p6, %p6485_p5 }
  0x5c   : > { %6495 = shalt.err (!%p6492_p10)
}
  0x5d   : > { %s6573_s8 = smov 128   ;;  %s6574_s21 = smov 8  }
  0x5e   : > { %6179 = dma.hbm_to_vmem [thread:$0]  (!%p6735_p11), %s6731_s17, 4096, %s6733_s24, %s6739_s27, %s6573_s8, %s6573_s8, %s6574_s21  }
  0x5f   : > { %181 = sbr.rel (%p6638_p8) target bundleno = 1342 (0x53e), region = 32 }
  0x66   : > { %s6770_s28 = sand.u32 1, %s6558_s13   ;;  %p9171_p4 = scmp.ne.s32.totalorder %s9164_s18, 0 }
  0x67   : > { %s4578_s22 = sshll.u32 %s6770_s28, 8  ;;  %s184_s29 = scalar_lea.sflag [#allocation3], %s6770_s28 }
  0x68   : > { %s6776_s30 = scalar_lea.vmem [#allocation2], %s4578_s22 }
  0x69   : > { %6541 = dma.done.wait (%p9171_p4), %s184_s29, 4096  }
  0x6a   : > { %6543 = vsyncadd (%p9171_p4), %s184_s29, 4294963200  ;;  %p9172_p5 = scmp.eq.s32.totalorder %s6619_s16, 0 }
  0x6c   : > { %6545 = dma.done.wait (%p9172_p5), [#allocation6], 18432   ;;  %p9173_p8 = pmov %p9172_p5 }
  0x6d   : > { %v6230_v0 = vld [vmem:[#allocation5 + $0x100] sm:$0xff]   ;;  %v6234_v4 = vld [vmem:[#allocation5 + $0x108] sm:$0xff]   ;;  %v6238_v8 = vld [vmem:[#allocation5 + $0x110] sm:$0xff]   ;;  %vm315_vm0 = vcmask 1040384   ;;  %vm412_vm1 = vcmask 1046528   ;;  %s8959_s18 = scalar_lea.vmem [#allocation8], %s4578_s22 }
  0x6e   : > { %6547 = vsyncadd (%p9173_p8), [#allocation6], 4294948864  ;;  %v6231_v1 = vld [vmem:[#allocation5 + $0x40] sm:$0xff]   ;;  %4733 = vmatprep.subr.bf16.mxu0 %v6230_v0  ;;  %v6235_v5 = vld [vmem:[#allocation5 + $0x48] sm:$0xff]   ;;  %s4732_s20 = sshll.u32 %s6619_s16, 12  ;;  %s4477_s17 = sshll.u32 %s8959_s18, 4  ;;  %s9051_s17 = int_to_ptr.vmem [resolvable:$true] %s4477_s17 }
  0x6f   : > { %v6232_v2 = vld [vmem:[#allocation5 + $0xc0] sm:$0xff]   ;;  %4869 = vmatprep.subr.bf16.mxu1 %v6231_v1  ;;  %v6236_v6 = vld [vmem:[#allocation5 + $0xc8] sm:$0xff]   ;;  %v6239_v9 = vld [vmem:[#allocation5 + $0x50] sm:$0xff]   ;;  %s9047_s27 = scalar_lea.hbm %s9118_s3, %s4732_s20  ;;  %s4464_s16 = scalar_lea.sflag [#allocation4], %s6770_s28 }
  0x70   : > { %v6233_v3 = vld [vmem:[#allocation5] sm:$0xff]   ;;  %4734 = vmatpush3.bf16.msra.mxu0 %v6232_v2  ;;  %v6237_v7 = vld [vmem:[#allocation5 + $0x8] sm:$0xff]   ;;  %v6240_v10 = vld [vmem:[#allocation5 + $0xd0] sm:$0xff]   ;;  %s6496_s23 = scalar_lea.vmem %s9051_s17, 4096  ;;  %p9246_p0 = scmp.ne.s32.totalorder %s9169_s6, 0 }
  0x71   : > { %4870 = vmatpush3.bf16.msra.mxu1 %v6233_v3  ;;  %4735 = vmatprep.subr.bf16.mxu0 %v6234_v4  ;;  %v6241_v11 = vld [vmem:[#allocation5 + $0x10] sm:$0xff]   ;;  %v6242_v12 = vld [vmem:[#allocation5 + $0x118] sm:$0xff]   ;;  %v6246_v16 = vld [vmem:[#allocation5 + $0x120] sm:$0xff]   ;;  %p6497_p11 = scmp.ne.s32.totalorder %s9051_s17, %s6496_s23  ;;  %s6575_s5 = smov [#allocation8]  }
  0x72   : > { %4871 = vmatprep.subr.bf16.mxu1 %v6235_v5  ;;  %v6243_v13 = vld [vmem:[#allocation5 + $0x58] sm:$0xff]   ;;  %v6247_v17 = vld [vmem:[#allocation5 + $0x60] sm:$0xff]   ;;  %v6250_v20 = vld [vmem:[#allocation5 + $0x128] sm:$0xff]   ;;  %s6500_s10 = sshll.u32 %s6575_s5, 4  ;;  %s6501_s10 = int_to_ptr.vmem [resolvable:$false] %s6500_s10 }
  0x73   : > { %v6244_v14 = vld [vmem:[#allocation5 + $0xd8] sm:$0xff]   ;;  %v6248_v18 = vld [vmem:[#allocation5 + $0xe0] sm:$0xff]   ;;  %v6251_v21 = vld [vmem:[#allocation5 + $0x68] sm:$0xff]   ;;  %p6498_p1 = pnand %p6497_p11, %p9246_p0  ;;  %s6502_s11 = scalar_lea.vmem %s6501_s10, 8192 }
  0x74   : > { %4736 = vmatpush3.bf16.msra.mxu0 %v6236_v6  ;;  %v6245_v15 = vld [vmem:[#allocation5 + $0x18] sm:$0xff]   ;;  %v6249_v19 = vld [vmem:[#allocation5 + $0x20] sm:$0xff]   ;;  %v6252_v22 = vld [vmem:[#allocation5 + $0xe8] sm:$0xff]   ;;  %p6503_p7 = scmp.lt.s32.totalorder %s9051_s17, %s6501_s10  ;;  %p6504_p9 = scmp.lt.s32.totalorder %s6502_s11, %s6496_s23 }
  0x75   : > { %4872 = vmatpush3.bf16.msra.mxu1 %v6237_v7  ;;  %4737 = vmatprep.subr.bf16.mxu0 %v6238_v8  ;;  %v6253_v23 = vld [vmem:[#allocation5 + $0x28] sm:$0xff]   ;;  %v6254_v24 = vld [vmem:[#allocation5 + $0x130] sm:$0xff]   ;;  %v6258_v28 = vld [vmem:[#allocation5 + $0x138] sm:$0xff]   ;;  %p6499_p3 = pneg %p6498_p1 }
  0x76   : > { %4873 = vmatprep.subr.bf16.mxu1 %v6239_v9  ;;  %v6255_v25 = vld [vmem:[#allocation5 + $0x70] sm:$0xff]   ;;  %v6259_v29 = vld [vmem:[#allocation5 + $0x78] sm:$0xff]   ;;  %v6787_v32 = vld [vmem:[%s6776_s30] sm:$0xff]  ;;  %p6505_p12 = por %p6504_p9, %p6503_p7 }
  0x77   : > { %v6256_v26 = vld [vmem:[#allocation5 + $0xf0] sm:$0xff]   ;;  %v6260_v30 = vld [vmem:[#allocation5 + $0xf8] sm:$0xff]   ;;  %v6790_v33 = vld [vmem:[%s6776_s30 + $0x8] sm:$0xff]  ;;  %v267_v37 = vrot.slane %v6787_v32, 1  ;;  %v316_v38 = vrot.slane %v6787_v32, 7 }
  0x78   : > { %4738 = vmatpush3.bf16.msra.mxu0 %v6240_v10  ;;  %v6257_v27 = vld [vmem:[#allocation5 + $0x30] sm:$0xff]   ;;  %v6261_v31 = vld [vmem:[#allocation5 + $0x38] sm:$0xff]   ;;  %v525_v35 = vpack.c.bf16 %v6790_v33, %v6787_v32  ;;  %v317_v39 = vrot.slane %v6790_v33, 7  ;;  %v6262_v41 = vld [vmem:[#allocation5 + $0x140] sm:$0xff]   ;;  %v413_v8 = vrot.slane %v6790_v33, 1  ;;  %p6506_p2 = pnand %p6505_p12, %p6499_p3 }
  0x79   : > { %4874 = vmatpush3.bf16.msra.mxu1 %v6241_v11  ;;  %4739 = vmatprep.subr.bf16.mxu0 %v6242_v12  ;;  %v6793_v34 = vld [vmem:[%s6776_s30 + $0x10] sm:$0xff]  ;;  %v6798_v36 = vld [vmem:[%s6776_s30 + $0x18] sm:$0xff]  ;;  %v396_v46 = vsel %vm315_vm0, %v267_v37, %v316_v38  ;;  %v6263_v51 = vld [vmem:[#allocation5 + $0x148] sm:$0xff]  }
  0x7a   : > { %4875 = vmatprep.subr.bf16.mxu1 %v6243_v13  ;;  %v6805_v40 = vpack.c.bf16 %v6798_v36, %v6793_v34  ;;  %v268_v42 = vrot.slane %v6793_v34, 1  ;;  %v319_v43 = vrot.slane %v6793_v34, 7  ;;  %v320_v44 = vrot.slane %v6798_v36, 7  ;;  %830 = vmatprep.mubr.bf16.mxu0 %v525_v35  ;;  %v6827_v52 = vld [vmem:[%s6776_s30 + $0x20] sm:$0xff]  ;;  %v6831_v53 = vld [vmem:[%s6776_s30 + $0x28] sm:$0xff]  ;;  %v6264_v54 = vld [vmem:[#allocation5 + $0x150] sm:$0xff]  }
  0x7b   : > { %v318_v45 = vsel %vm315_vm0, %v316_v38, %v317_v39  ;;  %v6835_v55 = vpack.c.bf16 %v6831_v53, %v6827_v52  ;;  %v269_v56 = vrot.slane %v6827_v52, 1  ;;  %v322_v57 = vrot.slane %v6827_v52, 7  ;;  %v6265_v59 = vld [vmem:[#allocation5 + $0x158] sm:$0xff]   ;;  %v6267_v60 = vld [vmem:[#allocation5 + $0x80] sm:$0xff]   ;;  %v6849_v63 = vld [vmem:[%s6776_s30 + $0x30] sm:$0xff] }
  0x7c   : > { %4740 = vmatpush3.bf16.msra.mxu0 %v6244_v14  ;;  %1296 = vmatprep.mubr.bf16.mxu1 %v6805_v40  ;;  %v509_v47 = vpack.c.bf16 %v318_v45, %v396_v46  ;;  %v321_v48 = vsel %vm315_vm0, %v319_v43, %v320_v44  ;;  %v397_v49 = vsel %vm315_vm0, %v268_v42, %v319_v43  ;;  %v323_v58 = vrot.slane %v6831_v53, 7  ;;  %v6853_v0 = vld [vmem:[%s6776_s30 + $0x38] sm:$0xff]  ;;  %v6856_v1 = vld [vmem:[%s6776_s30 + $0x40] sm:$0xff]  ;;  %v6269_v3 = vld [vmem:[#allocation5 + $0x88] sm:$0xff]  }
  0x7d   : > { %4876 = vmatpush3.bf16.msra.mxu1 %v6245_v15  ;;  %4741 = vmatprep.subr.bf16.mxu0 %v6246_v16  ;;  %v6823_v50 = vpack.c.bf16 %v321_v48, %v397_v49  ;;  %v398_v62 = vsel %vm315_vm0, %v269_v56, %v322_v57  ;;  %v6266_v2 = vld [vmem:[#allocation5 + $0x160] sm:$0xff]   ;;  %v270_v5 = vrot.slane %v6849_v63, 1  ;;  %v6862_v6 = vld [vmem:[%s6776_s30 + $0x48] sm:$0xff]  ;;  %v6865_v7 = vld [vmem:[%s6776_s30 + $0x50] sm:$0xff]  ;;  %v6870_v9 = vpack.c.bf16 %v6853_v0, %v6849_v63 }
  0x7e   : > { %4877 = vmatprep.subr.bf16.mxu1 %v6247_v17  ;;  %v324_v61 = vsel %vm315_vm0, %v322_v57, %v323_v58  ;;  %v325_v10 = vrot.slane %v6849_v63, 7  ;;  %v326_v11 = vrot.slane %v6853_v0, 7  ;;  %v6875_v12 = vld [vmem:[%s6776_s30 + $0x58] sm:$0xff]  ;;  %v6878_v13 = vld [vmem:[%s6776_s30 + $0x60] sm:$0xff]  ;;  %v271_v14 = vrot.slane %v6856_v1, 1  ;;  %v6882_v15 = vld [vmem:[%s6776_s30 + $0x68] sm:$0xff] }
  0x7f   : > { %v6858_v4 = vpack.c.bf16 %v324_v61, %v398_v62  ;;  %v6885_v16 = vld [vmem:[%s6776_s30 + $0x70] sm:$0xff]  ;;  %v6268_v17 = vld [vmem:[#allocation5 + $0x168] sm:$0xff]   ;;  %v6917_v38 = vld [vmem:[%s6776_s30 + $0x98] sm:$0xff]  ;;  %v6928_v48 = vpack.c.bf16 %v6862_v6, %v6856_v1  ;;  %v493_v61 = vsel %vm412_vm1, %v413_v8, %v317_v39 }
  0x80   : > { %4742 = vmatpush3.bf16.msra.mxu0 %v6248_v18  ;;  %v415_v18 = vrot.slane %v6798_v36, 1  ;;  %v274_v43 = vrot.slane %v6885_v16, 1  ;;  %v6922_v45 = vld [vmem:[%s6776_s30 + $0xa0] sm:$0xff]  ;;  %v6270_v46 = vld [vmem:[#allocation5 + $0x170] sm:$0xff]   ;;  %v417_v36 = vrot.slane %v6831_v53, 1 }
  0x81   : > { %4878 = vmatpush3.bf16.msra.mxu1 %v6249_v19  ;;  %4743 = vmatprep.subr.bf16.mxu0 %v6250_v20  ;;  %v328_v19 = vrot.slane %v6856_v1, 7  ;;  %v6890_v20 = vld [vmem:[%s6776_s30 + $0x78] sm:$0xff]  ;;  %v6274_v39 = vld [vmem:[#allocation5 + $0xa0] sm:$0xff]  }
  0x82   : > { %4879 = vmatprep.subr.bf16.mxu1 %v6251_v21  ;;  %v6271_v21 = vld [vmem:[#allocation5 + $0x90] sm:$0xff]   ;;  %v338_v49 = vrot.slane %v6890_v20, 7 }
  0x83   : > { %v400_v32 = vsel %vm315_vm0, %v271_v14, %v328_v19 }
  0x84   : > { %4744 = vmatpush3.bf16.msra.mxu0 %v6252_v22  ;;  %v329_v22 = vrot.slane %v6862_v6, 7 }
  0x85   : > { %4880 = vmatpush3.bf16.msra.mxu1 %v6253_v23  ;;  %4745 = vmatprep.subr.bf16.mxu0 %v6254_v24  ;;  %v272_v23 = vrot.slane %v6865_v7, 1  ;;  %v6896_v24 = vld [vmem:[%s6776_s30 + $0x80] sm:$0xff] }
  0x86   : > { %4881 = vmatprep.subr.bf16.mxu1 %v6255_v25  ;;  %v6899_v25 = vld [vmem:[%s6776_s30 + $0x88] sm:$0xff]  ;;  %v275_v57 = vrot.slane %v6896_v24, 1  ;;  %v330_v62 = vsel %vm315_vm0, %v328_v19, %v329_v22  ;;  %v416_v19 = vsel %vm412_vm1, %v268_v42, %v415_v18 }
  0x87   : > { %v6275_v42 = vld [vmem:[#allocation5 + $0xa8] sm:$0xff]  }
  0x88   : > { %4746 = vmatpush3.bf16.msra.mxu0 %v6256_v26  ;;  %v327_v26 = vsel %vm315_vm0, %v325_v10, %v326_v11 }
  0x89   : > { %4882 = vmatpush3.bf16.msra.mxu1 %v6257_v27  ;;  %4747 = vmatprep.subr.bf16.mxu0 %v6258_v28  ;;  %v399_v27 = vsel %vm315_vm0, %v270_v5, %v325_v10  ;;  %v331_v28 = vrot.slane %v6865_v7, 7  ;;  %v6273_v10 = vld [vmem:[#allocation5 + $0x178] sm:$0xff]  }
  0x8a   : > { %4883 = vmatprep.subr.bf16.mxu1 %v6259_v29  ;;  %v332_v29 = vrot.slane %v6875_v12, 7 }
  0x8c   : > { %4748 = vmatpush3.bf16.msra.mxu0 %v6260_v30  ;;  %v6912_v30 = vld [vmem:[%s6776_s30 + $0x90] sm:$0xff] }
  0x8d   : > { %4884 = vmatpush3.bf16.msra.mxu1 %v6261_v31  ;;  %5549 = vmatprep.subr.bf16.mxu0 %v6262_v41  ;;  %v6272_v31 = vld [vmem:[#allocation5 + $0x98] sm:$0xff]  }
  0x8e   : > { %5597 = vmatprep.subr.bf16.mxu1 %v6267_v60 }
  0x8f   : > { %831 = vmatmul.mubr.bf16.vlgmr.msra.gmra.mrb[0].mxu0 %v509_v47 }
  0x90   : > { %1297 = vmatmul.mubr.bf16.vlgmr.msra.gmra.mrb[0].mxu1 %v6823_v50  ;;  %5550 = vmatpush3.bf16.msra.mxu0 %v6262_v41  ;;  %v335_v41 = vrot.slane %v6882_v15, 7 }
  0x91   : > { %838 = vmatprep.mubr.bf16.mxu0 %v6805_v40  ;;  %1304 = vmatprep.mubr.bf16.mxu1 %v525_v35  ;;  %v273_v35 = vrot.slane %v6878_v13, 1 }
  0x92   : > { %5551 = vmatprep.subr.bf16.mxu0 %v6263_v51  ;;  %5598 = vmatpush3.bf16.msra.mxu1 %v6267_v60  ;;  %v276_v60 = vrot.slane %v6912_v30, 1 }
  0x93   : > { %5599 = vmatprep.subr.bf16.mxu1 %v6269_v3 }
  0x94   : > { %5552 = vmatpush3.bf16.msra.mxu0 %v6263_v51  ;;  %v6932_v51 = vld [vmem:[%s6776_s30 + $0xa8] sm:$0xff] }
  0x95   : > { %5553 = vmatprep.subr.bf16.mxu0 %v6264_v54  ;;  %v9129_v33 = vrot.slane %v6932_v51, 7 }
  0x96   : > { %5600 = vmatpush3.bf16.msra.mxu1 %v6269_v3  ;;  %v6952_v3 = vld [vmem:[%s6776_s30 + $0xb0] sm:$0xff] }
  0x97   : > { %839 = vmatmul.mubr.bf16.gmra.mrb[4].mxu0 %v6823_v50  ;;  %5601 = vmatprep.subr.bf16.mxu1 %v6271_v21  ;;  %v9122_v34 = vrot.slane %v6952_v3, 1 }
  0x98   : > { %1305 = vmatmul.mubr.bf16.gmra.mrb[4].mxu1 %v509_v47  ;;  %846 = vmatprep.mubr.bf16.mxu0 %v6835_v55  ;;  %v6924_v47 = vpack.c.bf16 %v327_v26, %v399_v27  ;;  %v494_v26 = vsel %vm412_vm1, %v415_v18, %v320_v44  ;;  %v6973_v27 = vpack.c.bf16 %v6875_v12, %v6865_v7  ;;  %v419_v44 = vrot.slane %v6853_v0, 1 }
  0x99   : > { %1312 = vmatprep.mubr.bf16.mxu1 %v6805_v40  ;;  %5554 = vmatpush3.bf16.msra.mxu0 %v6264_v54  ;;  %v414_v54 = vsel %vm412_vm1, %v267_v37, %v413_v8  ;;  %v344_v37 = vrot.slane %v6917_v38, 7  ;;  %v6979_v18 = vpack.c.bf16 %v330_v62, %v400_v32  ;;  %v495_v62 = vsel %vm412_vm1, %v417_v36, %v323_v58 }
  0x9a   : > { %5555 = vmatprep.subr.bf16.mxu0 %v6265_v59  ;;  %5602 = vmatpush3.bf16.msra.mxu1 %v6271_v21  ;;  %v6956_v21 = vld [vmem:[%s6776_s30 + $0xb8] sm:$0xff]  ;;  %v6958_v8 = vpack.c.bf16 %v493_v61, %v414_v54  ;;  %v401_v54 = vsel %vm315_vm0, %v272_v23, %v331_v28  ;;  %v6278_v61 = vld [vmem:[#allocation5 + $0x1c0] sm:$0xff]   ;;  %v420_v32 = vsel %vm412_vm1, %v270_v5, %v419_v44  ;;  %v425_v5 = vrot.slane %v6882_v15, 1 }
  0x9b   : > { %5603 = vmatprep.subr.bf16.mxu1 %v6272_v31  ;;  %v496_v52 = vsel %vm412_vm1, %v419_v44, %v326_v11  ;;  %v429_v7 = vrot.slane %v6899_v25, 1  ;;  %v6277_v44 = vld [vmem:[#allocation5 + $0xb8] sm:$0xff]  }
  0x9c   : > { %v7004_v53 = vpack.c.bf16 %v496_v52, %v420_v32 }
  0x9d   : > { %5556 = vmatpush3.bf16.msra.mxu0 %v6265_v59  ;;  %v341_v59 = vrot.slane %v6899_v25, 7 }
  0x9e   : > { %5557 = vmatprep.subr.bf16.mxu0 %v6266_v2  ;;  %5604 = vmatpush3.bf16.msra.mxu1 %v6272_v31  ;;  %v333_v31 = vsel %vm315_vm0, %v331_v28, %v332_v29  ;;  %v9127_v28 = vrot.slane %v6956_v21, 7 }
  0x9f   : > { %847 = vmatmul.mubr.bf16.gmra.mrb[8].mxu0 %v6858_v4  ;;  %5605 = vmatprep.subr.bf16.mxu1 %v6274_v39 }
  0xa0   : > { %1313 = vmatmul.mubr.bf16.gmra.mrb[8].mxu1 %v6823_v50  ;;  %854 = vmatprep.mubr.bf16.mxu0 %v6870_v9 }
  0xa1   : > { %1320 = vmatprep.mubr.bf16.mxu1 %v6835_v55  ;;  %5558 = vmatpush3.bf16.msra.mxu0 %v6266_v2  ;;  %v9128_v2 = vrot.slane %v6922_v45, 1 }
  0xa2   : > { %5559 = vmatprep.subr.bf16.mxu0 %v6268_v17  ;;  %5606 = vmatpush3.bf16.msra.mxu1 %v6274_v39  ;;  %v6276_v39 = vld [vmem:[#allocation5 + $0xb0] sm:$0xff]  }
  0xa3   : > { %5607 = vmatprep.subr.bf16.mxu1 %v6275_v42 }
  0xa5   : > { %5560 = vmatpush3.bf16.msra.mxu0 %v6268_v17  ;;  %v6967_v17 = vpack.c.bf16 %v494_v26, %v416_v19  ;;  %v418_v19 = vsel %vm412_vm1, %v269_v56, %v417_v36  ;;  %v421_v26 = vrot.slane %v6862_v6, 1  ;;  %v423_v56 = vrot.slane %v6875_v12, 1 }
  0xa6   : > { %5561 = vmatprep.subr.bf16.mxu0 %v6270_v46  ;;  %5608 = vmatpush3.bf16.msra.mxu1 %v6275_v42  ;;  %v431_v36 = vrot.slane %v6917_v38, 1  ;;  %v430_v42 = vsel %vm412_vm1, %v275_v57, %v429_v7 }
  0xa7   : > { %855 = vmatmul.mubr.bf16.gmra.mrb[12].mxu0 %v6924_v47  ;;  %v422_v58 = vsel %vm412_vm1, %v271_v14, %v421_v26  ;;  %v497_v63 = vsel %vm412_vm1, %v421_v26, %v329_v22  ;;  %v424_v11 = vsel %vm412_vm1, %v272_v23, %v423_v56  ;;  %v498_v1 = vsel %vm412_vm1, %v423_v56, %v332_v29 }
  0xa8   : > { %1321 = vmatmul.mubr.bf16.gmra.mrb[12].mxu1 %v6858_v4  ;;  %862 = vmatprep.mubr.bf16.mxu0 %v6928_v48  ;;  %v7013_v0 = vpack.c.bf16 %v497_v63, %v422_v58  ;;  %v427_v14 = vrot.slane %v6890_v20, 1  ;;  %v7022_v6 = vpack.c.bf16 %v498_v1, %v424_v11  ;;  %v426_v22 = vsel %vm412_vm1, %v273_v35, %v425_v5 }
  0xa9   : > { %1328 = vmatprep.mubr.bf16.mxu1 %v6870_v9  ;;  %5562 = vmatpush3.bf16.msra.mxu0 %v6270_v46  ;;  %v6998_v46 = vpack.c.bf16 %v495_v62, %v418_v19  ;;  %v501_v19 = vsel %vm412_vm1, %v429_v7, %v341_v59  ;;  %v433_v62 = vrot.slane %v6932_v51, 1  ;;  %v432_v26 = vsel %vm412_vm1, %v276_v60, %v431_v36  ;;  %v7082_v7 = vld [vmem:[#allocation5 + $0x200] sm:$0xff]  }
  0xaa   : > { %5563 = vmatprep.subr.bf16.mxu0 %v6273_v10  ;;  %v428_v23 = vsel %vm412_vm1, %v274_v43, %v427_v14  ;;  %v500_v29 = vsel %vm412_vm1, %v427_v14, %v338_v49  ;;  %5609 = vmatprep.subr.bf16.mxu1 %v6276_v39  ;;  %v7053_v32 = vpack.c.bf16 %v501_v19, %v430_v42  ;;  %v435_v56 = vrot.slane %v6956_v21, 1  ;;  %v7074_v14 = vld [vmem:[%s6776_s30 + $0xc0] sm:$0xff]  ;;  %v7100_v42 = vld [vmem:[%s6776_s30 + $0xd8] sm:$0xff] }
  0xab   : > { %v502_v52 = vsel %vm412_vm1, %v431_v36, %v344_v37  ;;  %v334_v58 = vrot.slane %v6878_v13, 7  ;;  %v503_v11 = vsel %vm412_vm1, %v433_v62, %v9129_v33  ;;  %v7071_v1 = vpack.c.bf16 %v333_v31, %v401_v54  ;;  %5610 = vmatpush3.bf16.msra.mxu1 %v6276_v39 }
  0xac   : > { %v7063_v63 = vpack.c.bf16 %v502_v52, %v432_v26  ;;  %v504_v31 = vsel %vm412_vm1, %v435_v56, %v9127_v28  ;;  %v7094_v54 = vpack.c.bf16 %v6882_v15, %v6878_v13  ;;  %5611 = vmatprep.subr.bf16.mxu1 %v6277_v44  ;;  %v337_v39 = vrot.slane %v6885_v16, 7 }
  0xad   : > { %5564 = vmatpush3.bf16.msra.mxu0 %v6273_v10  ;;  %v499_v10 = vsel %vm412_vm1, %v425_v5, %v335_v41  ;;  %v434_v5 = vsel %vm412_vm1, %v9128_v2, %v433_v62  ;;  %v336_v19 = vsel %vm315_vm0, %v334_v58, %v335_v41  ;;  %v402_v62 = vsel %vm315_vm0, %v273_v35, %v334_v58 }
  0xae   : > { %5005 = vmatprep.subr.bf16.mxu0 %v6278_v61  ;;  %v7032_v12 = vpack.c.bf16 %v499_v10, %v426_v22  ;;  %v7043_v61 = vpack.c.bf16 %v500_v29, %v428_v23  ;;  %v7077_v22 = vld [vmem:[%s6776_s30 + $0xc8] sm:$0xff]  ;;  %v7080_v10 = vld [vmem:[%s6776_s30 + $0xd0] sm:$0xff]  ;;  %v7084_v23 = vpack.c.bf16 %v503_v11, %v434_v5  ;;  %v436_v29 = vsel %vm412_vm1, %v9122_v34, %v435_v56  ;;  %v7128_v5 = vld [vmem:[%s6776_s30 + $0xe0] sm:$0xff] }
  0xaf   : > { %863 = vmatmul.mubr.bf16.gmra.mrb[16].mxu0 %v6979_v18  ;;  %v7096_v36 = vpack.c.bf16 %v504_v31, %v436_v29  ;;  %5612 = vmatpush3.bf16.msra.mxu1 %v6277_v44  ;;  %v9123_v26 = vrot.slane %v7074_v14, 1  ;;  %v9124_v52 = vrot.slane %v7077_v22, 7  ;;  %v9125_v15 = vrot.slane %v7080_v10, 1  ;;  %v7131_v11 = vld [vmem:[%s6776_s30 + $0xe8] sm:$0xff]  ;;  %v7134_v29 = vld [vmem:[%s6776_s30 + $0xf0] sm:$0xff] }
  0xb0   : > { %1329 = vmatmul.mubr.bf16.gmra.mrb[16].mxu1 %v6924_v47  ;;  %870 = vmatprep.mubr.bf16.mxu0 %v6973_v27  ;;  %v437_v41 = vrot.slane %v7077_v22, 1  ;;  %v9126_v13 = vrot.slane %v7100_v42, 7  ;;  %v439_v35 = vrot.slane %v7100_v42, 1  ;;  %v7125_v58 = vpack.c.bf16 %v336_v19, %v402_v62 }
  0xb1   : > { %1336 = vmatprep.mubr.bf16.mxu1 %v6928_v48  ;;  %5645 = vmatprep.subr.bf16.mxu1 %v7082_v7  ;;  %v7146_v19 = vpack.c.bf16 %v6890_v20, %v6885_v16  ;;  %v7188_v33 = vpack.c.bf16 %v6899_v25, %v6896_v24 }
  0xb2   : > { %v438_v44 = vsel %vm412_vm1, %v9123_v26, %v437_v41  ;;  %v505_v56 = vsel %vm412_vm1, %v437_v41, %v9124_v52  ;;  %v440_v34 = vsel %vm412_vm1, %v9125_v15, %v439_v35  ;;  %v506_v26 = vsel %vm412_vm1, %v439_v35, %v9126_v13  ;;  %v7152_v52 = vld [vmem:[%s6776_s30 + $0xf8] sm:$0xff] }
  0xb3   : > { %v7136_v31 = vpack.c.bf16 %v505_v56, %v438_v44  ;;  %v7148_v62 = vpack.c.bf16 %v506_v26, %v440_v34  ;;  %v340_v41 = vrot.slane %v6896_v24, 7  ;;  %v339_v44 = vsel %vm315_vm0, %v337_v39, %v338_v49 }
  0xb4   : > { %v403_v35 = vsel %vm315_vm0, %v274_v43, %v337_v39  ;;  %v9130_v34 = vrot.slane %v7128_v5, 1  ;;  %v359_v26 = vrot.slane %v7131_v11, 7  ;;  %v282_v56 = vrot.slane %v7134_v29, 1 }
  0xb5   : > { %v441_v15 = vrot.slane %v7131_v11, 1  ;;  %v362_v20 = vrot.slane %v7152_v52, 7  ;;  %v443_v16 = vrot.slane %v7152_v52, 1  ;;  %v7176_v39 = vpack.c.bf16 %v339_v44, %v403_v35 }
  0xb6   : > { %v342_v44 = vsel %vm315_vm0, %v340_v41, %v341_v59  ;;  %v404_v35 = vsel %vm315_vm0, %v275_v57, %v340_v41  ;;  %v7211_v24 = vpack.c.bf16 %v6917_v38, %v6912_v30  ;;  %v9174_v38 = vrot.slane %v6932_v51, 7 }
  0xb7   : > { %871 = vmatmul.mubr.bf16.gmra.mrb[20].mxu0 %v7071_v1  ;;  %v442_v43 = vsel %vm412_vm1, %v9130_v34, %v441_v15  ;;  %v507_v49 = vsel %vm412_vm1, %v441_v15, %v359_v26  ;;  %v444_v28 = vsel %vm412_vm1, %v282_v56, %v443_v16  ;;  %v508_v2 = vsel %vm412_vm1, %v443_v16, %v362_v20 }
  0xb8   : > { %1337 = vmatmul.mubr.bf16.gmra.mrb[20].mxu1 %v6979_v18  ;;  %878 = vmatprep.mubr.bf16.mxu0 %v7094_v54  ;;  %v7178_v13 = vpack.c.bf16 %v507_v49, %v442_v43  ;;  %v7190_v34 = vpack.c.bf16 %v508_v2, %v444_v28  ;;  %v343_v15 = vrot.slane %v6912_v30, 7  ;;  %v346_v16 = vrot.slane %v6922_v45, 7 }
  0xb9   : > { %1344 = vmatprep.mubr.bf16.mxu1 %v6973_v27  ;;  %v349_v2 = vrot.slane %v6952_v3, 7  ;;  %v352_v28 = vrot.slane %v7074_v14, 7  ;;  %v355_v43 = vrot.slane %v7080_v10, 7  ;;  %v7207_v25 = vpack.c.bf16 %v342_v44, %v404_v35 }
  0xba   : > { %v345_v57 = vsel %vm315_vm0, %v343_v15, %v344_v37  ;;  %v405_v59 = vsel %vm315_vm0, %v276_v60, %v343_v15  ;;  %v7227_v49 = vpack.c.bf16 %v6932_v51, %v6922_v45  ;;  %v348_v30 = vsel %vm315_vm0, %v346_v16, %v9174_v38 }
  0xbb   : > { %v7223_v41 = vpack.c.bf16 %v345_v57, %v405_v59  ;;  %v9175_v60 = vrot.slane %v6922_v45, 1  ;;  %v7243_v44 = vpack.c.bf16 %v6956_v21, %v6952_v3  ;;  %v9176_v51 = vrot.slane %v6956_v21, 7 }
  0xbc   : > { %v9177_v35 = vrot.slane %v6952_v3, 1  ;;  %v7259_v59 = vpack.c.bf16 %v7077_v22, %v7074_v14  ;;  %v9178_v21 = vrot.slane %v7077_v22, 7  ;;  %v9180_v22 = vrot.slane %v7100_v42, 7 }
  0xbd   : > { %v406_v37 = vsel %vm315_vm0, %v9175_v60, %v346_v16  ;;  %v351_v45 = vsel %vm315_vm0, %v349_v2, %v9176_v51  ;;  %v7275_v60 = vpack.c.bf16 %v7100_v42, %v7080_v10  ;;  %v9182_v42 = vrot.slane %v7128_v5, 1 }
  0xbe   : > { %v7239_v15 = vpack.c.bf16 %v348_v30, %v406_v37  ;;  %v407_v16 = vsel %vm315_vm0, %v9177_v35, %v349_v2  ;;  %v354_v3 = vsel %vm315_vm0, %v352_v28, %v9178_v21  ;;  %v9179_v2 = vrot.slane %v7074_v14, 1 }
  0xbf   : > { %879 = vmatmul.mubr.bf16.gmra.mrb[24].mxu0 %v7125_v58  ;;  %v7255_v57 = vpack.c.bf16 %v351_v45, %v407_v16  ;;  %v357_v14 = vsel %vm315_vm0, %v355_v43, %v9180_v22  ;;  %v7291_v45 = vpack.c.bf16 %v7131_v11, %v7128_v5  ;;  %v358_v35 = vrot.slane %v7128_v5, 7  ;;  %v6283_v22 = vld [vmem:[#allocation5 + $0x190] sm:$0xff]  }
  0xc0   : > { %1345 = vmatmul.mubr.bf16.gmra.mrb[24].mxu1 %v7071_v1  ;;  %886 = vmatprep.mubr.bf16.mxu0 %v7146_v19  ;;  %v408_v38 = vsel %vm315_vm0, %v9179_v2, %v352_v28  ;;  %v9181_v28 = vrot.slane %v7080_v10, 1  ;;  %v7308_v21 = vpack.c.bf16 %v7152_v52, %v7134_v29  ;;  %v6279_v2 = vld [vmem:[#allocation5 + $0x180] sm:$0xff]   ;;  %v6280_v52 = vld [vmem:[#allocation5 + $0x1c8] sm:$0xff]  }
  0xc1   : > { %1352 = vmatprep.mubr.bf16.mxu1 %v7094_v54  ;;  %v7271_v30 = vpack.c.bf16 %v354_v3, %v408_v38  ;;  %v360_v10 = vsel %vm315_vm0, %v358_v35, %v359_v26  ;;  %v361_v3 = vrot.slane %v7134_v29, 7  ;;  %v6281_v29 = vld [vmem:[#allocation5 + $0x188] sm:$0xff]   ;;  %v6291_v38 = vld [vmem:[#allocation5 + $0x210] sm:$0xff]  }
  0xc2   : > { %v409_v37 = vsel %vm315_vm0, %v9181_v28, %v355_v43  ;;  %v410_v43 = vsel %vm315_vm0, %v9182_v42, %v358_v35  ;;  %v6285_v28 = vld [vmem:[#allocation5 + $0x198] sm:$0xff]   ;;  %v6288_v35 = vld [vmem:[#allocation5 + $0x1a0] sm:$0xff]   ;;  %v6297_v42 = vld [vmem:[#allocation5 + $0x228] sm:$0xff]  }
  0xc3   : > { %v7287_v51 = vpack.c.bf16 %v357_v14, %v409_v37  ;;  %v7304_v16 = vpack.c.bf16 %v360_v10, %v410_v43  ;;  %v363_v5 = vsel %vm315_vm0, %v361_v3, %v362_v20  ;;  %v411_v11 = vsel %vm315_vm0, %v282_v56, %v361_v3  ;;  %v6289_v20 = vld [vmem:[#allocation5 + $0x208] sm:$0xff]   ;;  %v6282_v56 = vld [vmem:[#allocation5 + $0x1d0] sm:$0xff]   ;;  %v6284_v14 = vld [vmem:[#allocation5 + $0x1d8] sm:$0xff]  }
  0xc4   : > { %v7321_v26 = vpack.c.bf16 %v363_v5, %v411_v11  ;;  %v6295_v37 = vld [vmem:[#allocation5 + $0x220] sm:$0xff]   ;;  %v6290_v10 = vld [vmem:[#allocation5 + $0x1e8] sm:$0xff]   ;;  %v6294_v3 = vld [vmem:[#allocation5 + $0x1f0] sm:$0xff]  }
  0xc5   : > { %v6292_v43 = vld [vmem:[#allocation5 + $0x1a8] sm:$0xff]   ;;  %v6299_v5 = vld [vmem:[#allocation5 + $0x230] sm:$0xff]  }
  0xc6   : > { %v6296_v11 = vld [vmem:[#allocation5 + $0x1b0] sm:$0xff]  }
  0xc7   : > { %887 = vmatmul.mubr.bf16.gmra.mrb[28].mxu0 %v7176_v39 }
  0xc8   : > { %1353 = vmatmul.mubr.bf16.gmra.mrb[28].mxu1 %v7125_v58  ;;  %894 = vmatprep.mubr.bf16.mxu0 %v7188_v33 }
  0xc9   : > { %1360 = vmatprep.mubr.bf16.mxu1 %v7146_v19 }
  0xcf   : > { %895 = vmatmul.mubr.bf16.gmra.mrb[32].mxu0 %v7207_v25 }
  0xd0   : > { %1361 = vmatmul.mubr.bf16.gmra.mrb[32].mxu1 %v7176_v39  ;;  %902 = vmatprep.mubr.bf16.mxu0 %v7211_v24 }
  0xd1   : > { %1368 = vmatprep.mubr.bf16.mxu1 %v7188_v33 }
  0xd7   : > { %903 = vmatmul.mubr.bf16.gmra.mrb[36].mxu0 %v7223_v41 }
  0xd8   : > { %1369 = vmatmul.mubr.bf16.gmra.mrb[36].mxu1 %v7207_v25  ;;  %910 = vmatprep.mubr.bf16.mxu0 %v7227_v49 }
  0xd9   : > { %1376 = vmatprep.mubr.bf16.mxu1 %v7211_v24 }
  0xdf   : > { %911 = vmatmul.mubr.bf16.gmra.mrb[40].mxu0 %v7239_v15 }
  0xe0   : > { %1377 = vmatmul.mubr.bf16.gmra.mrb[40].mxu1 %v7223_v41  ;;  %918 = vmatprep.mubr.bf16.mxu0 %v7243_v44 }
  0xe1   : > { %1384 = vmatprep.mubr.bf16.mxu1 %v7227_v49 }
  0xe7   : > { %919 = vmatmul.mubr.bf16.gmra.mrb[44].mxu0 %v7255_v57 }
  0xe8   : > { %1385 = vmatmul.mubr.bf16.gmra.mrb[44].mxu1 %v7239_v15  ;;  %926 = vmatprep.mubr.bf16.mxu0 %v7259_v59 }
  0xe9   : > { %1392 = vmatprep.mubr.bf16.mxu1 %v7243_v44 }
  0xef   : > { %927 = vmatmul.mubr.bf16.gmra.mrb[48].mxu0 %v7271_v30 }
  0xf0   : > { %1393 = vmatmul.mubr.bf16.gmra.mrb[48].mxu1 %v7255_v57  ;;  %934 = vmatprep.mubr.bf16.mxu0 %v7275_v60 }
  0xf1   : > { %1400 = vmatprep.mubr.bf16.mxu1 %v7259_v59 }
  0xf7   : > { %935 = vmatmul.mubr.bf16.gmra.mrb[52].mxu0 %v7287_v51 }
  0xf8   : > { %1401 = vmatmul.mubr.bf16.gmra.mrb[52].mxu1 %v7271_v30  ;;  %942 = vmatprep.mubr.bf16.mxu0 %v7291_v45 }
  0xf9   : > { %1408 = vmatprep.mubr.bf16.mxu1 %v7275_v60 }
  0xff   : > { %943 = vmatmul.mubr.bf16.gmra.mrb[56].mxu0 %v7304_v16 }
 0x100   : > { %1409 = vmatmul.mubr.bf16.gmra.mrb[56].mxu1 %v7287_v51  ;;  %950 = vmatprep.mubr.bf16.mxu0 %v7308_v21 }
 0x101   : > { %1416 = vmatprep.mubr.bf16.mxu1 %v7291_v45 }
 0x107   : > { %951 = vmatmul.mubr.bf16.gmra.mrb[60].mxu0 %v7321_v26 }
 0x108   : > { %1417 = vmatmul.mubr.bf16.gmra.mrb[60].mxu1 %v7304_v16  ;;  %5565 = vmatprep.mubr.bf16.mxu0 %v6958_v8 }
 0x109   : > { %5613 = vmatprep.mubr.bf16.mxu1 %v6967_v17 }
 0x10f   : > { %5566 = vmatmul.mubr.bf16.vlgmr.msra.gmra.mrb[64].mxu0 %v6967_v17 }
 0x110   : > { %5614 = vmatmul.mubr.bf16.vlgmr.msra.gmra.mrb[64].mxu1 %v6958_v8  ;;  %5006 = vmatpush3.bf16.msra.mxu0 %v6279_v2  ;;  %v6293_v8 = vld [vmem:[#allocation5 + $0x218] sm:$0xff]  }
 0x111   : > { %5569 = vmatprep.mubr.bf16.mxu0 %v6998_v46  ;;  %5617 = vmatprep.mubr.bf16.mxu1 %v6967_v17  ;;  %v6298_v2 = vld [vmem:[#allocation5 + $0x1f8] sm:$0xff]  }
 0x112   : > { %5007 = vmatprep.subr.bf16.mxu0 %v6280_v52  ;;  %5646 = vmatpush3.bf16.msra.mxu1 %v7082_v7  ;;  %v6286_v7 = vld [vmem:[#allocation5 + $0x1e0] sm:$0xff]   ;;  %v6301_v52 = vld [vmem:[#allocation5 + $0x238] sm:$0xff]  }
 0x113   : > { %5647 = vmatprep.subr.bf16.mxu1 %v6289_v20 }
 0x114   : > { %5008 = vmatpush3.bf16.msra.mxu0 %v6281_v29 }
 0x115   : > { %5009 = vmatprep.subr.bf16.mxu0 %v6282_v56 }
 0x116   : > { %5648 = vmatpush3.bf16.msra.mxu1 %v6289_v20  ;;  %v6300_v20 = vld [vmem:[#allocation5 + $0x1b8] sm:$0xff]  }
 0x117   : > { %5570 = vmatmul.mubr.bf16.gmra.mrb[68].mxu0 %v7004_v53  ;;  %5649 = vmatprep.subr.bf16.mxu1 %v6291_v38 }
 0x118   : > { %5618 = vmatmul.mubr.bf16.gmra.mrb[68].mxu1 %v6998_v46  ;;  %5573 = vmatprep.mubr.bf16.mxu0 %v7013_v0 }
 0x119   : > { %5621 = vmatprep.mubr.bf16.mxu1 %v7004_v53  ;;  %5010 = vmatpush3.bf16.msra.mxu0 %v6283_v22 }
 0x11a   : > { %5011 = vmatprep.subr.bf16.mxu0 %v6284_v14  ;;  %5650 = vmatpush3.bf16.msra.mxu1 %v6291_v38 }
 0x11b   : > { %5651 = vmatprep.subr.bf16.mxu1 %v6293_v8 }
 0x11d   : > { %5012 = vmatpush3.bf16.msra.mxu0 %v6285_v28 }
 0x11e   : > { %5013 = vmatprep.subr.bf16.mxu0 %v6286_v7  ;;  %5652 = vmatpush3.bf16.msra.mxu1 %v6293_v8 }
 0x11f   : > { %5574 = vmatmul.mubr.bf16.gmra.mrb[72].mxu0 %v7022_v6  ;;  %5653 = vmatprep.subr.bf16.mxu1 %v6295_v37 }
 0x120   : > { %5622 = vmatmul.mubr.bf16.gmra.mrb[72].mxu1 %v7013_v0  ;;  %5577 = vmatprep.mubr.bf16.mxu0 %v7032_v12 }
 0x121   : > { %5625 = vmatprep.mubr.bf16.mxu1 %v7022_v6  ;;  %5014 = vmatpush3.bf16.msra.mxu0 %v6288_v35 }
 0x122   : > { %5015 = vmatprep.subr.bf16.mxu0 %v6290_v10  ;;  %5654 = vmatpush3.bf16.msra.mxu1 %v6295_v37 }
 0x123   : > { %5655 = vmatprep.subr.bf16.mxu1 %v6297_v42 }
 0x125   : > { %5016 = vmatpush3.bf16.msra.mxu0 %v6292_v43 }
 0x126   : > { %5017 = vmatprep.subr.bf16.mxu0 %v6294_v3  ;;  %5656 = vmatpush3.bf16.msra.mxu1 %v6297_v42 }
 0x127   : > { %5578 = vmatmul.mubr.bf16.gmra.mrb[76].mxu0 %v7043_v61  ;;  %5657 = vmatprep.subr.bf16.mxu1 %v6299_v5 }
 0x128   : > { %5626 = vmatmul.mubr.bf16.gmra.mrb[76].mxu1 %v7032_v12  ;;  %5581 = vmatprep.mubr.bf16.mxu0 %v7053_v32 }
 0x129   : > { %5629 = vmatprep.mubr.bf16.mxu1 %v7043_v61  ;;  %5018 = vmatpush3.bf16.msra.mxu0 %v6296_v11 }
 0x12a   : > { %5019 = vmatprep.subr.bf16.mxu0 %v6298_v2  ;;  %5658 = vmatpush3.bf16.msra.mxu1 %v6299_v5 }
 0x12b   : > { %5659 = vmatprep.subr.bf16.mxu1 %v6301_v52 }
 0x12d   : > { %5020 = vmatpush3.bf16.msra.mxu0 %v6300_v20 }
 0x12e   : > { %5660 = vmatpush3.bf16.msra.mxu1 %v6301_v52 }
 0x12f   : > { %5582 = vmatmul.mubr.bf16.gmra.mrb[80].mxu0 %v7063_v63 }
 0x130   : > { %5630 = vmatmul.mubr.bf16.gmra.mrb[80].mxu1 %v7053_v32  ;;  %5585 = vmatprep.mubr.bf16.mxu0 %v7084_v23 }
 0x131   : > { %5633 = vmatprep.mubr.bf16.mxu1 %v7063_v63 }
 0x137   : > { %5586 = vmatmul.mubr.bf16.gmra.mrb[84].mxu0 %v7096_v36 }
 0x138   : > { %5634 = vmatmul.mubr.bf16.gmra.mrb[84].mxu1 %v7084_v23  ;;  %5589 = vmatprep.mubr.bf16.mxu0 %v7136_v31 }
 0x139   : > { %5637 = vmatprep.mubr.bf16.mxu1 %v7096_v36 }
 0x13f   : > { %5590 = vmatmul.mubr.bf16.gmra.mrb[88].mxu0 %v7148_v62 }
 0x140   : > { %5638 = vmatmul.mubr.bf16.gmra.mrb[88].mxu1 %v7136_v31  ;;  %5593 = vmatprep.mubr.bf16.mxu0 %v7178_v13 }
 0x141   : > { %5641 = vmatprep.mubr.bf16.mxu1 %v7148_v62 }
 0x147   : > { %5594 = vmatmul.mubr.bf16.gmra.mrb[92].mxu0 %v7190_v34 }
 0x148   : > { %5642 = vmatmul.mubr.bf16.gmra.mrb[92].mxu1 %v7178_v13  ;;  %1811 = vmatprep.mubr.bf16.mxu0 %v6805_v40 }
 0x149   : > { %5661 = vmatprep.mubr.bf16.mxu1 %v6967_v17 }
 0x14f   : > { %1812 = vmatmul.mubr.bf16.vlgmr.msra.gmra.mrb[96].mxu0 %v6823_v50 }
 0x150   : > { %5662 = vmatmul.mubr.bf16.vlgmr.msra.gmra.mrb[64].mxu1 %v6998_v46  ;;  %1819 = vmatprep.mubr.bf16.mxu0 %v6835_v55 }
 0x151   : > { %5665 = vmatprep.mubr.bf16.mxu1 %v7004_v53 }
 0x157   : > { %1820 = vmatmul.mubr.bf16.gmra.mrb[100].mxu0 %v6858_v4 }
 0x158   : > { %5666 = vmatmul.mubr.bf16.gmra.mrb[68].mxu1 %v7013_v0  ;;  %1827 = vmatprep.mubr.bf16.mxu0 %v6870_v9 }
 0x159   : > { %5669 = vmatprep.mubr.bf16.mxu1 %v7022_v6 }
 0x15f   : > { %1828 = vmatmul.mubr.bf16.gmra.mrb[104].mxu0 %v6924_v47 }
 0x160   : > { %5670 = vmatmul.mubr.bf16.gmra.mrb[72].mxu1 %v7032_v12  ;;  %1835 = vmatprep.mubr.bf16.mxu0 %v6928_v48 }
 0x161   : > { %5673 = vmatprep.mubr.bf16.mxu1 %v7043_v61 }
 0x162   : > { %v4749_v40 = vpop.f32.mrb[0].mxu0 }
 0x163   : > { %v4750_v50 = vpop.f32.mrb[1].mxu0  ;;  %v4885_v55 = vpop.f32.mrb[0].mxu1 }
 0x164   : > { %v4752_v17 = vpop.f32.mrb[2].mxu0  ;;  %v4886_v46 = vpop.f32.mrb[1].mxu1  ;;  %v7372_v4 = vadd.f32 %v4750_v50, %v4749_v40 }
 0x165   : > { %v4753_v53 = vpop.f32.mrb[3].mxu0  ;;  %v7374_v0 = vadd.f32 %v4886_v46, %v4885_v55  ;;  %v4888_v9 = vpop.f32.mrb[2].mxu1 }
 0x166   : > { %v4889_v6 = vpop.f32.mrb[3].mxu1  ;;  %v7376_v29 = vadd.f32 %v4753_v53, %v4752_v17 }
 0x167   : > { %1836 = vmatmul.mubr.bf16.gmra.mrb[108].mxu0 %v6979_v18  ;;  %v7379_v47 = vadd.f32 %v4889_v6, %v4888_v9 }
 0x168   : > { %5674 = vmatmul.mubr.bf16.gmra.mrb[76].mxu1 %v7053_v32  ;;  %1843 = vmatprep.mubr.bf16.mxu0 %v6973_v27 }
 0x169   : > { %5677 = vmatprep.mubr.bf16.mxu1 %v7063_v63 }
 0x16a   : > { %v4755_v48 = vpop.f32.mrb[4].mxu0 }
 0x16b   : > { %v4756_v12 = vpop.f32.mrb[5].mxu0  ;;  %v4891_v61 = vpop.f32.mrb[4].mxu1 }
 0x16c   : > { %v4758_v56 = vpop.f32.mrb[6].mxu0  ;;  %v4892_v38 = vpop.f32.mrb[5].mxu1  ;;  %v7384_v22 = vadd.f32 %v4756_v12, %v4755_v48 }
 0x16d   : > { %v4759_v14 = vpop.f32.mrb[7].mxu0  ;;  %v7386_v8 = vadd.f32 %v4892_v38, %v4891_v61  ;;  %v4894_v28 = vpop.f32.mrb[6].mxu1 }
 0x16e   : > { %v4895_v18 = vpop.f32.mrb[7].mxu1  ;;  %v7388_v7 = vadd.f32 %v4759_v14, %v4758_v56 }
 0x16f   : > { %1844 = vmatmul.mubr.bf16.gmra.mrb[112].mxu0 %v7071_v1  ;;  %v7391_v32 = vadd.f32 %v4895_v18, %v4894_v28 }
 0x170   : > { %5678 = vmatmul.mubr.bf16.gmra.mrb[80].mxu1 %v7084_v23  ;;  %1851 = vmatprep.mubr.bf16.mxu0 %v7094_v54 }
 0x171   : > { %5681 = vmatprep.mubr.bf16.mxu1 %v7096_v36 }
 0x172   : > { %v4761_v27 = vpop.f32.mrb[8].mxu0 }
 0x173   : > { %v4762_v63 = vpop.f32.mrb[9].mxu0  ;;  %v4897_v37 = vpop.f32.mrb[8].mxu1 }
 0x174   : > { %v4764_v35 = vpop.f32.mrb[10].mxu0  ;;  %v4898_v10 = vpop.f32.mrb[9].mxu1  ;;  %v7396_v42 = vadd.f32 %v4762_v63, %v4761_v27 }
 0x175   : > { %v4765_v43 = vpop.f32.mrb[11].mxu0  ;;  %v7398_v3 = vadd.f32 %v4898_v10, %v4897_v37  ;;  %v4900_v5 = vpop.f32.mrb[10].mxu1 }
 0x176   : > { %v4901_v1 = vpop.f32.mrb[11].mxu1  ;;  %v7400_v11 = vadd.f32 %v4765_v43, %v4764_v35 }
 0x177   : > { %1852 = vmatmul.mubr.bf16.gmra.mrb[116].mxu0 %v7125_v58  ;;  %v7403_v23 = vadd.f32 %v4901_v1, %v4900_v5 }
 0x178   : > { %5682 = vmatmul.mubr.bf16.gmra.mrb[84].mxu1 %v7136_v31  ;;  %1859 = vmatprep.mubr.bf16.mxu0 %v7146_v19 }
 0x179   : > { %5685 = vmatprep.mubr.bf16.mxu1 %v7148_v62 }
 0x17a   : > { %v4767_v54 = vpop.f32.mrb[12].mxu0 }
 0x17b   : > { %v4768_v36 = vpop.f32.mrb[13].mxu0  ;;  %v4903_v2 = vpop.f32.mrb[12].mxu1 }
 0x17c   : > { %v4770_v52 = vpop.f32.mrb[14].mxu0  ;;  %v4904_v20 = vpop.f32.mrb[13].mxu1  ;;  %v7408_v40 = vadd.f32 %v4768_v36, %v4767_v54 }
 0x17d   : > { %v4771_v50 = vpop.f32.mrb[15].mxu0  ;;  %v7410_v55 = vadd.f32 %v4904_v20, %v4903_v2  ;;  %v4906_v17 = vpop.f32.mrb[14].mxu1 }
 0x17e   : > { %v4907_v58 = vpop.f32.mrb[15].mxu1  ;;  %v7412_v46 = vadd.f32 %v4771_v50, %v4770_v52 }
 0x17f   : > { %1860 = vmatmul.mubr.bf16.gmra.mrb[120].mxu0 %v7176_v39  ;;  %v7415_v31 = vadd.f32 %v4907_v58, %v4906_v17 }
 0x180   : > { %5686 = vmatmul.mubr.bf16.gmra.mrb[88].mxu1 %v7178_v13  ;;  %1867 = vmatprep.mubr.bf16.mxu0 %v7188_v33 }
 0x181   : > { %5689 = vmatprep.mubr.bf16.mxu1 %v7190_v34 }
 0x182   : > { %v4773_v19 = vpop.f32.mrb[16].mxu0 }
 0x183   : > { %v4774_v62 = vpop.f32.mrb[17].mxu0  ;;  %v4909_v53 = vpop.f32.mrb[16].mxu1 }
 0x184   : > { %v4776_v9 = vpop.f32.mrb[18].mxu0  ;;  %v4910_v6 = vpop.f32.mrb[17].mxu1  ;;  %v7420_v48 = vadd.f32 %v4774_v62, %v4773_v19 }
 0x185   : > { %v4777_v12 = vpop.f32.mrb[19].mxu0  ;;  %v7422_v61 = vadd.f32 %v4910_v6, %v4909_v53  ;;  %v4912_v56 = vpop.f32.mrb[18].mxu1 }
 0x186   : > { %v4913_v39 = vpop.f32.mrb[19].mxu1  ;;  %v7424_v38 = vadd.f32 %v4777_v12, %v4776_v9 }
 0x187   : > { %1868 = vmatmul.mubr.bf16.gmra.mrb[124].mxu0 %v7207_v25  ;;  %v7427_v14 = vadd.f32 %v4913_v39, %v4912_v56 }
 0x188   : > { %5690 = vmatmul.mubr.bf16.gmra.mrb[92].mxu1 %v7178_v13  ;;  %1875 = vmatprep.mubr.bf16.mxu0 %v7211_v24 }
 0x18a   : > { %v4779_v33 = vpop.f32.mrb[20].mxu0 }
 0x18b   : > { %v4780_v34 = vpop.f32.mrb[21].mxu0  ;;  %v4915_v28 = vpop.f32.mrb[20].mxu1 }
 0x18c   : > { %v4782_v18 = vpop.f32.mrb[22].mxu0  ;;  %v4916_v27 = vpop.f32.mrb[21].mxu1  ;;  %v7431_v63 = vadd.f32 %v4780_v34, %v4779_v33 }
 0x18d   : > { %v4783_v37 = vpop.f32.mrb[23].mxu0  ;;  %v7433_v35 = vadd.f32 %v4916_v27, %v4915_v28  ;;  %v4918_v10 = vpop.f32.mrb[22].mxu1 }
 0x18e   : > { %v4919_v43 = vpop.f32.mrb[23].mxu1  ;;  %v7435_v5 = vadd.f32 %v4783_v37, %v4782_v18 }
 0x18f   : > { %1876 = vmatmul.mubr.bf16.gmra.mrb[128].mxu0 %v7223_v41  ;;  %v7438_v25 = vadd.f32 %v4919_v43, %v4918_v10 }
 0x190   : > { %1883 = vmatprep.mubr.bf16.mxu0 %v7227_v49 }
 0x192   : > { %v4785_v13 = vpop.f32.mrb[24].mxu0 }
 0x193   : > { %v4786_v24 = vpop.f32.mrb[25].mxu0  ;;  %v4921_v1 = vpop.f32.mrb[24].mxu1 }
 0x194   : > { %v4788_v54 = vpop.f32.mrb[26].mxu0  ;;  %v4922_v36 = vpop.f32.mrb[25].mxu1  ;;  %v7441_v2 = vadd.f32 %v4786_v24, %v4785_v13 }
 0x195   : > { %v4789_v52 = vpop.f32.mrb[27].mxu0  ;;  %v7443_v20 = vadd.f32 %v4922_v36, %v4921_v1  ;;  %v4924_v50 = vpop.f32.mrb[26].mxu1 }
 0x196   : > { %v4925_v17 = vpop.f32.mrb[27].mxu1  ;;  %v7445_v58 = vadd.f32 %v4789_v52, %v4788_v54 }
 0x197   : > { %1884 = vmatmul.mubr.bf16.gmra.mrb[132].mxu0 %v7239_v15  ;;  %v7448_v41 = vadd.f32 %v4925_v17, %v4924_v50 }
 0x198   : > { %1891 = vmatprep.mubr.bf16.mxu0 %v7243_v44 }
 0x19a   : > { %v4791_v49 = vpop.f32.mrb[28].mxu0 }
 0x19b   : > { %v4792_v19 = vpop.f32.mrb[29].mxu0  ;;  %v4927_v62 = vpop.f32.mrb[28].mxu1 }
 0x19c   : > { %v4794_v53 = vpop.f32.mrb[30].mxu0  ;;  %v4928_v9 = vpop.f32.mrb[29].mxu1  ;;  %v7451_v6 = vadd.f32 %v4792_v19, %v4791_v49 }
 0x19d   : > { %v4795_v12 = vpop.f32.mrb[31].mxu0  ;;  %v7453_v56 = vadd.f32 %v4928_v9, %v4927_v62  ;;  %v4930_v39 = vpop.f32.mrb[30].mxu1 }
 0x19e   : > { %v4931_v33 = vpop.f32.mrb[31].mxu1  ;;  %v7455_v34 = vadd.f32 %v4795_v12, %v4794_v53 }
 0x19f   : > { %1892 = vmatmul.mubr.bf16.gmra.mrb[136].mxu0 %v7255_v57  ;;  %v7458_v15 = vadd.f32 %v4931_v33, %v4930_v39 }
 0x1a0   : > { %1899 = vmatprep.mubr.bf16.mxu0 %v7259_v59 }
 0x1a2   : > { %v4797_v44 = vpop.f32.mrb[32].mxu0 }
 0x1a3   : > { %v4798_v28 = vpop.f32.mrb[33].mxu0  ;;  %v4933_v18 = vpop.f32.mrb[32].mxu1 }
 0x1a4   : > { %v7461_v27 = vadd.f32 %v4798_v28, %v4797_v44  ;;  %v4800_v37 = vpop.f32.mrb[34].mxu0  ;;  %v4934_v10 = vpop.f32.mrb[33].mxu1 }
 0x1a5   : > { %v4801_v43 = vpop.f32.mrb[35].mxu0  ;;  %v7463_v13 = vadd.f32 %v4934_v10, %v4933_v18  ;;  %v4936_v24 = vpop.f32.mrb[34].mxu1 }
 0x1a6   : > { %v7465_v1 = vadd.f32 %v4801_v43, %v4800_v37  ;;  %v4937_v54 = vpop.f32.mrb[35].mxu1 }
 0x1a7   : > { %1900 = vmatmul.mubr.bf16.gmra.mrb[140].mxu0 %v7271_v30  ;;  %v7468_v57 = vadd.f32 %v4937_v54, %v4936_v24 }
 0x1a8   : > { %1907 = vmatprep.mubr.bf16.mxu0 %v7275_v60 }
 0x1aa   : > { %v4803_v59 = vpop.f32.mrb[36].mxu0 }
 0x1ab   : > { %v4804_v36 = vpop.f32.mrb[37].mxu0  ;;  %v4939_v52 = vpop.f32.mrb[36].mxu1 }
 0x1ac   : > { %v7471_v50 = vadd.f32 %v4804_v36, %v4803_v59  ;;  %v4806_v17 = vpop.f32.mrb[38].mxu0  ;;  %v4940_v49 = vpop.f32.mrb[37].mxu1 }
 0x1ad   : > { %v4807_v19 = vpop.f32.mrb[39].mxu0  ;;  %v7473_v62 = vadd.f32 %v4940_v49, %v4939_v52  ;;  %v4942_v53 = vpop.f32.mrb[38].mxu1 }
 0x1ae   : > { %v7475_v9 = vadd.f32 %v4807_v19, %v4806_v17  ;;  %v4943_v12 = vpop.f32.mrb[39].mxu1 }
 0x1af   : > { %1908 = vmatmul.mubr.bf16.gmra.mrb[144].mxu0 %v7287_v51  ;;  %v7478_v30 = vadd.f32 %v4943_v12, %v4942_v53 }
 0x1b0   : > { %1915 = vmatprep.mubr.bf16.mxu0 %v7291_v45 }
 0x1b2   : > { %v4809_v60 = vpop.f32.mrb[40].mxu0 }
 0x1b3   : > { %v4810_v39 = vpop.f32.mrb[41].mxu0  ;;  %v4945_v33 = vpop.f32.mrb[40].mxu1 }
 0x1b4   : > { %v7481_v44 = vadd.f32 %v4810_v39, %v4809_v60  ;;  %v4812_v28 = vpop.f32.mrb[42].mxu0  ;;  %v4946_v18 = vpop.f32.mrb[41].mxu1 }
 0x1b5   : > { %v4813_v37 = vpop.f32.mrb[43].mxu0  ;;  %v7483_v10 = vadd.f32 %v4946_v18, %v4945_v33  ;;  %v4948_v43 = vpop.f32.mrb[42].mxu1 }
 0x1b6   : > { %v7485_v24 = vadd.f32 %v4813_v37, %v4812_v28  ;;  %v4949_v54 = vpop.f32.mrb[43].mxu1 }
 0x1b7   : > { %1916 = vmatmul.mubr.bf16.gmra.mrb[148].mxu0 %v7304_v16  ;;  %v7488_v51 = vadd.f32 %v4949_v54, %v4948_v43 }
 0x1b8   : > { %9183 = vst [vmem:[#allocation12_spill] sm:$0xff] %v7485_v24  ;;  %1923 = vmatprep.mubr.bf16.mxu0 %v7308_v21 }
 0x1b9   : > { %9184 = vst [vmem:[#allocation13_spill] sm:$0xff] %v7488_v51 }
 0x1ba   : > { %v4815_v59 = vpop.f32.mrb[44].mxu0 }
 0x1bb   : > { %v4816_v36 = vpop.f32.mrb[45].mxu0  ;;  %v4951_v52 = vpop.f32.mrb[44].mxu1 }
 0x1bc   : > { %v7491_v17 = vadd.f32 %v4816_v36, %v4815_v59  ;;  %v4818_v49 = vpop.f32.mrb[46].mxu0  ;;  %v4952_v19 = vpop.f32.mrb[45].mxu1 }
 0x1bd   : > { %v4819_v53 = vpop.f32.mrb[47].mxu0  ;;  %v7493_v12 = vadd.f32 %v4952_v19, %v4951_v52  ;;  %v4954_v60 = vpop.f32.mrb[46].mxu1 }
 0x1be   : > { %v7495_v39 = vadd.f32 %v4819_v53, %v4818_v49  ;;  %v4955_v33 = vpop.f32.mrb[47].mxu1 }
 0x1bf   : > { %1924 = vmatmul.mubr.bf16.gmra.mrb[152].mxu0 %v7321_v26  ;;  %v7498_v28 = vadd.f32 %v4955_v33, %v4954_v60 }
 0x1c0   : > { %1931 = vmatprep.mubr.bf16.mxu0 %v7291_v45 }
 0x1c1   : > { %9185 = vst [vmem:[#allocation14_spill] sm:$0xff] %v7498_v28 }
 0x1c2   : > { %v4821_v21 = vpop.f32.mrb[48].mxu0 }
 0x1c3   : > { %v4822_v18 = vpop.f32.mrb[49].mxu0  ;;  %v4957_v37 = vpop.f32.mrb[48].mxu1 }
 0x1c4   : > { %v7501_v43 = vadd.f32 %v4822_v18, %v4821_v21  ;;  %v4824_v54 = vpop.f32.mrb[50].mxu0  ;;  %v4958_v59 = vpop.f32.mrb[49].mxu1 }
 0x1c5   : > { %v4825_v36 = vpop.f32.mrb[51].mxu0  ;;  %v7503_v52 = vadd.f32 %v4958_v59, %v4957_v37  ;;  %v4960_v19 = vpop.f32.mrb[50].mxu1 }
 0x1c6   : > { %9186 = vst [vmem:[#allocation15_spill] sm:$0xff] %v7501_v43  ;;  %v7505_v49 = vadd.f32 %v4825_v36, %v4824_v54  ;;  %v4961_v53 = vpop.f32.mrb[51].mxu1 }
 0x1c7   : > { %9187 = vst [vmem:[#allocation16_spill] sm:$0xff] %v7503_v52  ;;  %1932 = vmatmul.mubr.bf16.gmra.mrb[156].mxu0 %v7304_v16  ;;  %v7508_v26 = vadd.f32 %v4961_v53, %v4960_v19 }
 0x1c8   : > { %9188 = vst [vmem:[#allocation17_spill] sm:$0xff] %v7505_v49 }
 0x1c9   : > { %9189 = vst [vmem:[#allocation18_spill] sm:$0xff] %v7508_v26 }
 0x1ca   : > { %v4827_v60 = vpop.f32.mrb[52].mxu0 }
 0x1cb   : > { %v4828_v45 = vpop.f32.mrb[53].mxu0  ;;  %v4963_v33 = vpop.f32.mrb[52].mxu1 }
 0x1cc   : > { %v7510_v51 = vadd.f32 %v4828_v45, %v4827_v60  ;;  %v4830_v21 = vpop.f32.mrb[54].mxu0  ;;  %v4964_v18 = vpop.f32.mrb[53].mxu1 }
 0x1cd   : > { %v4831_v43 = vpop.f32.mrb[55].mxu0  ;;  %v7512_v28 = vadd.f32 %v4964_v18, %v4963_v33  ;;  %v4966_v37 = vpop.f32.mrb[54].mxu1 }
 0x1ce   : > { %9190 = vst [vmem:[#allocation19_spill] sm:$0xff] %v7510_v51  ;;  %v7514_v59 = vadd.f32 %v4831_v43, %v4830_v21  ;;  %v4967_v54 = vpop.f32.mrb[55].mxu1 }
 0x1cf   : > { %9191 = vst [vmem:[#allocation20_spill] sm:$0xff] %v7512_v28  ;;  %v7516_v36 = vadd.f32 %v4967_v54, %v4966_v37 }
 0x1d0   : > { %9192 = vst [vmem:[#allocation21_spill] sm:$0xff] %v7514_v59 }
 0x1d1   : > { %9193 = vst [vmem:[#allocation22_spill] sm:$0xff] %v7516_v36 }
 0x1d2   : > { %v4833_v49 = vpop.f32.mrb[56].mxu0 }
 0x1d3   : > { %v4834_v16 = vpop.f32.mrb[57].mxu0  ;;  %v4969_v19 = vpop.f32.mrb[56].mxu1 }
 0x1d4   : > { %v7518_v53 = vadd.f32 %v4834_v16, %v4833_v49  ;;  %v4836_v26 = vpop.f32.mrb[58].mxu0  ;;  %v4970_v52 = vpop.f32.mrb[57].mxu1 }
 0x1d5   : > { %v4837_v60 = vpop.f32.mrb[59].mxu0  ;;  %v7520_v45 = vadd.f32 %v4970_v52, %v4969_v19  ;;  %v4972_v51 = vpop.f32.mrb[58].mxu1 }
 0x1d6   : > { %9194 = vst [vmem:[#allocation23_spill] sm:$0xff] %v7518_v53  ;;  %v7522_v24 = vadd.f32 %v4837_v60, %v4836_v26  ;;  %v4973_v33 = vpop.f32.mrb[59].mxu1 }
 0x1d7   : > { %v7524_v18 = vadd.f32 %v4973_v33, %v4972_v51 }
 0x1d9   : > { %9195 = vst [vmem:[#allocation24_spill] sm:$0xff] %v7524_v18 }
 0x1da   : > { %v4839_v43 = vpop.f32.mrb[60].mxu0 }
 0x1db   : > { %v4840_v21 = vpop.f32.mrb[61].mxu0  ;;  %v4975_v37 = vpop.f32.mrb[60].mxu1 }
 0x1dc   : > { %v7526_v54 = vadd.f32 %v4840_v21, %v4839_v43  ;;  %v4842_v36 = vpop.f32.mrb[62].mxu0  ;;  %v4976_v59 = vpop.f32.mrb[61].mxu1 }
 0x1dd   : > { %v4843_v49 = vpop.f32.mrb[63].mxu0  ;;  %v7528_v16 = vadd.f32 %v4976_v59, %v4975_v37  ;;  %v4978_v53 = vpop.f32.mrb[62].mxu1 }
 0x1de   : > { %v7530_v28 = vadd.f32 %v4843_v49, %v4842_v36  ;;  %v4979_v52 = vpop.f32.mrb[63].mxu1 }
 0x1df   : > { %v7532_v19 = vadd.f32 %v4979_v52, %v4978_v53 }
 0x1e2   : > { %v5567_v26 = vpop.f32.mrb[64].mxu0 }
 0x1e3   : > { %v1002_v51 = vadd.f32 %v5567_v26, %v7384_v22  ;;  %v993_v60 = vpop.f32.mrb[65].mxu0 }
 0x1e4   : > { %v994_v33 = vadd.f32 %v7372_v4, %v993_v60  ;;  %v5568_v18 = vpop.f32.mrb[66].mxu0 }
 0x1e5   : > { %v7537_v43 = vadd.f32 %v7386_v8, %v1002_v51  ;;  %v1005_v21 = vadd.f32 %v5568_v18, %v7388_v7  ;;  %v996_v59 = vpop.f32.mrb[67].mxu0 }
 0x1e6   : > { %v7541_v37 = vadd.f32 %v7374_v0, %v994_v33  ;;  %v997_v36 = vadd.f32 %v7376_v29, %v996_v59 }
 0x1e7   : > { %v7545_v53 = vadd.f32 %v7391_v32, %v1005_v21 }
 0x1e8   : > { %v7548_v22 = vadd.f32 %v7379_v47, %v997_v36 }
 0x1ea   : > { %v5571_v49 = vpop.f32.mrb[68].mxu0 }
 0x1eb   : > { %v1018_v4 = vadd.f32 %v5571_v49, %v7408_v40  ;;  %v1009_v52 = vpop.f32.mrb[69].mxu0 }
 0x1ec   : > { %v1010_v8 = vadd.f32 %v7396_v42, %v1009_v52  ;;  %v5572_v26 = vpop.f32.mrb[70].mxu0 }
 0x1ed   : > { %v7553_v7 = vadd.f32 %v7410_v55, %v1018_v4  ;;  %v1021_v0 = vadd.f32 %v5572_v26, %v7412_v46  ;;  %v1012_v18 = vpop.f32.mrb[71].mxu0 }
 0x1ee   : > { %v7557_v29 = vadd.f32 %v7398_v3, %v1010_v8  ;;  %v1013_v32 = vadd.f32 %v7400_v11, %v1012_v18 }
 0x1ef   : > { %v7561_v47 = vadd.f32 %v7415_v31, %v1021_v0 }
 0x1f0   : > { %v7564_v40 = vadd.f32 %v7403_v23, %v1013_v32 }
 0x1f2   : > { %v5575_v51 = vpop.f32.mrb[72].mxu0 }
 0x1f3   : > { %v1034_v42 = vadd.f32 %v5575_v51, %v7431_v63  ;;  %v1025_v60 = vpop.f32.mrb[73].mxu0 }
 0x1f4   : > { %v1026_v55 = vadd.f32 %v7420_v48, %v1025_v60  ;;  %v5576_v33 = vpop.f32.mrb[74].mxu0 }
 0x1f5   : > { %v7569_v46 = vadd.f32 %v7433_v35, %v1034_v42  ;;  %v1037_v3 = vadd.f32 %v5576_v33, %v7435_v5  ;;  %v1028_v21 = vpop.f32.mrb[75].mxu0  ;;  %v9198_v33 = vld [vmem:[#allocation13_spill] sm:$0xff] }
 0x1f6   : > { %v7573_v11 = vadd.f32 %v7422_v61, %v1026_v55  ;;  %v1029_v31 = vadd.f32 %v7424_v38, %v1028_v21 }
 0x1f7   : > { %v7577_v23 = vadd.f32 %v7438_v25, %v1037_v3 }
 0x1f8   : > { %v7580_v63 = vadd.f32 %v7427_v14, %v1029_v31 }
 0x1fa   : > { %v5579_v59 = vpop.f32.mrb[76].mxu0 }
 0x1fb   : > { %v1050_v48 = vadd.f32 %v5579_v59, %v7451_v6  ;;  %v1041_v36 = vpop.f32.mrb[77].mxu0 }
 0x1fc   : > { %v1042_v35 = vadd.f32 %v7441_v2, %v1041_v36  ;;  %v5580_v49 = vpop.f32.mrb[78].mxu0 }
 0x1fd   : > { %v7585_v5 = vadd.f32 %v7453_v56, %v1050_v48  ;;  %v1053_v61 = vadd.f32 %v5580_v49, %v7455_v34  ;;  %v1044_v4 = vpop.f32.mrb[79].mxu0 }
 0x1fe   : > { %v7589_v38 = vadd.f32 %v7443_v20, %v1042_v35  ;;  %v1045_v25 = vadd.f32 %v7445_v58, %v1044_v4 }
 0x1ff   : > { %v7593_v14 = vadd.f32 %v7458_v15, %v1053_v61  ;;  %v9203_v61 = vld [vmem:[#allocation16_spill] sm:$0xff] }
 0x200   : > { %v7596_v6 = vadd.f32 %v7448_v41, %v1045_v25  ;;  %v9204_v25 = vld [vmem:[#allocation17_spill] sm:$0xff] }
 0x202   : > { %v5583_v52 = vpop.f32.mrb[80].mxu0 }
 0x203   : > { %v1066_v2 = vadd.f32 %v5583_v52, %v7471_v50  ;;  %v1057_v8 = vpop.f32.mrb[81].mxu0 }
 0x204   : > { %v1058_v56 = vadd.f32 %v7461_v27, %v1057_v8  ;;  %v5584_v26 = vpop.f32.mrb[82].mxu0  ;;  %v6303_v8 = vld [vmem:[#allocation7 + $0xc0] sm:$0xff]  }
 0x205   : > { %v7601_v34 = vadd.f32 %v7473_v62, %v1066_v2  ;;  %v1069_v20 = vadd.f32 %v5584_v26, %v7475_v9  ;;  %v1060_v0 = vpop.f32.mrb[83].mxu0  ;;  %v6302_v2 = vld [vmem:[#allocation7 + $0x100] sm:$0xff]   ;;  %v9205_v26 = vld [vmem:[#allocation22_spill] sm:$0xff] }
 0x206   : > { %v7605_v58 = vadd.f32 %v7463_v13, %v1058_v56  ;;  %v1061_v15 = vadd.f32 %v7465_v1, %v1060_v0  ;;  %v6304_v56 = vld [vmem:[#allocation7 + $0x140] sm:$0xff]   ;;  %v9206_v0 = vld [vmem:[#allocation18_spill] sm:$0xff]  ;;  %5141 = vmatprep.subr.bf16.mxu0 %v6302_v2 }
 0x207   : > { %v7609_v41 = vadd.f32 %v7478_v30, %v1069_v20  ;;  %v9196_v30 = vld [vmem:[#allocation12_spill] sm:$0xff]  ;;  %5693 = vmatprep.subr.bf16.mxu1 %v6304_v56  ;;  %5142 = vmatpush3.bf16.msra.mxu0 %v6303_v8 }
 0x208   : > { %v7612_v50 = vadd.f32 %v7468_v57, %v1061_v15  ;;  %v9197_v57 = vld [vmem:[#allocation14_spill] sm:$0xff]  ;;  %5694 = vmatpush3.bf16.msra.mxu1 %v6304_v56 }
 0x20a   : > { %v5587_v18 = vpop.f32.mrb[84].mxu0 }
 0x20b   : > { %v1082_v27 = vadd.f32 %v5587_v18, %v7491_v17  ;;  %v1073_v32 = vpop.f32.mrb[85].mxu0 }
 0x20c   : > { %v1074_v62 = vadd.f32 %v7481_v44, %v1073_v32  ;;  %v5588_v51 = vpop.f32.mrb[86].mxu0  ;;  %v9199_v44 = vld [vmem:[#allocation19_spill] sm:$0xff] }
 0x20d   : > { %v7617_v9 = vadd.f32 %v7493_v12, %v1082_v27  ;;  %v1085_v13 = vadd.f32 %v5588_v51, %v7495_v39  ;;  %v1076_v42 = vpop.f32.mrb[87].mxu0  ;;  %v9200_v12 = vld [vmem:[#allocation15_spill] sm:$0xff]  ;;  %v9201_v39 = vld [vmem:[#allocation20_spill] sm:$0xff] }
 0x20e   : > { %v7621_v1 = vadd.f32 %v7483_v10, %v1074_v62  ;;  %v1077_v60 = vadd.f32 %v9196_v30, %v1076_v42  ;;  %v9202_v10 = vld [vmem:[#allocation21_spill] sm:$0xff]  ;;  %v9207_v62 = vld [vmem:[#allocation23_spill] sm:$0xff] }
 0x20f   : > { %v7625_v55 = vadd.f32 %v9197_v57, %v1085_v13 }
 0x210   : > { %v7628_v17 = vadd.f32 %v9198_v33, %v1077_v60 }
 0x212   : > { %v5591_v3 = vpop.f32.mrb[88].mxu0 }
 0x213   : > { %v1098_v21 = vadd.f32 %v5591_v3, %v9199_v44  ;;  %v1089_v31 = vpop.f32.mrb[89].mxu0  ;;  %v6305_v3 = vld [vmem:[#allocation7 + $0x148] sm:$0xff]  }
 0x214   : > { %v1090_v59 = vadd.f32 %v9200_v12, %v1089_v31  ;;  %v5592_v48 = vpop.f32.mrb[90].mxu0  ;;  %5695 = vmatprep.subr.bf16.mxu1 %v6305_v3 }
 0x215   : > { %v7633_v36 = vadd.f32 %v9201_v39, %v1098_v21  ;;  %v1101_v35 = vadd.f32 %v5592_v48, %v9202_v10  ;;  %v1092_v49 = vpop.f32.mrb[91].mxu0  ;;  %5696 = vmatpush3.bf16.msra.mxu1 %v6305_v3 }
 0x216   : > { %v7637_v4 = vadd.f32 %v9203_v61, %v1090_v59  ;;  %v1093_v52 = vadd.f32 %v9204_v25, %v1092_v49 }
 0x217   : > { %v7641_v20 = vadd.f32 %v9205_v26, %v1101_v35 }
 0x218   : > { %v7644_v15 = vadd.f32 %v9206_v0, %v1093_v52 }
 0x21a   : > { %v5595_v18 = vpop.f32.mrb[92].mxu0 }
 0x21b   : > { %v1114_v27 = vadd.f32 %v5595_v18, %v7526_v54  ;;  %v1105_v32 = vpop.f32.mrb[93].mxu0  ;;  %v9208_v54 = vld [vmem:[#allocation24_spill] sm:$0xff] }
 0x21c   : > { %v1106_v51 = vadd.f32 %v9207_v62, %v1105_v32  ;;  %v5596_v13 = vpop.f32.mrb[94].mxu0 }
 0x21d   : > { %v7649_v42 = vadd.f32 %v7528_v16, %v1114_v27  ;;  %v1117_v30 = vadd.f32 %v5596_v13, %v7530_v28  ;;  %v1108_v60 = vpop.f32.mrb[95].mxu0 }
 0x21e   : > { %v7653_v57 = vadd.f32 %v7520_v45, %v1106_v51  ;;  %v1109_v33 = vadd.f32 %v7522_v24, %v1108_v60 }
 0x21f   : > { %v7657_v44 = vadd.f32 %v7532_v19, %v1117_v30 }
 0x220   : > { %v7660_v21 = vadd.f32 %v9208_v54, %v1109_v33 }
 0x222   : > { %v5021_v31 = vpop.f32.mrb[96].mxu0 }
 0x223   : > { %v5663_v16 = vpop.f32.mrb[64].mxu1  ;;  %v5022_v12 = vpop.f32.mrb[97].mxu0 }
 0x224   : > { %v5023_v59 = vadd.f32 %v5022_v12, %v5021_v31  ;;  %v1974_v28 = vpop.f32.mrb[65].mxu1  ;;  %v5024_v48 = vpop.f32.mrb[98].mxu0 }
 0x225   : > { %v5664_v39 = vpop.f32.mrb[66].mxu1  ;;  %v5025_v45 = vpop.f32.mrb[99].mxu0 }
 0x226   : > { %v5843_v10 = vadd.f32 %v5023_v59, %v7541_v37  ;;  %v5026_v24 = vadd.f32 %v5025_v45, %v5024_v48  ;;  %v1977_v35 = vpop.f32.mrb[67].mxu1 }
 0x228   : > { %v7663_v49 = vadd.f32 %v5843_v10, %v1974_v28  ;;  %v5851_v19 = vadd.f32 %v5026_v24, %v7548_v22 }
 0x22a   : > { %v7666_v61 = vadd.f32 %v5851_v19, %v1977_v35  ;;  %v5027_v25 = vpop.f32.mrb[100].mxu0 }
 0x22b   : > { %v5667_v52 = vpop.f32.mrb[68].mxu1  ;;  %v5028_v2 = vpop.f32.mrb[101].mxu0 }
 0x22c   : > { %v5029_v8 = vadd.f32 %v5028_v2, %v5027_v25  ;;  %v1990_v56 = vpop.f32.mrb[69].mxu1  ;;  %v5030_v26 = vpop.f32.mrb[102].mxu0 }
 0x22d   : > { %v5668_v0 = vpop.f32.mrb[70].mxu1  ;;  %v5031_v18 = vpop.f32.mrb[103].mxu0 }
 0x22e   : > { %v5839_v27 = vadd.f32 %v5029_v8, %v7537_v43  ;;  %v5032_v32 = vadd.f32 %v5031_v18, %v5030_v26  ;;  %v1993_v37 = vpop.f32.mrb[71].mxu1  ;;  %v6306_v26 = vld [vmem:[#allocation7 + $0x108] sm:$0xff]  }
 0x22f   : > { %5143 = vmatprep.subr.bf16.mxu0 %v6306_v26 }
 0x230   : > { %v7669_v62 = vadd.f32 %v5839_v27, %v5663_v16  ;;  %v5847_v51 = vadd.f32 %v5032_v32, %v7545_v53  ;;  %v6307_v32 = vld [vmem:[#allocation7 + $0xc8] sm:$0xff]  }
 0x231   : > { %5144 = vmatpush3.bf16.msra.mxu0 %v6307_v32 }
 0x232   : > { %v7672_v13 = vadd.f32 %v5847_v51, %v5664_v39  ;;  %v5033_v22 = vpop.f32.mrb[104].mxu0  ;;  %v2173_v51 = vmul.f32 %v7669_v62, %v7669_v62 }
 0x233   : > { %v7674_v30 = vpop.f32.mrb[72].mxu1  ;;  %v5034_v60 = vpop.f32.mrb[105].mxu0 }
 0x234   : > { %v5035_v33 = vadd.f32 %v5034_v60, %v5033_v22  ;;  %v2006_v3 = vpop.f32.mrb[73].mxu1  ;;  %v5036_v54 = vpop.f32.mrb[106].mxu0 }
 0x235   : > { %v7676_v31 = vpop.f32.mrb[74].mxu1  ;;  %v5037_v12 = vpop.f32.mrb[107].mxu0 }
 0x236   : > { %v5859_v43 = vadd.f32 %v5035_v33, %v7557_v29  ;;  %v5038_v59 = vadd.f32 %v5037_v12, %v5036_v54  ;;  %v2009_v28 = vpop.f32.mrb[75].mxu1 }
 0x238   : > { %v7679_v16 = vadd.f32 %v5859_v43, %v1990_v56  ;;  %v5867_v53 = vadd.f32 %v5038_v59, %v7564_v40  ;;  %v2172_v40 = vmul.f32 %v7666_v61, %v7666_v61 }
 0x23a   : > { %9209 = vst [vmem:[#allocation12_spill] sm:$0xff] %v7679_v16  ;;  %v7682_v48 = vadd.f32 %v5867_v53, %v1993_v37  ;;  %v5039_v39 = vpop.f32.mrb[108].mxu0  ;;  %v2171_v37 = vmul.f32 %v7663_v49, %v7663_v49  ;;  %v2175_v26 = vmul.f32 %v7679_v16, %v7679_v16 }
 0x23b   : > { %v7684_v45 = vpop.f32.mrb[76].mxu1  ;;  %v5040_v10 = vpop.f32.mrb[109].mxu0 }
 0x23c   : > { %v5041_v24 = vadd.f32 %v5040_v10, %v5039_v39  ;;  %v7686_v35 = vpop.f32.mrb[77].mxu1  ;;  %v5042_v19 = vpop.f32.mrb[110].mxu0  ;;  %v2203_v33 = vadd.f32 %v2172_v40, %v2171_v37  ;;  %v6308_v39 = vld [vmem:[#allocation7 + $0x150] sm:$0xff]  }
 0x23d   : > { %v7688_v25 = vpop.f32.mrb[78].mxu1  ;;  %v5043_v2 = vpop.f32.mrb[111].mxu0  ;;  %v6311_v10 = vld [vmem:[#allocation7 + $0xd0] sm:$0xff]   ;;  %5697 = vmatprep.subr.bf16.mxu1 %v6308_v39 }
 0x23e   : > { %v5855_v29 = vadd.f32 %v5041_v24, %v7553_v7  ;;  %v5044_v8 = vadd.f32 %v5043_v2, %v5042_v19  ;;  %v7691_v56 = vpop.f32.mrb[79].mxu1  ;;  %v2133_v7 = vadd.f32 %v7666_v61, %v7663_v49  ;;  %v2204_v24 = vadd.f32 %v2203_v33, %v2173_v51  ;;  %5698 = vmatpush3.bf16.msra.mxu1 %v6308_v39 }
 0x240   : > { %v7695_v18 = vadd.f32 %v5855_v29, %v5667_v52  ;;  %v5863_v27 = vadd.f32 %v5044_v8, %v7561_v47  ;;  %v6310_v47 = vld [vmem:[#allocation7 + $0x110] sm:$0xff]   ;;  %v2134_v12 = vadd.f32 %v7669_v62, %v2133_v7  ;;  %v6309_v7 = vld [vmem:[#allocation7 + $0x158] sm:$0xff]  }
 0x241   : > { %5145 = vmatprep.subr.bf16.mxu0 %v6310_v47  ;;  %5699 = vmatprep.subr.bf16.mxu1 %v6309_v7 }
 0x242   : > { %v7704_v22 = vadd.f32 %v5863_v27, %v5668_v0  ;;  %v5045_v60 = vpop.f32.mrb[112].mxu0  ;;  %v2174_v0 = vmul.f32 %v7672_v13, %v7672_v13  ;;  %5146 = vmatpush3.bf16.msra.mxu0 %v6311_v10  ;;  %v6314_v27 = vld [vmem:[#allocation7 + $0x118] sm:$0xff]   ;;  %v2135_v32 = vadd.f32 %v7672_v13, %v2134_v12  ;;  %5700 = vmatpush3.bf16.msra.mxu1 %v6309_v7 }
 0x243   : > { %v7706_v52 = vpop.f32.mrb[80].mxu1  ;;  %v5046_v54 = vpop.f32.mrb[113].mxu0  ;;  %5147 = vmatprep.subr.bf16.mxu0 %v6314_v27 }
 0x244   : > { %v5047_v43 = vadd.f32 %v5046_v54, %v5045_v60  ;;  %v7709_v59 = vpop.f32.mrb[81].mxu1  ;;  %v5048_v53 = vpop.f32.mrb[114].mxu0  ;;  %v6315_v60 = vld [vmem:[#allocation7 + $0xd8] sm:$0xff]   ;;  %v2205_v33 = vadd.f32 %v2204_v24, %v2174_v0  ;;  %v6312_v0 = vld [vmem:[#allocation7 + $0x160] sm:$0xff]  }
 0x245   : > { %v7713_v19 = vpop.f32.mrb[82].mxu1  ;;  %v5049_v2 = vpop.f32.mrb[115].mxu0  ;;  %5701 = vmatprep.subr.bf16.mxu1 %v6312_v0 }
 0x246   : > { %v5875_v29 = vadd.f32 %v5047_v43, %v7573_v11  ;;  %v5050_v8 = vadd.f32 %v5049_v2, %v5048_v53  ;;  %v7716_v40 = vpop.f32.mrb[83].mxu1  ;;  %v2136_v11 = vadd.f32 %v7679_v16, %v2135_v32  ;;  %5148 = vmatpush3.bf16.msra.mxu0 %v6315_v60  ;;  %v2206_v43 = vadd.f32 %v2205_v33, %v2175_v26  ;;  %v6317_v2 = vld [vmem:[#allocation7 + $0xe0] sm:$0xff]   ;;  %v6319_v60 = vld [vmem:[#allocation7 + $0x128] sm:$0xff]  }
 0x247   : > { %v2176_v53 = vmul.f32 %v7682_v48, %v7682_v48  ;;  %5702 = vmatpush3.bf16.msra.mxu1 %v6312_v0  ;;  %v6320_v16 = vld [vmem:[#allocation7 + $0xe8] sm:$0xff]  }
 0x248   : > { %v7721_v37 = vadd.f32 %v5875_v29, %v2006_v3  ;;  %v5883_v51 = vadd.f32 %v5050_v8, %v7580_v63  ;;  %v6316_v63 = vld [vmem:[#allocation7 + $0x120] sm:$0xff]   ;;  %v2137_v26 = vadd.f32 %v7682_v48, %v2136_v11 }
 0x249   : > { %5149 = vmatprep.subr.bf16.mxu0 %v6316_v63  ;;  %v2207_v7 = vadd.f32 %v2206_v43, %v2176_v53  ;;  %v6313_v63 = vld [vmem:[#allocation7 + $0x168] sm:$0xff]  }
 0x24a   : > { %v7725_v54 = vadd.f32 %v5883_v51, %v2009_v28  ;;  %v5051_v47 = vpop.f32.mrb[116].mxu0  ;;  %v2177_v28 = vmul.f32 %v7695_v18, %v7695_v18  ;;  %5150 = vmatpush3.bf16.msra.mxu0 %v6317_v2  ;;  %v2138_v33 = vadd.f32 %v7695_v18, %v2137_v26  ;;  %5703 = vmatprep.subr.bf16.mxu1 %v6313_v63  ;;  %v6318_v26 = vld [vmem:[#allocation7 + $0x170] sm:$0xff]  }
 0x24b   : > { %v7729_v12 = vpop.f32.mrb[84].mxu1  ;;  %v5052_v3 = vpop.f32.mrb[117].mxu0  ;;  %5151 = vmatprep.subr.bf16.mxu0 %v6319_v60  ;;  %5704 = vmatpush3.bf16.msra.mxu1 %v6313_v63  ;;  %v2179_v0 = vmul.f32 %v7721_v37, %v7721_v37  ;;  %v6324_v63 = vld [vmem:[#allocation7 + $0x138] sm:$0xff]  }
 0x24c   : > { %9210 = vst [vmem:[#allocation14_spill] sm:$0xff] %v7725_v54  ;;  %v5053_v39 = vadd.f32 %v5052_v3, %v5051_v47  ;;  %v7731_v10 = vpop.f32.mrb[85].mxu1  ;;  %v5054_v24 = vpop.f32.mrb[118].mxu0  ;;  %v2208_v11 = vadd.f32 %v2207_v7, %v2177_v28  ;;  %5705 = vmatprep.subr.bf16.mxu1 %v6318_v26 }
 0x24d   : > { %v7735_v29 = vpop.f32.mrb[86].mxu1  ;;  %v5055_v8 = vpop.f32.mrb[119].mxu0 }
 0x24e   : > { %v5871_v27 = vadd.f32 %v5053_v39, %v7569_v46  ;;  %v5056_v32 = vadd.f32 %v5055_v8, %v5054_v24  ;;  %v7739_v51 = vpop.f32.mrb[87].mxu1  ;;  %v2178_v46 = vmul.f32 %v7704_v22, %v7704_v22  ;;  %5152 = vmatpush3.bf16.msra.mxu0 %v6320_v16 }
 0x24f   : > { %5706 = vmatpush3.bf16.msra.mxu1 %v6318_v26 }
 0x250   : > { %v7743_v47 = vadd.f32 %v5871_v27, %v7674_v30  ;;  %v5879_v3 = vadd.f32 %v5056_v32, %v7577_v23  ;;  %v6321_v30 = vld [vmem:[#allocation7 + $0x130] sm:$0xff]   ;;  %v2139_v23 = vadd.f32 %v7704_v22, %v2138_v33  ;;  %v2209_v27 = vadd.f32 %v2208_v11, %v2178_v46 }
 0x251   : > { %5153 = vmatprep.subr.bf16.mxu0 %v6321_v30  ;;  %v6323_v30 = vld [vmem:[#allocation7 + $0x178] sm:$0xff]  }
 0x252   : > { %v7749_v39 = vadd.f32 %v5879_v3, %v7676_v31  ;;  %v5057_v43 = vpop.f32.mrb[120].mxu0  ;;  %v6322_v31 = vld [vmem:[#allocation7 + $0xf0] sm:$0xff]   ;;  %v2140_v7 = vadd.f32 %v7721_v37, %v2139_v23  ;;  %v6325_v23 = vld [vmem:[#allocation7 + $0xf8] sm:$0xff]   ;;  %5707 = vmatprep.subr.bf16.mxu1 %v6323_v30 }
 0x253   : > { %v7751_v53 = vpop.f32.mrb[88].mxu1  ;;  %v5058_v24 = vpop.f32.mrb[121].mxu0  ;;  %5154 = vmatpush3.bf16.msra.mxu0 %v6322_v31  ;;  %5708 = vmatpush3.bf16.msra.mxu1 %v6323_v30  ;;  %v7788_v30 = vld [vmem:[#allocation7 + $0x80] sm:$0xff]  }
 0x254   : > { %9211 = vst [vmem:[#allocation13_spill] sm:$0xff] %v7749_v39  ;;  %v5059_v2 = vadd.f32 %v5058_v24, %v5057_v43  ;;  %v7756_v28 = vpop.f32.mrb[89].mxu1  ;;  %v5060_v8 = vpop.f32.mrb[122].mxu0  ;;  %v2210_v43 = vadd.f32 %v2209_v27, %v2179_v0  ;;  %v2180_v24 = vmul.f32 %v7725_v54, %v7725_v54  ;;  %5155 = vmatprep.subr.bf16.mxu0 %v6324_v63 }
 0x255   : > { %v7758_v32 = vpop.f32.mrb[90].mxu1  ;;  %v5061_v16 = vpop.f32.mrb[123].mxu0  ;;  %5741 = vmatprep.subr.bf16.mxu1 %v7788_v30 }
 0x256   : > { %v5891_v60 = vadd.f32 %v5059_v2, %v7589_v38  ;;  %v5062_v3 = vadd.f32 %v5061_v16, %v5060_v8  ;;  %v7762_v33 = vpop.f32.mrb[91].mxu1  ;;  %v2141_v38 = vadd.f32 %v7725_v54, %v2140_v7  ;;  %v2181_v2 = vmul.f32 %v7743_v47, %v7743_v47 }
 0x257   : > { %5156 = vmatpush3.bf16.msra.mxu0 %v6325_v23  ;;  %v2211_v31 = vadd.f32 %v2210_v43, %v2180_v24 }
 0x258   : > { %v7767_v11 = vadd.f32 %v5891_v60, %v7686_v35  ;;  %v5899_v46 = vadd.f32 %v5062_v3, %v7596_v6  ;;  %v2142_v6 = vadd.f32 %v7743_v47, %v2141_v38 }
 0x259   : > { %v2212_v63 = vadd.f32 %v2211_v31, %v2181_v2 }
 0x25a   : > { %v7774_v8 = vadd.f32 %v5899_v46, %v7691_v56  ;;  %v5063_v0 = vpop.f32.mrb[124].mxu0  ;;  %v2182_v56 = vmul.f32 %v7749_v39, %v7749_v39  ;;  %v2143_v43 = vadd.f32 %v7749_v39, %v2142_v6  ;;  %v2183_v24 = vmul.f32 %v7767_v11, %v7767_v11 }
 0x25b   : > { %v7776_v26 = vpop.f32.mrb[92].mxu1  ;;  %v5064_v35 = vpop.f32.mrb[125].mxu0 }
 0x25c   : > { %v5065_v27 = vadd.f32 %v5064_v35, %v5063_v0  ;;  %v7779_v16 = vpop.f32.mrb[93].mxu1  ;;  %v5066_v7 = vpop.f32.mrb[126].mxu0  ;;  %v2213_v0 = vadd.f32 %v2212_v63, %v2182_v56  ;;  %v2184_v6 = vmul.f32 %v7774_v8, %v7774_v8 }
 0x25d   : > { %v7781_v60 = vpop.f32.mrb[94].mxu1  ;;  %v5067_v3 = vpop.f32.mrb[127].mxu0 }
 0x25e   : > { %v5887_v46 = vadd.f32 %v5065_v27, %v7585_v5  ;;  %v5068_v23 = vadd.f32 %v5067_v3, %v5066_v7  ;;  %v7786_v54 = vpop.f32.mrb[95].mxu1  ;;  %v2144_v5 = vadd.f32 %v7767_v11, %v2143_v43  ;;  %v2214_v7 = vadd.f32 %v2213_v0, %v2183_v24 }
 0x260   : > { %v7794_v38 = vadd.f32 %v5887_v46, %v7684_v45  ;;  %v5895_v2 = vadd.f32 %v5068_v23, %v7593_v14  ;;  %v2145_v46 = vadd.f32 %v7774_v8, %v2144_v5  ;;  %v2215_v23 = vadd.f32 %v2214_v7, %v2184_v6 }
 0x262   : > { %v7800_v35 = vadd.f32 %v5895_v2, %v7688_v25  ;;  %v5069_v31 = vpop.f32.mrb[128].mxu0  ;;  %v2185_v14 = vmul.f32 %v7794_v38, %v7794_v38  ;;  %v2146_v25 = vadd.f32 %v7794_v38, %v2145_v46 }
 0x263   : > { %v5070_v27 = vpop.f32.mrb[129].mxu0 }
 0x264   : > { %v5071_v3 = vadd.f32 %v5070_v27, %v5069_v31  ;;  %v5072_v39 = vpop.f32.mrb[130].mxu0  ;;  %v2216_v2 = vadd.f32 %v2215_v23, %v2185_v14  ;;  %v2186_v0 = vmul.f32 %v7800_v35, %v7800_v35 }
 0x265   : > { %v5073_v45 = vpop.f32.mrb[131].mxu0 }
 0x266   : > { %v5907_v63 = vadd.f32 %v5071_v3, %v7605_v58  ;;  %v5074_v56 = vadd.f32 %v5073_v45, %v5072_v39  ;;  %v2147_v58 = vadd.f32 %v7800_v35, %v2146_v25  ;;  %v2217_v3 = vadd.f32 %v2216_v2, %v2186_v0 }
 0x268   : > { %v7810_v43 = vadd.f32 %v5907_v63, %v7709_v59  ;;  %v5915_v24 = vadd.f32 %v5074_v56, %v7612_v50 }
 0x26a   : > { %v7816_v5 = vadd.f32 %v5915_v24, %v7716_v40  ;;  %v5075_v31 = vpop.f32.mrb[132].mxu0  ;;  %v2187_v39 = vmul.f32 %v7810_v43, %v7810_v43  ;;  %v2148_v50 = vadd.f32 %v7810_v43, %v2147_v58 }
 0x26b   : > { %v5076_v27 = vpop.f32.mrb[133].mxu0 }
 0x26c   : > { %v5077_v7 = vadd.f32 %v5076_v27, %v5075_v31  ;;  %v5078_v6 = vpop.f32.mrb[134].mxu0  ;;  %v2218_v14 = vadd.f32 %v2217_v3, %v2187_v39  ;;  %v2188_v40 = vmul.f32 %v7816_v5, %v7816_v5  ;;  %v2149_v23 = vadd.f32 %v7816_v5, %v2148_v50 }
 0x26d   : > { %v5079_v59 = vpop.f32.mrb[135].mxu0 }
 0x26e   : > { %v5903_v45 = vadd.f32 %v5077_v7, %v7601_v34  ;;  %v5080_v46 = vadd.f32 %v5079_v59, %v5078_v6  ;;  %v2219_v0 = vadd.f32 %v2218_v14, %v2188_v40 }
 0x270   : > { %v7826_v63 = vadd.f32 %v5903_v45, %v7706_v52  ;;  %v5911_v56 = vadd.f32 %v5080_v46, %v7609_v41 }
 0x272   : > { %v2189_v25 = vmul.f32 %v7826_v63, %v7826_v63  ;;  %v7833_v24 = vadd.f32 %v5911_v56, %v7713_v19  ;;  %v5081_v2 = vpop.f32.mrb[136].mxu0  ;;  %v2150_v31 = vadd.f32 %v7826_v63, %v2149_v23 }
 0x273   : > { %v5082_v34 = vpop.f32.mrb[137].mxu0 }
 0x274   : > { %v5083_v27 = vadd.f32 %v5082_v34, %v5081_v2  ;;  %v5084_v58 = vpop.f32.mrb[138].mxu0  ;;  %v2220_v52 = vadd.f32 %v2219_v0, %v2189_v25  ;;  %v2190_v41 = vmul.f32 %v7833_v24, %v7833_v24  ;;  %v2151_v59 = vadd.f32 %v7833_v24, %v2150_v31 }
 0x275   : > { %v5085_v39 = vpop.f32.mrb[139].mxu0 }
 0x276   : > { %v5923_v7 = vadd.f32 %v5083_v27, %v7621_v1  ;;  %v5086_v6 = vadd.f32 %v5085_v39, %v5084_v58  ;;  %v2221_v50 = vadd.f32 %v2220_v52, %v2190_v41 }
 0x278   : > { %v7841_v19 = vadd.f32 %v5923_v7, %v7731_v10  ;;  %v5931_v3 = vadd.f32 %v5086_v6, %v7628_v17 }
 0x27a   : > { %v2152_v45 = vadd.f32 %v7841_v19, %v2151_v59  ;;  %v2191_v46 = vmul.f32 %v7841_v19, %v7841_v19  ;;  %v7848_v14 = vadd.f32 %v5931_v3, %v7739_v51  ;;  %v5087_v40 = vpop.f32.mrb[140].mxu0 }
 0x27b   : > { %v5088_v56 = vpop.f32.mrb[141].mxu0 }
 0x27c   : > { %v2222_v1 = vadd.f32 %v2221_v50, %v2191_v46  ;;  %v2153_v23 = vadd.f32 %v7848_v14, %v2152_v45  ;;  %v2192_v10 = vmul.f32 %v7848_v14, %v7848_v14  ;;  %v5089_v25 = vadd.f32 %v5088_v56, %v5087_v40  ;;  %v5090_v2 = vpop.f32.mrb[142].mxu0 }
 0x27d   : > { %v5091_v17 = vpop.f32.mrb[143].mxu0 }
 0x27e   : > { %v2223_v34 = vadd.f32 %v2222_v1, %v2192_v10  ;;  %v5919_v0 = vadd.f32 %v5089_v25, %v7617_v9  ;;  %v5092_v31 = vadd.f32 %v5091_v17, %v5090_v2 }
 0x280   : > { %v7855_v27 = vadd.f32 %v5919_v0, %v7729_v12  ;;  %v5927_v51 = vadd.f32 %v5092_v31, %v7625_v55 }
 0x282   : > { %v2154_v58 = vadd.f32 %v7855_v27, %v2153_v23  ;;  %v2193_v39 = vmul.f32 %v7855_v27, %v7855_v27  ;;  %v7862_v52 = vadd.f32 %v5927_v51, %v7735_v29  ;;  %v5093_v41 = vpop.f32.mrb[144].mxu0 }
 0x283   : > { %v5094_v7 = vpop.f32.mrb[145].mxu0 }
 0x284   : > { %v2224_v6 = vadd.f32 %v2223_v34, %v2193_v39  ;;  %v2155_v59 = vadd.f32 %v7862_v52, %v2154_v58  ;;  %v2194_v9 = vmul.f32 %v7862_v52, %v7862_v52  ;;  %v5095_v12 = vadd.f32 %v5094_v7, %v5093_v41  ;;  %v5096_v3 = vpop.f32.mrb[146].mxu0 }
 0x285   : > { %v5097_v50 = vpop.f32.mrb[147].mxu0 }
 0x286   : > { %v2225_v55 = vadd.f32 %v2224_v6, %v2194_v9  ;;  %v5939_v45 = vadd.f32 %v5095_v12, %v7637_v4  ;;  %v5098_v46 = vadd.f32 %v5097_v50, %v5096_v3 }
 0x288   : > { %v7869_v40 = vadd.f32 %v5939_v45, %v7756_v28  ;;  %v5947_v29 = vadd.f32 %v5098_v46, %v7644_v15  ;;  %v6334_v46 = vld [vmem:[#allocation7 + $0x40] sm:$0xff]  }
 0x289   : > { %5277 = vmatprep.subr.bf16.mxu0 %v6334_v46 }
 0x28a   : > { %v2156_v56 = vadd.f32 %v7869_v40, %v2155_v59  ;;  %v2195_v1 = vmul.f32 %v7869_v40, %v7869_v40  ;;  %v7876_v23 = vadd.f32 %v5947_v29, %v7762_v33  ;;  %v5099_v10 = vpop.f32.mrb[148].mxu0 }
 0x28b   : > { %v5100_v25 = vpop.f32.mrb[149].mxu0 }
 0x28c   : > { %v2226_v2 = vadd.f32 %v2225_v55, %v2195_v1  ;;  %v2157_v17 = vadd.f32 %v7876_v23, %v2156_v56  ;;  %v2196_v4 = vmul.f32 %v7876_v23, %v7876_v23  ;;  %v5101_v28 = vadd.f32 %v5100_v25, %v5099_v10  ;;  %v5102_v34 = vpop.f32.mrb[150].mxu0 }
 0x28d   : > { %v5103_v0 = vpop.f32.mrb[151].mxu0 }
 0x28e   : > { %v2227_v15 = vadd.f32 %v2226_v2, %v2196_v4  ;;  %v5935_v31 = vadd.f32 %v5101_v28, %v7633_v36  ;;  %v5104_v51 = vadd.f32 %v5103_v0, %v5102_v34 }
 0x290   : > { %v7883_v58 = vadd.f32 %v5935_v31, %v7751_v53  ;;  %v5943_v33 = vadd.f32 %v5104_v51, %v7641_v20 }
 0x292   : > { %v2158_v39 = vadd.f32 %v7883_v58, %v2157_v17  ;;  %v2197_v41 = vmul.f32 %v7883_v58, %v7883_v58  ;;  %v7890_v7 = vadd.f32 %v5943_v33, %v7758_v32  ;;  %v5105_v6 = vpop.f32.mrb[152].mxu0 }
 0x293   : > { %v5106_v59 = vpop.f32.mrb[153].mxu0 }
 0x294   : > { %v2228_v9 = vadd.f32 %v2227_v15, %v2197_v41  ;;  %v2159_v12 = vadd.f32 %v7890_v7, %v2158_v39  ;;  %v2198_v36 = vmul.f32 %v7890_v7, %v7890_v7  ;;  %v5107_v53 = vadd.f32 %v5106_v59, %v5105_v6  ;;  %v5108_v3 = vpop.f32.mrb[154].mxu0 }
 0x295   : > { %v5109_v50 = vpop.f32.mrb[155].mxu0 }
 0x296   : > { %v2229_v20 = vadd.f32 %v2228_v9, %v2198_v36  ;;  %v5955_v55 = vadd.f32 %v5107_v53, %v7653_v57  ;;  %v5110_v45 = vadd.f32 %v5109_v50, %v5108_v3 }
 0x298   : > { %v7897_v29 = vadd.f32 %v5955_v55, %v7779_v16  ;;  %v5963_v32 = vadd.f32 %v5110_v45, %v7660_v21 }
 0x29a   : > { %v2160_v56 = vadd.f32 %v7897_v29, %v2159_v12  ;;  %v2199_v1 = vmul.f32 %v7897_v29, %v7897_v29  ;;  %v7904_v10 = vadd.f32 %v5963_v32, %v7786_v54  ;;  %v5111_v25 = vpop.f32.mrb[156].mxu0 }
 0x29b   : > { %v5112_v2 = vpop.f32.mrb[157].mxu0 }
 0x29c   : > { %v2230_v17 = vadd.f32 %v2229_v20, %v2199_v1  ;;  %v2161_v57 = vadd.f32 %v7904_v10, %v2160_v56  ;;  %v2200_v16 = vmul.f32 %v7904_v10, %v7904_v10  ;;  %v5113_v4 = vadd.f32 %v5112_v2, %v5111_v25  ;;  %v5114_v28 = vpop.f32.mrb[158].mxu0 }
 0x29d   : > { %v5115_v21 = vpop.f32.mrb[159].mxu0 }
 0x29e   : > { %v2231_v34 = vadd.f32 %v2230_v17, %v2200_v16  ;;  %v5951_v0 = vadd.f32 %v5113_v4, %v7649_v42  ;;  %v5116_v15 = vadd.f32 %v5115_v21, %v5114_v28 }
 0x2a0   : > { %v7911_v31 = vadd.f32 %v5951_v0, %v7776_v26  ;;  %v5959_v54 = vadd.f32 %v5116_v15, %v7657_v44 }
 0x2a2   : > { %v2162_v51 = vadd.f32 %v7911_v31, %v2161_v57  ;;  %v2201_v33 = vmul.f32 %v7911_v31, %v7911_v31  ;;  %v5960_v39 = vadd.f32 %v5959_v54, %v7781_v60 }
 0x2a4   : > { %v2232_v41 = vadd.f32 %v2231_v34, %v2201_v33  ;;  %v2163_v6 = vadd.f32 %v5960_v39, %v2162_v51  ;;  %v2202_v59 = vmul.f32 %v5960_v39, %v5960_v39  ;;  %v9214_v51 = vld [vmem:[#allocation13_spill] sm:$0xff] }
 0x2a6   : > { %v2164_v9 = vrot.slane %v2163_v6, 4  ;;  %v2233_v12 = vadd.f32 %v2232_v41, %v2202_v59 }
 0x2a8   : > { %v2165_v36 = vadd.f32 %v2164_v9, %v2163_v6  ;;  %v2234_v42 = vrot.slane %v2233_v12, 4 }
 0x2aa   : > { %v2166_v53 = vrot.slane %v2165_v36, 2  ;;  %v2235_v3 = vadd.f32 %v2234_v42, %v2233_v12 }
 0x2ac   : > { %v2167_v26 = vadd.f32 %v2166_v53, %v2165_v36  ;;  %v2236_v50 = vrot.slane %v2235_v3, 2 }
 0x2ae   : > { %v2168_v20 = vrot.slane %v2167_v26, 1  ;;  %v2237_v44 = vadd.f32 %v2236_v50, %v2235_v3 }
 0x2b0   : > { %v2169_v55 = vadd.f32 %v2168_v20, %v2167_v26  ;;  %v2238_v45 = vrot.slane %v2237_v44, 1 }
 0x2b2   : > { %v7918_v46 = vmul.f32 0.00390625, %v2169_v55  ;;  %v2239_v32 = vadd.f32 %v2238_v45, %v2237_v44 }
 0x2b4   : > { %v2240_v56 = vmul.f32 0.00390625, %v2239_v32  ;;  %v2241_v60 = vmul.f32 %v7918_v46, %v7918_v46  ;;  %v2275_v1 = vsub.f32 %v5960_v39, %v7918_v46  ;;  %v2264_v57 = vsub.f32 %v7841_v19, %v7918_v46 }
 0x2b5   : > { %v2265_v16 = vsub.f32 %v7848_v14, %v7918_v46  ;;  %v2266_v4 = vsub.f32 %v7855_v27, %v7918_v46  ;;  %v2267_v28 = vsub.f32 %v7862_v52, %v7918_v46  ;;  %v2268_v21 = vsub.f32 %v7869_v40, %v7918_v46 }
 0x2b6   : > { %v2242_v25 = vsub.f32 %v2240_v56, %v2241_v60  ;;  %v2269_v34 = vsub.f32 %v7876_v23, %v7918_v46  ;;  %v2270_v0 = vsub.f32 %v7883_v58, %v7918_v46  ;;  %v2271_v19 = vsub.f32 %v7890_v7, %v7918_v46 }
 0x2b7   : > { %v2272_v14 = vsub.f32 %v7897_v29, %v7918_v46  ;;  %v2273_v27 = vsub.f32 %v7904_v10, %v7918_v46  ;;  %v2274_v52 = vsub.f32 %v7911_v31, %v7918_v46  ;;  %v2244_v40 = vsub.f32 %v7663_v49, %v7918_v46  ;;  %v9212_v29 = vld [vmem:[#allocation12_spill] sm:$0xff] }
 0x2b8   : > { %v2243_v2 = vmax.f32 %v2242_v25, 0.0  ;;  %v2245_v23 = vsub.f32 %v7666_v61, %v7918_v46  ;;  %v2246_v58 = vsub.f32 %v7669_v62, %v7918_v46  ;;  %v2247_v7 = vsub.f32 %v7672_v13, %v7918_v46  ;;  %v9213_v62 = vld [vmem:[#allocation14_spill] sm:$0xff] }
 0x2b9   : > { %v2248_v15 = vsub.f32 %v9212_v29, %v7918_v46  ;;  %v2249_v10 = vsub.f32 %v7682_v48, %v7918_v46  ;;  %v2250_v31 = vsub.f32 %v7695_v18, %v7918_v46  ;;  %v2251_v49 = vsub.f32 %v7704_v22, %v7918_v46 }
 0x2ba   : > { %v2276_v17 = vadd.f32 1e-05, %v2243_v2  ;;  %v2252_v61 = vsub.f32 %v7721_v37, %v7918_v46  ;;  %v2253_v54 = vsub.f32 %v9213_v62, %v7918_v46  ;;  %v2254_v13 = vsub.f32 %v7743_v47, %v7918_v46 }
 0x2bb   : > { %v2255_v33 = vsub.f32 %v9214_v51, %v7918_v46  ;;  %v2256_v48 = vsub.f32 %v7767_v11, %v7918_v46  ;;  %v2257_v18 = vsub.f32 %v7774_v8, %v7918_v46  ;;  %v2258_v22 = vsub.f32 %v7794_v38, %v7918_v46 }
 0x2bc   : > { %6374 = vrsqrt.f32 %v2276_v17  ;;  %v2259_v37 = vsub.f32 %v7800_v35, %v7918_v46  ;;  %v2260_v41 = vsub.f32 %v7810_v43, %v7918_v46  ;;  %v2261_v47 = vsub.f32 %v7816_v5, %v7918_v46 }
 0x2bd   : > { %v2262_v6 = vsub.f32 %v7826_v63, %v7918_v46  ;;  %v2263_v11 = vsub.f32 %v7833_v24, %v7918_v46 }
 0x2c6   : > { %v6375_v39 = vpop.eup %6374 }
 0x2c7   : > { %v2309_v8 = vmul.f32 %v6375_v39, %v2275_v1  ;;  %v2278_v59 = vmul.f32 %v6375_v39, %v2244_v40  ;;  %v2279_v9 = vmul.f32 %v6375_v39, %v2245_v23  ;;  %v2280_v38 = vmul.f32 %v6375_v39, %v2246_v58 }
 0x2c8   : > { %v2281_v12 = vmul.f32 %v6375_v39, %v2247_v7  ;;  %v2282_v36 = vmul.f32 %v6375_v39, %v2248_v15  ;;  %v2283_v35 = vmul.f32 %v6375_v39, %v2249_v10  ;;  %v2284_v42 = vmul.f32 %v6375_v39, %v2250_v31 }
 0x2c9   : > { %v7985_v53 = vmax.f32 %v2309_v8, 0.0  ;;  %v2285_v43 = vmul.f32 %v6375_v39, %v2251_v49  ;;  %v2286_v3 = vmul.f32 %v6375_v39, %v2252_v61  ;;  %v2287_v26 = vmul.f32 %v6375_v39, %v2253_v54 }
 0x2ca   : > { %v2288_v5 = vmul.f32 %v6375_v39, %v2254_v13  ;;  %v2289_v50 = vmul.f32 %v6375_v39, %v2255_v33  ;;  %v2290_v20 = vmul.f32 %v6375_v39, %v2256_v48  ;;  %v2291_v63 = vmul.f32 %v6375_v39, %v2257_v18 }
 0x2cb   : > { %v2292_v44 = vmul.f32 %v6375_v39, %v2258_v22  ;;  %v2293_v55 = vmul.f32 %v6375_v39, %v2259_v37  ;;  %v2294_v24 = vmul.f32 %v6375_v39, %v2260_v41  ;;  %v2295_v45 = vmul.f32 %v6375_v39, %v2261_v47 }
 0x2cc   : > { %v2296_v46 = vmul.f32 %v6375_v39, %v2262_v6  ;;  %v2297_v32 = vmul.f32 %v6375_v39, %v2263_v11  ;;  %v2298_v56 = vmul.f32 %v6375_v39, %v2264_v57  ;;  %v2299_v60 = vmul.f32 %v6375_v39, %v2265_v16 }
 0x2cd   : > { %v2300_v1 = vmul.f32 %v6375_v39, %v2266_v4  ;;  %v2301_v25 = vmul.f32 %v6375_v39, %v2267_v28  ;;  %v2302_v2 = vmul.f32 %v6375_v39, %v2268_v21  ;;  %v2303_v17 = vmul.f32 %v6375_v39, %v2269_v34 }
 0x2ce   : > { %v2304_v40 = vmul.f32 %v6375_v39, %v2270_v0  ;;  %v2305_v23 = vmul.f32 %v6375_v39, %v2271_v19  ;;  %v2306_v58 = vmul.f32 %v6375_v39, %v2272_v14  ;;  %v2307_v7 = vmul.f32 %v6375_v39, %v2273_v27 }
 0x2cf   : > { %v2308_v29 = vmul.f32 %v6375_v39, %v2274_v52  ;;  %v2310_v15 = vmax.f32 %v2278_v59, 0.0  ;;  %v2311_v10 = vmax.f32 %v2279_v9, 0.0  ;;  %v7987_v31 = vmax.f32 %v2280_v38, 0.0 }
 0x2d0   : > { %v7989_v49 = vmax.f32 %v2281_v12, 0.0  ;;  %v7991_v61 = vmax.f32 %v2282_v36, 0.0  ;;  %v7993_v62 = vmax.f32 %v2283_v35, 0.0  ;;  %v7995_v57 = vmax.f32 %v2284_v42, 0.0 }
 0x2d1   : > { %v7997_v16 = vmax.f32 %v2285_v43, 0.0  ;;  %v7999_v4 = vmax.f32 %v2286_v3, 0.0  ;;  %v8001_v28 = vmax.f32 %v2287_v26, 0.0  ;;  %v8003_v21 = vmax.f32 %v2288_v5, 0.0 }
 0x2d2   : > { %v8005_v34 = vmax.f32 %v2289_v50, 0.0  ;;  %v8007_v0 = vmax.f32 %v2290_v20, 0.0  ;;  %v8009_v19 = vmax.f32 %v2291_v63, 0.0  ;;  %v8011_v14 = vmax.f32 %v2292_v44, 0.0 }
 0x2d3   : > { %v8013_v27 = vmax.f32 %v2293_v55, 0.0  ;;  %v8015_v52 = vmax.f32 %v2294_v24, 0.0  ;;  %v8017_v54 = vmax.f32 %v2295_v45, 0.0  ;;  %v8019_v13 = vmax.f32 %v2296_v46, 0.0  ;;  %v6335_v24 = vld [vmem:[#allocation7] sm:$0xff]  }
 0x2d4   : > { %v8021_v51 = vmax.f32 %v2297_v32, 0.0  ;;  %v8023_v33 = vmax.f32 %v2298_v56, 0.0  ;;  %v8025_v48 = vmax.f32 %v2299_v60, 0.0  ;;  %v8027_v18 = vmax.f32 %v2300_v1, 0.0  ;;  %v6340_v60 = vld [vmem:[#allocation7 + $0x48] sm:$0xff]  }
 0x2d5   : > { %v8029_v22 = vmax.f32 %v2301_v25, 0.0  ;;  %v8031_v37 = vmax.f32 %v2302_v2, 0.0  ;;  %v8033_v39 = vmax.f32 %v2303_v17, 0.0  ;;  %v8035_v41 = vmax.f32 %v2304_v40, 0.0  ;;  %v6327_v40 = vld [vmem:[#allocation7 + $0x88] sm:$0xff]  }
 0x2d6   : > { %v8037_v47 = vmax.f32 %v2305_v23, 0.0  ;;  %v8039_v6 = vmax.f32 %v2306_v58, 0.0  ;;  %v8041_v11 = vmax.f32 %v2307_v7, 0.0  ;;  %v8043_v8 = vmax.f32 %v2308_v29, 0.0 }
 0x2d7   : > { %v2358_v59 = vrot.slane %v2310_v15, 1  ;;  %v2359_v9 = vrot.slane %v7987_v31, 1  ;;  %v2406_v38 = vrot.slane %v2310_v15, 7  ;;  %v2407_v12 = vrot.slane %v2311_v10, 7 }
 0x2d8   : > { %v2410_v36 = vrot.slane %v7989_v49, 7  ;;  %v2504_v35 = vrot.slane %v7989_v49, 1  ;;  %v8048_v42 = vpack.c.bf16 %v2311_v10, %v2310_v15  ;;  %v2502_v43 = vrot.slane %v2311_v10, 1 }
 0x2d9   : > { %v2408_v3 = vsel %vm315_vm0, %v2406_v38, %v2407_v12  ;;  %v2486_v26 = vsel %vm315_vm0, %v2358_v59, %v2406_v38  ;;  %v8054_v5 = vpack.c.bf16 %v7989_v49, %v7987_v31  ;;  %v2360_v50 = vrot.slane %v7991_v61, 1 }
 0x2da   : > { %2919 = vmatprep.mubr.bf16.mxu0 %v8048_v42  ;;  %v8058_v20 = vpack.c.bf16 %v2408_v3, %v2486_v26  ;;  %v2503_v63 = vsel %vm412_vm1, %v2358_v59, %v2502_v43  ;;  %v2582_v44 = vsel %vm412_vm1, %v2502_v43, %v2407_v12  ;;  %v2505_v55 = vsel %vm412_vm1, %v2359_v9, %v2504_v35  ;;  %v6328_v3 = vld [vmem:[#allocation7 + $0x90] sm:$0xff]  }
 0x2db   : > { %v8063_v45 = vpack.c.bf16 %v2582_v44, %v2503_v63  ;;  %v2583_v46 = vsel %vm412_vm1, %v2504_v35, %v2410_v36  ;;  %v2413_v32 = vrot.slane %v7993_v62, 7  ;;  %v2506_v56 = vrot.slane %v7993_v62, 1 }
 0x2dc   : > { %9215 = vst [vmem:[#allocation19_spill] sm:$0xff] %v8058_v20  ;;  %2920 = vmatmul.mubr.bf16.vlgmr.msra.gmra.mrb[160].mxu0 %v8058_v20  ;;  %v8069_v1 = vpack.c.bf16 %v2583_v46, %v2505_v55  ;;  %v2409_v25 = vrot.slane %v7987_v31, 7  ;;  %v8074_v2 = vpack.c.bf16 %v7993_v62, %v7991_v61  ;;  %v2361_v17 = vrot.slane %v7995_v57, 1  ;;  %v6341_v62 = vld [vmem:[#allocation7 + $0x8] sm:$0xff]  }
 0x2dd   : > { %5709 = vmatprep.mubr.bf16.mxu1 %v8063_v45  ;;  %2927 = vmatprep.mubr.bf16.mxu0 %v8054_v5  ;;  %v2507_v23 = vsel %vm412_vm1, %v2360_v50, %v2506_v56  ;;  %v2584_v58 = vsel %vm412_vm1, %v2506_v56, %v2413_v32  ;;  %v2416_v7 = vrot.slane %v7997_v16, 7  ;;  %v2508_v29 = vrot.slane %v7997_v16, 1 }
 0x2de   : > { %9216 = vst [vmem:[#allocation15_spill] sm:$0xff] %v8074_v2  ;;  %5710 = vmatmul.mubr.bf16.vlgmr.msra.gmra.mrb[96].mxu1 %v8069_v1  ;;  %v8084_v15 = vpack.c.bf16 %v2584_v58, %v2507_v23  ;;  %v2411_v10 = vsel %vm315_vm0, %v2409_v25, %v2410_v36  ;;  %v2487_v31 = vsel %vm315_vm0, %v2359_v9, %v2409_v25  ;;  %v2362_v49 = vrot.slane %v7999_v4, 1 }
 0x2df   : > { %5278 = vmatpush3.bf16.msra.mxu0 %v6335_v24  ;;  %5742 = vmatpush3.bf16.msra.mxu1 %v7788_v30  ;;  %v8090_v59 = vpack.c.bf16 %v2411_v10, %v2487_v31  ;;  %v2509_v38 = vsel %vm412_vm1, %v2361_v17, %v2508_v29  ;;  %v2585_v12 = vsel %vm412_vm1, %v2508_v29, %v2416_v7  ;;  %v2419_v35 = vrot.slane %v8001_v28, 7  ;;  %v6346_v24 = vld [vmem:[#allocation7 + $0x50] sm:$0xff]   ;;  %v6329_v10 = vld [vmem:[#allocation7 + $0x98] sm:$0xff]  }
 0x2e0   : > { %5279 = vmatprep.subr.bf16.mxu0 %v6340_v60  ;;  %5713 = vmatprep.mubr.bf16.mxu1 %v8084_v15  ;;  %v8098_v9 = vpack.c.bf16 %v2585_v12, %v2509_v38  ;;  %v2510_v36 = vrot.slane %v8001_v28, 1  ;;  %v2412_v30 = vrot.slane %v7991_v61, 7  ;;  %v8104_v43 = vpack.c.bf16 %v7997_v16, %v7995_v57  ;;  %v6347_v31 = vld [vmem:[#allocation7 + $0x10] sm:$0xff]  }
 0x2e1   : > { %5743 = vmatprep.subr.bf16.mxu1 %v6327_v40  ;;  %v2363_v26 = vrot.slane %v8003_v21, 1  ;;  %v2422_v63 = vrot.slane %v8005_v34, 7  ;;  %v2512_v44 = vrot.slane %v8005_v34, 1  ;;  %v9138_v55 = vrot.slane %v8007_v0, 1 }
 0x2e2   : > { %9217 = vst [vmem:[#allocation20_spill] sm:$0xff] %v8104_v43  ;;  %v2511_v46 = vsel %vm412_vm1, %v2362_v49, %v2510_v36  ;;  %v2586_v61 = vsel %vm412_vm1, %v2510_v36, %v2419_v35  ;;  %v2414_v16 = vsel %vm315_vm0, %v2412_v30, %v2413_v32  ;;  %v2488_v56 = vsel %vm315_vm0, %v2360_v50, %v2412_v30  ;;  %v6352_v30 = vld [vmem:[#allocation7 + $0x58] sm:$0xff]  }
 0x2e3   : > { %5280 = vmatpush3.bf16.msra.mxu0 %v6341_v62  ;;  %v8118_v60 = vpack.c.bf16 %v2586_v61, %v2511_v46  ;;  %5744 = vmatpush3.bf16.msra.mxu1 %v6327_v40  ;;  %v8120_v25 = vpack.c.bf16 %v2414_v16, %v2488_v56  ;;  %v2513_v23 = vsel %vm412_vm1, %v2363_v26, %v2512_v44  ;;  %v9142_v50 = vrot.slane %v8009_v19, 7 }
 0x2e4   : > { %v2587_v58 = vsel %vm412_vm1, %v2512_v44, %v2422_v63  ;;  %2928 = vmatmul.mubr.bf16.gmra.mrb[164].mxu0 %v8090_v59  ;;  %5745 = vmatprep.subr.bf16.mxu1 %v6328_v3  ;;  %v2514_v32 = vrot.slane %v8009_v19, 1  ;;  %v2415_v40 = vrot.slane %v7995_v57, 7  ;;  %v8137_v62 = vpack.c.bf16 %v8001_v28, %v7999_v4 }
 0x2e5   : > { %9218 = vst [vmem:[#allocation21_spill] sm:$0xff] %v8120_v25  ;;  %v8129_v29 = vpack.c.bf16 %v2587_v58, %v2513_v23  ;;  %2935 = vmatprep.mubr.bf16.mxu0 %v8074_v2  ;;  %v9134_v38 = vrot.slane %v8011_v14, 1  ;;  %v9135_v12 = vrot.slane %v8013_v27, 7  ;;  %v2516_v36 = vrot.slane %v8013_v27, 1  ;;  %5281 = vmatprep.subr.bf16.mxu0 %v6346_v24 }
 0x2e6   : > { %9219 = vst [vmem:[#allocation16_spill] sm:$0xff] %v8137_v62  ;;  %5714 = vmatmul.mubr.bf16.gmra.mrb[100].mxu1 %v8098_v9  ;;  %v2515_v44 = vsel %vm412_vm1, %v9138_v55, %v2514_v32  ;;  %v2588_v46 = vsel %vm412_vm1, %v2514_v32, %v9142_v50  ;;  %v2417_v61 = vsel %vm315_vm0, %v2415_v40, %v2416_v7  ;;  %v9136_v58 = vrot.slane %v8015_v52, 1 }
 0x2e7   : > { %v2489_v16 = vsel %vm315_vm0, %v2361_v17, %v2415_v40  ;;  %5717 = vmatprep.mubr.bf16.mxu1 %v8118_v60  ;;  %v8154_v24 = vpack.c.bf16 %v2588_v46, %v2515_v44  ;;  %5746 = vmatpush3.bf16.msra.mxu1 %v6328_v3  ;;  %v2517_v23 = vsel %vm412_vm1, %v9134_v38, %v2516_v36  ;;  %v9137_v57 = vrot.slane %v8017_v54, 7  ;;  %v6330_v3 = vld [vmem:[#allocation7 + $0xa0] sm:$0xff]  }
 0x2e8   : > { %v8156_v56 = vpack.c.bf16 %v2417_v61, %v2489_v16  ;;  %v2589_v7 = vsel %vm412_vm1, %v2516_v36, %v9135_v12  ;;  %5747 = vmatprep.subr.bf16.mxu1 %v6329_v10  ;;  %v2518_v17 = vrot.slane %v8017_v54, 1  ;;  %v2418_v32 = vrot.slane %v7999_v4, 7  ;;  %5282 = vmatpush3.bf16.msra.mxu0 %v6347_v31  ;;  %v6353_v36 = vld [vmem:[#allocation7 + $0x18] sm:$0xff]  }
 0x2e9   : > { %v8168_v40 = vpack.c.bf16 %v2589_v7, %v2517_v23  ;;  %v8172_v44 = vpack.c.bf16 %v8005_v34, %v8003_v21  ;;  %v9139_v46 = vrot.slane %v8019_v13, 1  ;;  %v9140_v61 = vrot.slane %v8021_v51, 7  ;;  %5283 = vmatprep.subr.bf16.mxu0 %v6352_v30 }
 0x2ea   : > { %9220 = vst [vmem:[#allocation17_spill] sm:$0xff] %v8156_v56  ;;  %v2519_v16 = vsel %vm412_vm1, %v9136_v58, %v2518_v17  ;;  %v2590_v31 = vsel %vm412_vm1, %v2518_v17, %v9137_v57  ;;  %v2420_v23 = vsel %vm315_vm0, %v2418_v32, %v2419_v35  ;;  %v2490_v7 = vsel %vm315_vm0, %v2362_v49, %v2418_v32  ;;  %v6354_v17 = vld [vmem:[#allocation7 + $0x60] sm:$0xff]  }
 0x2eb   : > { %v8188_v38 = vpack.c.bf16 %v2590_v31, %v2519_v16  ;;  %5748 = vmatpush3.bf16.msra.mxu1 %v6329_v10  ;;  %v8190_v30 = vpack.c.bf16 %v2420_v23, %v2490_v7  ;;  %v2520_v12 = vrot.slane %v8021_v51, 1  ;;  %v9141_v58 = vrot.slane %v8023_v33, 1  ;;  %v6331_v10 = vld [vmem:[#allocation7 + $0xa8] sm:$0xff]   ;;  %v6355_v7 = vld [vmem:[#allocation7 + $0x20] sm:$0xff]  }
 0x2ec   : > { %2936 = vmatmul.mubr.bf16.gmra.mrb[168].mxu0 %v8120_v25  ;;  %5749 = vmatprep.subr.bf16.mxu1 %v6330_v3  ;;  %v9145_v28 = vrot.slane %v8025_v48, 7  ;;  %v2522_v35 = vrot.slane %v8025_v48, 1  ;;  %v2421_v4 = vrot.slane %v8003_v21, 7  ;;  %v8200_v49 = vpack.c.bf16 %v8009_v19, %v8007_v0 }
 0x2ed   : > { %2943 = vmatprep.mubr.bf16.mxu0 %v8104_v43  ;;  %v2521_v32 = vsel %vm412_vm1, %v9139_v46, %v2520_v12  ;;  %v2591_v16 = vsel %vm412_vm1, %v2520_v12, %v9140_v61  ;;  %v9143_v31 = vrot.slane %v8027_v18, 1  ;;  %v9144_v23 = vrot.slane %v8029_v22, 7  ;;  %5284 = vmatpush3.bf16.msra.mxu0 %v6353_v36  ;;  %v6358_v61 = vld [vmem:[#allocation7 + $0x68] sm:$0xff]  }
 0x2ee   : > { %5718 = vmatmul.mubr.bf16.gmra.mrb[104].mxu1 %v8129_v29  ;;  %v8212_v57 = vpack.c.bf16 %v2591_v16, %v2521_v32  ;;  %v2523_v55 = vsel %vm412_vm1, %v9141_v58, %v2522_v35  ;;  %v2592_v46 = vsel %vm412_vm1, %v2522_v35, %v9145_v28  ;;  %v2423_v12 = vsel %vm315_vm0, %v2421_v4, %v2422_v63 }
 0x2ef   : > { %5721 = vmatprep.mubr.bf16.mxu1 %v8154_v24  ;;  %v8224_v36 = vpack.c.bf16 %v2592_v46, %v2523_v55  ;;  %5750 = vmatpush3.bf16.msra.mxu1 %v6330_v3  ;;  %v2491_v32 = vsel %vm315_vm0, %v2363_v26, %v2421_v4  ;;  %v2524_v16 = vrot.slane %v8029_v22, 1  ;;  %v9146_v58 = vrot.slane %v8031_v37, 1  ;;  %v6332_v55 = vld [vmem:[#allocation7 + $0xb0] sm:$0xff]   ;;  %v6359_v4 = vld [vmem:[#allocation7 + $0x28] sm:$0xff]  }
 0x2f0   : > { %v8231_v50 = vpack.c.bf16 %v2423_v12, %v2491_v32  ;;  %5751 = vmatprep.subr.bf16.mxu1 %v6331_v10  ;;  %v9149_v34 = vrot.slane %v8033_v39, 7  ;;  %v2526_v63 = vrot.slane %v8033_v39, 1  ;;  %v2424_v35 = vrot.slane %v8007_v0, 7  ;;  %5285 = vmatprep.subr.bf16.mxu0 %v6354_v17 }
 0x2f1   : > { %v2525_v21 = vsel %vm412_vm1, %v9143_v31, %v2524_v16  ;;  %v2593_v26 = vsel %vm412_vm1, %v2524_v16, %v9144_v23  ;;  %v8244_v3 = vpack.c.bf16 %v8013_v27, %v8011_v14  ;;  %v9147_v46 = vrot.slane %v8035_v41, 1  ;;  %5286 = vmatpush3.bf16.msra.mxu0 %v6355_v7  ;;  %v6360_v23 = vld [vmem:[#allocation7 + $0x70] sm:$0xff]  }
 0x2f2   : > { %v8247_v12 = vpack.c.bf16 %v2593_v26, %v2525_v21  ;;  %v2527_v17 = vsel %vm412_vm1, %v9146_v58, %v2526_v63  ;;  %v2594_v32 = vsel %vm412_vm1, %v2526_v63, %v9149_v34  ;;  %v9221_v16 = vrot.slane %v8009_v19, 7  ;;  %5287 = vmatprep.subr.bf16.mxu0 %v6358_v61 }
 0x2f3   : > { %v8258_v28 = vpack.c.bf16 %v2594_v32, %v2527_v17  ;;  %5752 = vmatpush3.bf16.msra.mxu1 %v6331_v10  ;;  %v9222_v7 = vrot.slane %v8007_v0, 1  ;;  %v9148_v26 = vrot.slane %v8037_v47, 7  ;;  %v2528_v58 = vrot.slane %v8037_v47, 1  ;;  %v6333_v10 = vld [vmem:[#allocation7 + $0xb8] sm:$0xff]  }
 0x2f4   : > { %v2426_v31 = vsel %vm315_vm0, %v2424_v35, %v9221_v16  ;;  %2944 = vmatmul.mubr.bf16.gmra.mrb[172].mxu0 %v8156_v56  ;;  %5753 = vmatprep.subr.bf16.mxu1 %v6332_v55  ;;  %v9150_v19 = vrot.slane %v8039_v6, 1  ;;  %v9153_v61 = vrot.slane %v8041_v11, 7  ;;  %v2530_v17 = vrot.slane %v8041_v11, 1  ;;  %v6361_v16 = vld [vmem:[#allocation7 + $0x30] sm:$0xff]  }
 0x2f5   : > { %v2492_v21 = vsel %vm315_vm0, %v9222_v7, %v2424_v35  ;;  %2951 = vmatprep.mubr.bf16.mxu0 %v8137_v62  ;;  %v2529_v0 = vsel %vm412_vm1, %v9147_v46, %v2528_v58  ;;  %v2595_v35 = vsel %vm412_vm1, %v2528_v58, %v9148_v26  ;;  %v8281_v32 = vpack.c.bf16 %v8017_v54, %v8015_v52  ;;  %v6364_v26 = vld [vmem:[#allocation7 + $0x78] sm:$0xff]  }
 0x2f6   : > { %v8266_v63 = vpack.c.bf16 %v2426_v31, %v2492_v21  ;;  %v2427_v31 = vrot.slane %v8011_v14, 7  ;;  %5288 = vmatpush3.bf16.msra.mxu0 %v6359_v4  ;;  %5722 = vmatmul.mubr.bf16.gmra.mrb[108].mxu1 %v8168_v40  ;;  %v8284_v7 = vpack.c.bf16 %v2595_v35, %v2529_v0  ;;  %v2531_v21 = vsel %vm412_vm1, %v9150_v19, %v2530_v17 }
 0x2f7   : > { %v2596_v58 = vsel %vm412_vm1, %v2530_v17, %v9153_v61  ;;  %v9163_v46 = vrot.slane %v8043_v8, 1  ;;  %5289 = vmatprep.subr.bf16.mxu0 %v6360_v23  ;;  %5725 = vmatprep.mubr.bf16.mxu1 %v8188_v38  ;;  %v9223_v0 = vrot.slane %v8013_v27, 7  ;;  %v9224_v34 = vrot.slane %v8011_v14, 1  ;;  %v6336_v27 = vld [vmem:[#allocation7 + $0x1c0] sm:$0xff]  }
 0x2f8   : > { %v8294_v4 = vpack.c.bf16 %v2596_v58, %v2531_v21  ;;  %5754 = vmatpush3.bf16.msra.mxu1 %v6332_v55  ;;  %v2452_v62 = vrot.slane %v7985_v53, 7  ;;  %v2532_v23 = vrot.slane %v7985_v53, 1  ;;  %v2430_v61 = vrot.slane %v8015_v52, 7 }
 0x2f9   : > { %v2429_v35 = vsel %vm315_vm0, %v2427_v31, %v9223_v0  ;;  %v2493_v19 = vsel %vm315_vm0, %v9224_v34, %v2427_v31  ;;  %5755 = vmatprep.subr.bf16.mxu1 %v6333_v10  ;;  %v8309_v55 = vpack.c.bf16 %v8021_v51, %v8019_v13  ;;  %v2433_v21 = vrot.slane %v8019_v13, 7  ;;  %v6365_v31 = vld [vmem:[#allocation7 + $0x38] sm:$0xff]  }
 0x2fa   : > { %v8303_v17 = vpack.c.bf16 %v2429_v35, %v2493_v19  ;;  %v8314_v14 = vpack.c.bf16 %v8025_v48, %v8023_v33  ;;  %v2436_v34 = vrot.slane %v8023_v33, 7  ;;  %v8319_v19 = vpack.c.bf16 %v8029_v22, %v8027_v18  ;;  %5290 = vmatpush3.bf16.msra.mxu0 %v6361_v16 }
 0x2fb   : > { %v2533_v58 = vsel %vm412_vm1, %v9163_v46, %v2532_v23  ;;  %v2597_v0 = vsel %vm412_vm1, %v2532_v23, %v2452_v62  ;;  %v9225_v35 = vrot.slane %v8017_v54, 7  ;;  %v9226_v43 = vrot.slane %v8015_v52, 1  ;;  %5291 = vmatprep.subr.bf16.mxu0 %v6364_v26 }
 0x2fc   : > { %v8331_v20 = vpack.c.bf16 %v2597_v0, %v2533_v58  ;;  %5756 = vmatpush3.bf16.msra.mxu1 %v6333_v10  ;;  %v9227_v2 = vrot.slane %v8021_v51, 7  ;;  %v9228_v23 = vrot.slane %v8019_v13, 1  ;;  %2952 = vmatmul.mubr.bf16.gmra.mrb[176].mxu0 %v8190_v30  ;;  %v2439_v51 = vrot.slane %v8027_v18, 7 }
 0x2fd   : > { %v2432_v56 = vsel %vm315_vm0, %v2430_v61, %v9225_v35  ;;  %v2494_v25 = vsel %vm315_vm0, %v9226_v43, %v2430_v61  ;;  %5413 = vmatprep.subr.bf16.mxu1 %v6336_v27  ;;  %v9229_v43 = vrot.slane %v8025_v48, 7  ;;  %2959 = vmatprep.mubr.bf16.mxu0 %v8172_v44  ;;  %v8361_v48 = vpack.c.bf16 %v8037_v47, %v8035_v41 }
 0x2fe   : > { %v8333_v16 = vpack.c.bf16 %v2432_v56, %v2494_v25  ;;  %v2435_v46 = vsel %vm315_vm0, %v2433_v21, %v9227_v2  ;;  %v2495_v54 = vsel %vm315_vm0, %v9228_v23, %v2433_v21  ;;  %v9230_v25 = vrot.slane %v8023_v33, 1  ;;  %5292 = vmatpush3.bf16.msra.mxu0 %v6365_v31  ;;  %5726 = vmatmul.mubr.bf16.gmra.mrb[112].mxu1 %v8212_v57 }
 0x2ff   : > { %v8342_v52 = vpack.c.bf16 %v2435_v46, %v2495_v54  ;;  %v2438_v26 = vsel %vm315_vm0, %v2436_v34, %v9229_v43  ;;  %v8356_v2 = vpack.c.bf16 %v8033_v39, %v8031_v37  ;;  %v2442_v46 = vrot.slane %v8031_v37, 7  ;;  %5729 = vmatprep.mubr.bf16.mxu1 %v8224_v36 }
 0x300   : > { %v2496_v56 = vsel %vm315_vm0, %v9230_v25, %v2436_v34  ;;  %v9231_v33 = vrot.slane %v8029_v22, 7  ;;  %v9232_v10 = vrot.slane %v8027_v18, 1  ;;  %v2445_v21 = vrot.slane %v8035_v41, 7 }
 0x301   : > { %v8352_v13 = vpack.c.bf16 %v2438_v26, %v2496_v56  ;;  %v8373_v34 = vpack.c.bf16 %v8041_v11, %v8039_v6  ;;  %v9233_v31 = vrot.slane %v8033_v39, 7  ;;  %v9234_v0 = vrot.slane %v8031_v37, 1 }
 0x302   : > { %v2441_v61 = vsel %vm315_vm0, %v2439_v51, %v9231_v33  ;;  %v2497_v27 = vsel %vm315_vm0, %v9232_v10, %v2439_v51  ;;  %v2448_v35 = vrot.slane %v8039_v6, 7  ;;  %v9235_v54 = vrot.slane %v8037_v47, 7 }
 0x303   : > { %v8376_v58 = vpack.c.bf16 %v2441_v61, %v2497_v27  ;;  %v2444_v22 = vsel %vm315_vm0, %v2442_v46, %v9233_v31  ;;  %v2498_v18 = vsel %vm315_vm0, %v9234_v0, %v2442_v46  ;;  %v9236_v26 = vrot.slane %v8035_v41, 1  ;;  %v6344_v31 = vld [vmem:[#allocation7 + $0x1d8] sm:$0xff]   ;;  %v6349_v0 = vld [vmem:[#allocation7 + $0x1a0] sm:$0xff]  }
 0x304   : > { %v8385_v23 = vpack.c.bf16 %v2444_v22, %v2498_v18  ;;  %v2447_v43 = vsel %vm315_vm0, %v2445_v21, %v9235_v54  ;;  %v8395_v39 = vpack.c.bf16 %v7985_v53, %v8043_v8  ;;  %v9237_v37 = vrot.slane %v8041_v11, 7  ;;  %2960 = vmatmul.mubr.bf16.gmra.mrb[180].mxu0 %v8231_v50  ;;  %v6338_v11 = vld [vmem:[#allocation7 + $0x1c8] sm:$0xff]   ;;  %v6348_v22 = vld [vmem:[#allocation7 + $0x1e0] sm:$0xff]   ;;  %v6356_v54 = vld [vmem:[#allocation7 + $0x1f0] sm:$0xff]  }
 0x305   : > { %v2499_v25 = vsel %vm315_vm0, %v9236_v26, %v2445_v21  ;;  %v9238_v46 = vrot.slane %v8039_v6, 1  ;;  %v2451_v33 = vrot.slane %v8043_v8, 7  ;;  %v9239_v10 = vrot.slane %v8043_v8, 1  ;;  %2967 = vmatprep.mubr.bf16.mxu0 %v8200_v49  ;;  %v6337_v6 = vld [vmem:[#allocation7 + $0x180] sm:$0xff]   ;;  %v6339_v8 = vld [vmem:[#allocation7 + $0x188] sm:$0xff]   ;;  %v6343_v21 = vld [vmem:[#allocation7 + $0x190] sm:$0xff]  }
 0x306   : > { %v8397_v56 = vpack.c.bf16 %v2447_v43, %v2499_v25  ;;  %v2450_v51 = vsel %vm315_vm0, %v2448_v35, %v9237_v37  ;;  %5730 = vmatmul.mubr.bf16.gmra.mrb[116].mxu1 %v8247_v12  ;;  %v6350_v18 = vld [vmem:[#allocation7 + $0x1e8] sm:$0xff]   ;;  %v6357_v43 = vld [vmem:[#allocation7 + $0x1b0] sm:$0xff]   ;;  %v6362_v26 = vld [vmem:[#allocation7 + $0x1f8] sm:$0xff]  }
 0x307   : > { %v2500_v47 = vsel %vm315_vm0, %v9238_v46, %v2448_v35  ;;  %v2453_v41 = vsel %vm315_vm0, %v2451_v33, %v2452_v62  ;;  %v2501_v53 = vsel %vm315_vm0, %v9239_v10, %v2451_v33  ;;  %5733 = vmatprep.mubr.bf16.mxu1 %v8258_v28  ;;  %v6342_v62 = vld [vmem:[#allocation7 + $0x1d0] sm:$0xff]   ;;  %v6351_v35 = vld [vmem:[#allocation7 + $0x1a8] sm:$0xff]   ;;  %v6363_v25 = vld [vmem:[#allocation7 + $0x1b8] sm:$0xff]  }
 0x308   : > { %v8406_v61 = vpack.c.bf16 %v2450_v51, %v2500_v47  ;;  %v8413_v27 = vpack.c.bf16 %v2453_v41, %v2501_v53  ;;  %v6366_v37 = vld [vmem:[#allocation7 + $0x200] sm:$0xff]   ;;  %v6367_v51 = vld [vmem:[#allocation7 + $0x208] sm:$0xff]   ;;  %v9240_v46 = vld [vmem:[#allocation15_spill] sm:$0xff] }
 0x309   : > { %v6368_v47 = vld [vmem:[#allocation7 + $0x210] sm:$0xff]   ;;  %v9241_v33 = vld [vmem:[#allocation19_spill] sm:$0xff]  ;;  %v9242_v10 = vld [vmem:[#allocation21_spill] sm:$0xff] }
 0x30a   : > { %v6369_v41 = vld [vmem:[#allocation7 + $0x218] sm:$0xff]   ;;  %v9243_v53 = vld [vmem:[#allocation20_spill] sm:$0xff] }
 0x30c   : > { %2968 = vmatmul.mubr.bf16.gmra.mrb[184].mxu0 %v8266_v63 }
 0x30d   : > { %2975 = vmatprep.mubr.bf16.mxu0 %v8244_v3 }
 0x30e   : > { %5734 = vmatmul.mubr.bf16.gmra.mrb[120].mxu1 %v8284_v7 }
 0x30f   : > { %5737 = vmatprep.mubr.bf16.mxu1 %v8294_v4 }
 0x314   : > { %2976 = vmatmul.mubr.bf16.gmra.mrb[188].mxu0 %v8303_v17 }
 0x315   : > { %2983 = vmatprep.mubr.bf16.mxu0 %v8281_v32 }
 0x316   : > { %5738 = vmatmul.mubr.bf16.gmra.mrb[124].mxu1 %v8331_v20 }
 0x317   : > { %5757 = vmatprep.mubr.bf16.mxu1 %v8069_v1 }
 0x31c   : > { %2984 = vmatmul.mubr.bf16.gmra.mrb[192].mxu0 %v8333_v16 }
 0x31d   : > { %2991 = vmatprep.mubr.bf16.mxu0 %v8309_v55 }
 0x31e   : > { %5758 = vmatmul.mubr.bf16.vlgmr.msra.gmra.mrb[96].mxu1 %v8063_v45  ;;  %v6345_v45 = vld [vmem:[#allocation7 + $0x198] sm:$0xff]  }
 0x31f   : > { %5761 = vmatprep.mubr.bf16.mxu1 %v8069_v1  ;;  %5414 = vmatpush3.bf16.msra.mxu1 %v6337_v6  ;;  %v6371_v6 = vld [vmem:[#allocation7 + $0x228] sm:$0xff]  }
 0x320   : > { %5415 = vmatprep.subr.bf16.mxu1 %v6338_v11  ;;  %v9244_v11 = vld [vmem:[#allocation17_spill] sm:$0xff] }
 0x323   : > { %5416 = vmatpush3.bf16.msra.mxu1 %v6339_v8  ;;  %v9245_v8 = vld [vmem:[#allocation16_spill] sm:$0xff] }
 0x324   : > { %2992 = vmatmul.mubr.bf16.gmra.mrb[196].mxu0 %v8342_v52  ;;  %5417 = vmatprep.subr.bf16.mxu1 %v6342_v62  ;;  %v6373_v62 = vld [vmem:[#allocation7 + $0x238] sm:$0xff]  }
 0x325   : > { %2999 = vmatprep.mubr.bf16.mxu0 %v8314_v14 }
 0x326   : > { %5762 = vmatmul.mubr.bf16.gmra.mrb[100].mxu1 %v8084_v15 }
 0x327   : > { %5765 = vmatprep.mubr.bf16.mxu1 %v8098_v9  ;;  %5418 = vmatpush3.bf16.msra.mxu1 %v6343_v21 }
 0x328   : > { %5419 = vmatprep.subr.bf16.mxu1 %v6344_v31 }
 0x32b   : > { %5420 = vmatpush3.bf16.msra.mxu1 %v6345_v45 }
 0x32c   : > { %3000 = vmatmul.mubr.bf16.gmra.mrb[200].mxu0 %v8352_v13  ;;  %5421 = vmatprep.subr.bf16.mxu1 %v6348_v22 }
 0x32d   : > { %3007 = vmatprep.mubr.bf16.mxu0 %v8319_v19 }
 0x32e   : > { %5766 = vmatmul.mubr.bf16.gmra.mrb[104].mxu1 %v8118_v60 }
 0x32f   : > { %5769 = vmatprep.mubr.bf16.mxu1 %v8129_v29  ;;  %5422 = vmatpush3.bf16.msra.mxu1 %v6349_v0 }
 0x330   : > { %5423 = vmatprep.subr.bf16.mxu1 %v6350_v18 }
 0x333   : > { %5424 = vmatpush3.bf16.msra.mxu1 %v6351_v35 }
 0x334   : > { %3008 = vmatmul.mubr.bf16.gmra.mrb[204].mxu0 %v8376_v58  ;;  %5425 = vmatprep.subr.bf16.mxu1 %v6356_v54 }
 0x335   : > { %3015 = vmatprep.mubr.bf16.mxu0 %v8356_v2 }
 0x336   : > { %5770 = vmatmul.mubr.bf16.gmra.mrb[108].mxu1 %v8154_v24 }
 0x337   : > { %5773 = vmatprep.mubr.bf16.mxu1 %v8168_v40  ;;  %5426 = vmatpush3.bf16.msra.mxu1 %v6357_v43 }
 0x338   : > { %5427 = vmatprep.subr.bf16.mxu1 %v6362_v26 }
 0x33b   : > { %5428 = vmatpush3.bf16.msra.mxu1 %v6363_v25 }
 0x33c   : > { %3016 = vmatmul.mubr.bf16.gmra.mrb[208].mxu0 %v8385_v23  ;;  %5789 = vmatprep.subr.bf16.mxu1 %v6366_v37 }
 0x33d   : > { %3023 = vmatprep.mubr.bf16.mxu0 %v8361_v48 }
 0x33e   : > { %5774 = vmatmul.mubr.bf16.gmra.mrb[112].mxu1 %v8188_v38 }
 0x33f   : > { %5777 = vmatprep.mubr.bf16.mxu1 %v8212_v57 }
 0x344   : > { %3024 = vmatmul.mubr.bf16.gmra.mrb[212].mxu0 %v8397_v56 }
 0x345   : > { %3031 = vmatprep.mubr.bf16.mxu0 %v8373_v34 }
 0x346   : > { %5778 = vmatmul.mubr.bf16.gmra.mrb[116].mxu1 %v8224_v36 }
 0x347   : > { %5781 = vmatprep.mubr.bf16.mxu1 %v8247_v12 }
 0x34c   : > { %3032 = vmatmul.mubr.bf16.gmra.mrb[216].mxu0 %v8406_v61 }
 0x34d   : > { %3039 = vmatprep.mubr.bf16.mxu0 %v8395_v39 }
 0x34e   : > { %5782 = vmatmul.mubr.bf16.gmra.mrb[120].mxu1 %v8258_v28 }
 0x34f   : > { %5785 = vmatprep.mubr.bf16.mxu1 %v8284_v7 }
 0x354   : > { %3040 = vmatmul.mubr.bf16.gmra.mrb[220].mxu0 %v8413_v27 }
 0x355   : > { %3385 = vmatprep.mubr.bf16.mxu0 %v8054_v5 }
 0x356   : > { %5786 = vmatmul.mubr.bf16.gmra.mrb[124].mxu1 %v8294_v4 }
 0x357   : > { %3900 = vmatprep.mubr.bf16.mxu1 %v8054_v5 }
 0x35c   : > { %3386 = vmatmul.mubr.bf16.vlgmr.msra.gmra.mrb[224].mxu0 %v8090_v59 }
 0x35d   : > { %3393 = vmatprep.mubr.bf16.mxu0 %v8048_v42  ;;  %v6370_v42 = vld [vmem:[#allocation7 + $0x220] sm:$0xff]  }
 0x35e   : > { %3901 = vmatmul.mubr.bf16.vlgmr.msra.gmra.mrb[128].mxu1 %v8090_v59 }
 0x35f   : > { %3908 = vmatprep.mubr.bf16.mxu1 %v9240_v46  ;;  %5790 = vmatpush3.bf16.msra.mxu1 %v6366_v37 }
 0x360   : > { %5791 = vmatprep.subr.bf16.mxu1 %v6367_v51 }
 0x363   : > { %5792 = vmatpush3.bf16.msra.mxu1 %v6367_v51 }
 0x364   : > { %3394 = vmatmul.mubr.bf16.gmra.mrb[228].mxu0 %v9241_v33  ;;  %5793 = vmatprep.subr.bf16.mxu1 %v6368_v47 }
 0x365   : > { %3401 = vmatprep.mubr.bf16.mxu0 %v8054_v5  ;;  %v6372_v5 = vld [vmem:[#allocation7 + $0x230] sm:$0xff]  }
 0x366   : > { %3909 = vmatmul.mubr.bf16.gmra.mrb[132].mxu1 %v9242_v10 }
 0x367   : > { %3916 = vmatprep.mubr.bf16.mxu1 %v9243_v53  ;;  %5794 = vmatpush3.bf16.msra.mxu1 %v6368_v47 }
 0x368   : > { %5795 = vmatprep.subr.bf16.mxu1 %v6369_v41 }
 0x36b   : > { %5796 = vmatpush3.bf16.msra.mxu1 %v6369_v41 }
 0x36c   : > { %3402 = vmatmul.mubr.bf16.gmra.mrb[232].mxu0 %v8090_v59  ;;  %5797 = vmatprep.subr.bf16.mxu1 %v6370_v42 }
 0x36d   : > { %3409 = vmatprep.mubr.bf16.mxu0 %v9240_v46 }
 0x36e   : > { %3917 = vmatmul.mubr.bf16.gmra.mrb[136].mxu1 %v9244_v11 }
 0x36f   : > { %3924 = vmatprep.mubr.bf16.mxu1 %v9245_v8  ;;  %5798 = vmatpush3.bf16.msra.mxu1 %v6370_v42 }
 0x370   : > { %5799 = vmatprep.subr.bf16.mxu1 %v6371_v6 }
 0x373   : > { %5800 = vmatpush3.bf16.msra.mxu1 %v6371_v6 }
 0x374   : > { %3410 = vmatmul.mubr.bf16.gmra.mrb[236].mxu0 %v9242_v10  ;;  %5801 = vmatprep.subr.bf16.mxu1 %v6372_v5 }
 0x375   : > { %3417 = vmatprep.mubr.bf16.mxu0 %v9243_v53 }
 0x376   : > { %3925 = vmatmul.mubr.bf16.gmra.mrb[140].mxu1 %v8190_v30 }
 0x377   : > { %3932 = vmatprep.mubr.bf16.mxu1 %v8172_v44  ;;  %5802 = vmatpush3.bf16.msra.mxu1 %v6372_v5 }
 0x378   : > { %5803 = vmatprep.subr.bf16.mxu1 %v6373_v62 }
 0x37b   : > { %5804 = vmatpush3.bf16.msra.mxu1 %v6373_v62 }
 0x37c   : > { %3418 = vmatmul.mubr.bf16.gmra.mrb[240].mxu0 %v9244_v11 }
 0x37d   : > { %3425 = vmatprep.mubr.bf16.mxu0 %v9245_v8 }
 0x37e   : > { %3933 = vmatmul.mubr.bf16.gmra.mrb[144].mxu1 %v8231_v50 }
 0x37f   : > { %3940 = vmatprep.mubr.bf16.mxu1 %v8200_v49 }
 0x384   : > { %3426 = vmatmul.mubr.bf16.gmra.mrb[244].mxu0 %v8190_v30 }
 0x385   : > { %3433 = vmatprep.mubr.bf16.mxu0 %v8172_v44 }
 0x386   : > { %3941 = vmatmul.mubr.bf16.gmra.mrb[148].mxu1 %v8266_v63 }
 0x387   : > { %3948 = vmatprep.mubr.bf16.mxu1 %v8244_v3 }
 0x38c   : > { %3434 = vmatmul.mubr.bf16.gmra.mrb[248].mxu0 %v8231_v50 }
 0x38d   : > { %3441 = vmatprep.mubr.bf16.mxu0 %v8200_v49 }
 0x38e   : > { %3949 = vmatmul.mubr.bf16.gmra.mrb[152].mxu1 %v8303_v17 }
 0x38f   : > { %3956 = vmatprep.mubr.bf16.mxu1 %v8281_v32 }
 0x394   : > { %3442 = vmatmul.mubr.bf16.gmra.mrb[252].mxu0 %v8266_v63 }
 0x395   : > { %3449 = vmatprep.mubr.bf16.mxu0 %v8244_v3 }
 0x396   : > { %3957 = vmatmul.mubr.bf16.gmra.mrb[156].mxu1 %v8333_v16 }
 0x397   : > { %3964 = vmatprep.mubr.bf16.mxu1 %v8309_v55 }
 0x39c   : > { %3450 = vmatmul.mubr.bf16.gmra.mrb[0].mxu0 %v8303_v17 }
 0x39d   : > { %3457 = vmatprep.mubr.bf16.mxu0 %v8281_v32 }
 0x39e   : > { %3965 = vmatmul.mubr.bf16.gmra.mrb[160].mxu1 %v8342_v52 }
 0x39f   : > { %3972 = vmatprep.mubr.bf16.mxu1 %v8314_v14 }
 0x3a4   : > { %3458 = vmatmul.mubr.bf16.gmra.mrb[4].mxu0 %v8333_v16 }
 0x3a5   : > { %3465 = vmatprep.mubr.bf16.mxu0 %v8309_v55 }
 0x3a6   : > { %3973 = vmatmul.mubr.bf16.gmra.mrb[164].mxu1 %v8352_v13 }
 0x3a7   : > { %3980 = vmatprep.mubr.bf16.mxu1 %v8319_v19 }
 0x3ac   : > { %3466 = vmatmul.mubr.bf16.gmra.mrb[8].mxu0 %v8342_v52 }
 0x3ad   : > { %3473 = vmatprep.mubr.bf16.mxu0 %v8314_v14 }
 0x3ae   : > { %3981 = vmatmul.mubr.bf16.gmra.mrb[168].mxu1 %v8376_v58 }
 0x3af   : > { %3988 = vmatprep.mubr.bf16.mxu1 %v8356_v2  ;;  %v5157_v59 = vpop.f32.mrb[160].mxu0 }
 0x3b0   : > { %v5158_v50 = vpop.f32.mrb[161].mxu0 }
 0x3b1   : > { %v8502_v44 = vadd.f32 %v5158_v50, %v5157_v59  ;;  %v5160_v30 = vpop.f32.mrb[162].mxu0 }
 0x3b2   : > { %v5161_v49 = vpop.f32.mrb[163].mxu0 }
 0x3b3   : > { %v8504_v3 = vadd.f32 %v5161_v49, %v5160_v30 }
 0x3b4   : > { %3474 = vmatmul.mubr.bf16.gmra.mrb[12].mxu0 %v8352_v13 }
 0x3b5   : > { %3481 = vmatprep.mubr.bf16.mxu0 %v8319_v19 }
 0x3b6   : > { %3989 = vmatmul.mubr.bf16.gmra.mrb[172].mxu1 %v8385_v23 }
 0x3b7   : > { %3996 = vmatprep.mubr.bf16.mxu1 %v8361_v48  ;;  %v5163_v63 = vpop.f32.mrb[164].mxu0 }
 0x3b8   : > { %v5164_v32 = vpop.f32.mrb[165].mxu0 }
 0x3b9   : > { %v8510_v17 = vadd.f32 %v5164_v32, %v5163_v63  ;;  %v5166_v55 = vpop.f32.mrb[166].mxu0 }
 0x3ba   : > { %v5167_v14 = vpop.f32.mrb[167].mxu0 }
 0x3bb   : > { %v8512_v16 = vadd.f32 %v5167_v14, %v5166_v55 }
 0x3bc   : > { %3482 = vmatmul.mubr.bf16.gmra.mrb[16].mxu0 %v8376_v58 }
 0x3bd   : > { %3489 = vmatprep.mubr.bf16.mxu0 %v8356_v2 }
 0x3be   : > { %3997 = vmatmul.mubr.bf16.gmra.mrb[176].mxu1 %v8397_v56 }
 0x3bf   : > { %4004 = vmatprep.mubr.bf16.mxu1 %v8373_v34  ;;  %v5169_v19 = vpop.f32.mrb[168].mxu0 }
 0x3c0   : > { %v5170_v52 = vpop.f32.mrb[169].mxu0 }
 0x3c1   : > { %v8518_v13 = vadd.f32 %v5170_v52, %v5169_v19  ;;  %v5172_v21 = vpop.f32.mrb[170].mxu0 }
 0x3c2   : > { %v5173_v31 = vpop.f32.mrb[171].mxu0 }
 0x3c3   : > { %v8520_v45 = vadd.f32 %v5173_v31, %v5172_v21 }
 0x3c4   : > { %3490 = vmatmul.mubr.bf16.gmra.mrb[20].mxu0 %v8385_v23 }
 0x3c5   : > { %3497 = vmatprep.mubr.bf16.mxu0 %v8361_v48 }
 0x3c6   : > { %4005 = vmatmul.mubr.bf16.gmra.mrb[180].mxu1 %v8406_v61 }
 0x3c7   : > { %4012 = vmatprep.mubr.bf16.mxu1 %v8395_v39  ;;  %v5175_v2 = vpop.f32.mrb[172].mxu0 }
 0x3c8   : > { %v5176_v58 = vpop.f32.mrb[173].mxu0 }
 0x3c9   : > { %v8526_v22 = vadd.f32 %v5176_v58, %v5175_v2  ;;  %v5178_v0 = vpop.f32.mrb[174].mxu0 }
 0x3ca   : > { %v5179_v18 = vpop.f32.mrb[175].mxu0 }
 0x3cb   : > { %v8528_v35 = vadd.f32 %v5179_v18, %v5178_v0 }
 0x3cc   : > { %3498 = vmatmul.mubr.bf16.gmra.mrb[24].mxu0 %v8397_v56 }
 0x3cd   : > { %3505 = vmatprep.mubr.bf16.mxu0 %v8373_v34 }
 0x3ce   : > { %4013 = vmatmul.mubr.bf16.gmra.mrb[184].mxu1 %v8413_v27 }
 0x3cf   : > { %4020 = vmatprep.mubr.bf16.mxu1 %v8373_v34  ;;  %v5181_v48 = vpop.f32.mrb[176].mxu0 }
 0x3d0   : > { %v5182_v23 = vpop.f32.mrb[177].mxu0 }
 0x3d1   : > { %v8534_v54 = vadd.f32 %v5182_v23, %v5181_v48  ;;  %v5184_v39 = vpop.f32.mrb[178].mxu0 }
 0x3d2   : > { %v5185_v43 = vpop.f32.mrb[179].mxu0 }
 0x3d3   : > { %v8536_v26 = vadd.f32 %v5185_v43, %v5184_v39 }
 0x3d4   : > { %3506 = vmatmul.mubr.bf16.gmra.mrb[28].mxu0 %v8406_v61 }
 0x3d6   : > { %4021 = vmatmul.mubr.bf16.gmra.mrb[188].mxu1 %v8406_v61 }
 0x3d7   : > { %5805 = vmatprep.mubr.bf16.mxu1 %v8069_v1  ;;  %v5187_v56 = vpop.f32.mrb[180].mxu0 }
 0x3d8   : > { %v5188_v25 = vpop.f32.mrb[181].mxu0 }
 0x3d9   : > { %v8541_v37 = vadd.f32 %v5188_v25, %v5187_v56  ;;  %v5190_v27 = vpop.f32.mrb[182].mxu0 }
 0x3da   : > { %v5191_v34 = vpop.f32.mrb[183].mxu0 }
 0x3db   : > { %v8543_v51 = vadd.f32 %v5191_v34, %v5190_v27 }
 0x3de   : > { %5806 = vmatmul.mubr.bf16.vlgmr.msra.gmra.mrb[96].mxu1 %v8084_v15 }
 0x3df   : > { %5809 = vmatprep.mubr.bf16.mxu1 %v8098_v9  ;;  %v5193_v46 = vpop.f32.mrb[184].mxu0 }
 0x3e0   : > { %v5194_v47 = vpop.f32.mrb[185].mxu0 }
 0x3e1   : > { %v8547_v33 = vadd.f32 %v5194_v47, %v5193_v46  ;;  %v5196_v41 = vpop.f32.mrb[186].mxu0 }
 0x3e2   : > { %v5197_v61 = vpop.f32.mrb[187].mxu0 }
 0x3e3   : > { %v8549_v10 = vadd.f32 %v5197_v61, %v5196_v41 }
 0x3e6   : > { %5810 = vmatmul.mubr.bf16.gmra.mrb[100].mxu1 %v8118_v60 }
 0x3e7   : > { %5813 = vmatprep.mubr.bf16.mxu1 %v8129_v29  ;;  %v5199_v1 = vpop.f32.mrb[188].mxu0 }
 0x3e8   : > { %v5200_v53 = vpop.f32.mrb[189].mxu0 }
 0x3e9   : > { %v8553_v42 = vadd.f32 %v5200_v53, %v5199_v1  ;;  %v5202_v6 = vpop.f32.mrb[190].mxu0 }
 0x3ea   : > { %v5203_v15 = vpop.f32.mrb[191].mxu0 }
 0x3eb   : > { %v8555_v11 = vadd.f32 %v5203_v15, %v5202_v6 }
 0x3ee   : > { %5814 = vmatmul.mubr.bf16.gmra.mrb[104].mxu1 %v8154_v24 }
 0x3ef   : > { %5817 = vmatprep.mubr.bf16.mxu1 %v8168_v40  ;;  %v5205_v9 = vpop.f32.mrb[192].mxu0 }
 0x3f0   : > { %v5206_v8 = vpop.f32.mrb[193].mxu0 }
 0x3f1   : > { %v8559_v5 = vadd.f32 %v5206_v8, %v5205_v9  ;;  %v5208_v62 = vpop.f32.mrb[194].mxu0 }
 0x3f2   : > { %v5209_v60 = vpop.f32.mrb[195].mxu0 }
 0x3f3   : > { %v8561_v59 = vadd.f32 %v5209_v60, %v5208_v62 }
 0x3f6   : > { %5818 = vmatmul.mubr.bf16.gmra.mrb[108].mxu1 %v8188_v38 }
 0x3f7   : > { %5821 = vmatprep.mubr.bf16.mxu1 %v8212_v57  ;;  %v5211_v29 = vpop.f32.mrb[196].mxu0 }
 0x3f8   : > { %v5212_v50 = vpop.f32.mrb[197].mxu0 }
 0x3f9   : > { %v8565_v30 = vadd.f32 %v5212_v50, %v5211_v29  ;;  %v5214_v49 = vpop.f32.mrb[198].mxu0 }
 0x3fa   : > { %v5215_v24 = vpop.f32.mrb[199].mxu0 }
 0x3fb   : > { %v8567_v63 = vadd.f32 %v5215_v24, %v5214_v49 }
 0x3fe   : > { %5822 = vmatmul.mubr.bf16.gmra.mrb[112].mxu1 %v8224_v36 }
 0x3ff   : > { %5825 = vmatprep.mubr.bf16.mxu1 %v8247_v12  ;;  %v5217_v40 = vpop.f32.mrb[200].mxu0 }
 0x400   : > { %v5218_v32 = vpop.f32.mrb[201].mxu0 }
 0x401   : > { %v8571_v55 = vadd.f32 %v5218_v32, %v5217_v40  ;;  %v5220_v14 = vpop.f32.mrb[202].mxu0 }
 0x402   : > { %v5221_v38 = vpop.f32.mrb[203].mxu0 }
 0x403   : > { %v8573_v19 = vadd.f32 %v5221_v38, %v5220_v14 }
 0x406   : > { %5826 = vmatmul.mubr.bf16.gmra.mrb[116].mxu1 %v8258_v28 }
 0x407   : > { %5829 = vmatprep.mubr.bf16.mxu1 %v8284_v7  ;;  %v5223_v57 = vpop.f32.mrb[204].mxu0 }
 0x408   : > { %v5224_v52 = vpop.f32.mrb[205].mxu0 }
 0x409   : > { %v8577_v21 = vadd.f32 %v5224_v52, %v5223_v57  ;;  %v5226_v31 = vpop.f32.mrb[206].mxu0 }
 0x40a   : > { %v5227_v36 = vpop.f32.mrb[207].mxu0 }
 0x40b   : > { %v8579_v2 = vadd.f32 %v5227_v36, %v5226_v31 }
 0x40e   : > { %5830 = vmatmul.mubr.bf16.gmra.mrb[120].mxu1 %v8294_v4 }
 0x40f   : > { %5833 = vmatprep.mubr.bf16.mxu1 %v8331_v20  ;;  %v5229_v12 = vpop.f32.mrb[208].mxu0 }
 0x410   : > { %v5230_v58 = vpop.f32.mrb[209].mxu0 }
 0x411   : > { %v8583_v0 = vadd.f32 %v5230_v58, %v5229_v12  ;;  %v5232_v18 = vpop.f32.mrb[210].mxu0 }
 0x412   : > { %v5233_v28 = vpop.f32.mrb[211].mxu0 }
 0x413   : > { %v8585_v48 = vadd.f32 %v5233_v28, %v5232_v18 }
 0x416   : > { %5834 = vmatmul.mubr.bf16.gmra.mrb[124].mxu1 %v8294_v4 }
 0x417   : > { %v5235_v7 = vpop.f32.mrb[212].mxu0 }
 0x418   : > { %v5236_v23 = vpop.f32.mrb[213].mxu0 }
 0x419   : > { %v8588_v39 = vadd.f32 %v5236_v23, %v5235_v7  ;;  %v5238_v43 = vpop.f32.mrb[214].mxu0 }
 0x41a   : > { %v5239_v56 = vpop.f32.mrb[215].mxu0 }
 0x41b   : > { %v8590_v25 = vadd.f32 %v5239_v56, %v5238_v43 }
 0x41f   : > { %v5241_v27 = vpop.f32.mrb[216].mxu0 }
 0x420   : > { %v5242_v20 = vpop.f32.mrb[217].mxu0 }
 0x421   : > { %v8592_v34 = vadd.f32 %v5242_v20, %v5241_v27  ;;  %v5244_v46 = vpop.f32.mrb[218].mxu0 }
 0x422   : > { %v5245_v47 = vpop.f32.mrb[219].mxu0 }
 0x423   : > { %v8594_v41 = vadd.f32 %v5245_v47, %v5244_v46 }
 0x427   : > { %v5247_v61 = vpop.f32.mrb[220].mxu0 }
 0x428   : > { %v5248_v1 = vpop.f32.mrb[221].mxu0 }
 0x429   : > { %v8596_v53 = vadd.f32 %v5248_v1, %v5247_v61  ;;  %v5250_v4 = vpop.f32.mrb[222].mxu0 }
 0x42a   : > { %v5251_v6 = vpop.f32.mrb[223].mxu0 }
 0x42b   : > { %v8598_v15 = vadd.f32 %v5251_v6, %v5250_v4 }
 0x42f   : > { %v5293_v9 = vpop.f32.mrb[224].mxu0 }
 0x430   : > { %v5294_v8 = vpop.f32.mrb[225].mxu0 }
 0x431   : > { %v5295_v62 = vadd.f32 %v5294_v8, %v5293_v9  ;;  %v5429_v60 = vpop.f32.mrb[128].mxu1  ;;  %v5296_v29 = vpop.f32.mrb[226].mxu0 }
 0x432   : > { %v5430_v50 = vpop.f32.mrb[129].mxu1  ;;  %v5297_v49 = vpop.f32.mrb[227].mxu0 }
 0x433   : > { %v5968_v24 = vadd.f32 %v5295_v62, %v8502_v44  ;;  %v5431_v40 = vadd.f32 %v5430_v50, %v5429_v60  ;;  %v5298_v32 = vadd.f32 %v5297_v49, %v5296_v29  ;;  %v5432_v14 = vpop.f32.mrb[130].mxu1 }
 0x434   : > { %v5433_v38 = vpop.f32.mrb[131].mxu1 }
 0x435   : > { %v5974_v57 = vadd.f32 %v5298_v32, %v8504_v3  ;;  %v5434_v52 = vadd.f32 %v5433_v38, %v5432_v14  ;;  %v8602_v31 = vadd.f32 %v5968_v24, %v5431_v40 }
 0x437   : > { %v5299_v36 = vpop.f32.mrb[228].mxu0  ;;  %v8604_v12 = vadd.f32 %v5974_v57, %v5434_v52 }
 0x438   : > { %v5300_v58 = vpop.f32.mrb[229].mxu0 }
 0x439   : > { %v5301_v18 = vadd.f32 %v5300_v58, %v5299_v36  ;;  %v5435_v28 = vpop.f32.mrb[132].mxu1  ;;  %v5302_v7 = vpop.f32.mrb[230].mxu0 }
 0x43a   : > { %v5436_v23 = vpop.f32.mrb[133].mxu1  ;;  %v5303_v43 = vpop.f32.mrb[231].mxu0 }
 0x43b   : > { %v5965_v44 = vadd.f32 %v5301_v18, %v8510_v17  ;;  %v5437_v56 = vadd.f32 %v5436_v23, %v5435_v28  ;;  %v5304_v27 = vadd.f32 %v5303_v43, %v5302_v7  ;;  %v5438_v20 = vpop.f32.mrb[134].mxu1 }
 0x43c   : > { %v5439_v46 = vpop.f32.mrb[135].mxu1 }
 0x43d   : > { %v5971_v3 = vadd.f32 %v5304_v27, %v8512_v16  ;;  %v5440_v47 = vadd.f32 %v5439_v46, %v5438_v20  ;;  %v8608_v61 = vadd.f32 %v5965_v44, %v5437_v56 }
 0x43f   : > { %v5305_v1 = vpop.f32.mrb[232].mxu0  ;;  %v8610_v4 = vadd.f32 %v5971_v3, %v5440_v47 }
 0x440   : > { %v5306_v6 = vpop.f32.mrb[233].mxu0 }
 0x441   : > { %v5307_v9 = vadd.f32 %v5306_v6, %v5305_v1  ;;  %v5441_v8 = vpop.f32.mrb[136].mxu1  ;;  %v5308_v62 = vpop.f32.mrb[234].mxu0 }
 0x442   : > { %v5442_v60 = vpop.f32.mrb[137].mxu1  ;;  %v5309_v29 = vpop.f32.mrb[235].mxu0 }
 0x443   : > { %v5980_v17 = vadd.f32 %v5307_v9, %v8518_v13  ;;  %v5443_v50 = vadd.f32 %v5442_v60, %v5441_v8  ;;  %v5310_v49 = vadd.f32 %v5309_v29, %v5308_v62  ;;  %v5444_v24 = vpop.f32.mrb[138].mxu1 }
 0x444   : > { %v5445_v40 = vpop.f32.mrb[139].mxu1 }
 0x445   : > { %v5986_v16 = vadd.f32 %v5310_v49, %v8520_v45  ;;  %v5446_v32 = vadd.f32 %v5445_v40, %v5444_v24  ;;  %v8614_v14 = vadd.f32 %v5980_v17, %v5443_v50 }
 0x447   : > { %v5311_v38 = vpop.f32.mrb[236].mxu0  ;;  %v8616_v57 = vadd.f32 %v5986_v16, %v5446_v32 }
 0x448   : > { %v5312_v52 = vpop.f32.mrb[237].mxu0 }
 0x449   : > { %v5313_v36 = vadd.f32 %v5312_v52, %v5311_v38  ;;  %v5447_v58 = vpop.f32.mrb[140].mxu1  ;;  %v5314_v18 = vpop.f32.mrb[238].mxu0 }
 0x44a   : > { %v5448_v28 = vpop.f32.mrb[141].mxu1  ;;  %v5315_v7 = vpop.f32.mrb[239].mxu0 }
 0x44b   : > { %v5977_v13 = vadd.f32 %v5313_v36, %v8526_v22  ;;  %v5449_v23 = vadd.f32 %v5448_v28, %v5447_v58  ;;  %v5316_v43 = vadd.f32 %v5315_v7, %v5314_v18  ;;  %v5450_v44 = vpop.f32.mrb[142].mxu1 }
 0x44c   : > { %v5451_v56 = vpop.f32.mrb[143].mxu1 }
 0x44d   : > { %v5983_v45 = vadd.f32 %v5316_v43, %v8528_v35  ;;  %v5452_v27 = vadd.f32 %v5451_v56, %v5450_v44  ;;  %v8620_v20 = vadd.f32 %v5977_v13, %v5449_v23 }
 0x44f   : > { %v5317_v46 = vpop.f32.mrb[240].mxu0  ;;  %v8622_v3 = vadd.f32 %v5983_v45, %v5452_v27 }
 0x450   : > { %v5318_v47 = vpop.f32.mrb[241].mxu0 }
 0x451   : > { %v5319_v1 = vadd.f32 %v5318_v47, %v5317_v46  ;;  %v5453_v6 = vpop.f32.mrb[144].mxu1  ;;  %v5320_v9 = vpop.f32.mrb[242].mxu0 }
 0x452   : > { %v5454_v8 = vpop.f32.mrb[145].mxu1  ;;  %v5321_v62 = vpop.f32.mrb[243].mxu0 }
 0x453   : > { %v5992_v22 = vadd.f32 %v5319_v1, %v8534_v54  ;;  %v5455_v60 = vadd.f32 %v5454_v8, %v5453_v6  ;;  %v5322_v29 = vadd.f32 %v5321_v62, %v5320_v9  ;;  %v5456_v17 = vpop.f32.mrb[146].mxu1 }
 0x454   : > { %v5457_v50 = vpop.f32.mrb[147].mxu1 }
 0x455   : > { %v5998_v35 = vadd.f32 %v5322_v29, %v8536_v26  ;;  %v5458_v49 = vadd.f32 %v5457_v50, %v5456_v17  ;;  %v8626_v24 = vadd.f32 %v5992_v22, %v5455_v60 }
 0x457   : > { %v5323_v40 = vpop.f32.mrb[244].mxu0  ;;  %v8628_v16 = vadd.f32 %v5998_v35, %v5458_v49 }
 0x458   : > { %v5324_v32 = vpop.f32.mrb[245].mxu0 }
 0x459   : > { %v5325_v38 = vadd.f32 %v5324_v32, %v5323_v40  ;;  %v5459_v52 = vpop.f32.mrb[148].mxu1  ;;  %v5326_v36 = vpop.f32.mrb[246].mxu0 }
 0x45a   : > { %v5460_v58 = vpop.f32.mrb[149].mxu1  ;;  %v5327_v18 = vpop.f32.mrb[247].mxu0 }
 0x45b   : > { %v5989_v54 = vadd.f32 %v5325_v38, %v8541_v37  ;;  %v5461_v28 = vadd.f32 %v5460_v58, %v5459_v52  ;;  %v5328_v7 = vadd.f32 %v5327_v18, %v5326_v36  ;;  %v5462_v13 = vpop.f32.mrb[150].mxu1 }
 0x45c   : > { %v5463_v23 = vpop.f32.mrb[151].mxu1 }
 0x45d   : > { %v5995_v26 = vadd.f32 %v5328_v7, %v8543_v51  ;;  %v5464_v43 = vadd.f32 %v5463_v23, %v5462_v13  ;;  %v8632_v44 = vadd.f32 %v5989_v54, %v5461_v28 }
 0x45f   : > { %v5329_v56 = vpop.f32.mrb[248].mxu0  ;;  %v8634_v45 = vadd.f32 %v5995_v26, %v5464_v43 }
 0x460   : > { %v5330_v27 = vpop.f32.mrb[249].mxu0 }
 0x461   : > { %v5331_v46 = vadd.f32 %v5330_v27, %v5329_v56  ;;  %v5465_v47 = vpop.f32.mrb[152].mxu1  ;;  %v5332_v1 = vpop.f32.mrb[250].mxu0 }
 0x462   : > { %v5466_v6 = vpop.f32.mrb[153].mxu1  ;;  %v5333_v9 = vpop.f32.mrb[251].mxu0 }
 0x463   : > { %v6004_v37 = vadd.f32 %v5331_v46, %v8547_v33  ;;  %v5467_v8 = vadd.f32 %v5466_v6, %v5465_v47  ;;  %v5334_v62 = vadd.f32 %v5333_v9, %v5332_v1  ;;  %v5468_v22 = vpop.f32.mrb[154].mxu1 }
 0x464   : > { %v5469_v60 = vpop.f32.mrb[155].mxu1 }
 0x465   : > { %v6010_v51 = vadd.f32 %v5334_v62, %v8549_v10  ;;  %v5470_v29 = vadd.f32 %v5469_v60, %v5468_v22  ;;  %v8638_v17 = vadd.f32 %v6004_v37, %v5467_v8 }
 0x467   : > { %v5335_v50 = vpop.f32.mrb[252].mxu0  ;;  %v8640_v35 = vadd.f32 %v6010_v51, %v5470_v29 }
 0x468   : > { %v5336_v49 = vpop.f32.mrb[253].mxu0 }
 0x469   : > { %v5337_v40 = vadd.f32 %v5336_v49, %v5335_v50  ;;  %v5471_v32 = vpop.f32.mrb[156].mxu1  ;;  %v5338_v38 = vpop.f32.mrb[254].mxu0 }
 0x46a   : > { %v5472_v52 = vpop.f32.mrb[157].mxu1  ;;  %v5339_v36 = vpop.f32.mrb[255].mxu0 }
 0x46b   : > { %v6001_v33 = vadd.f32 %v5337_v40, %v8553_v42  ;;  %v5473_v58 = vadd.f32 %v5472_v52, %v5471_v32  ;;  %v5340_v18 = vadd.f32 %v5339_v36, %v5338_v38  ;;  %v5474_v54 = vpop.f32.mrb[158].mxu1 }
 0x46c   : > { %v5475_v28 = vpop.f32.mrb[159].mxu1 }
 0x46d   : > { %v6007_v10 = vadd.f32 %v5340_v18, %v8555_v11  ;;  %v5476_v7 = vadd.f32 %v5475_v28, %v5474_v54  ;;  %v8644_v13 = vadd.f32 %v6001_v33, %v5473_v58 }
 0x46f   : > { %v5341_v23 = vpop.f32.mrb[0].mxu0  ;;  %v8646_v26 = vadd.f32 %v6007_v10, %v5476_v7 }
 0x470   : > { %v5342_v43 = vpop.f32.mrb[1].mxu0 }
 0x471   : > { %v5343_v56 = vadd.f32 %v5342_v43, %v5341_v23  ;;  %v5477_v27 = vpop.f32.mrb[160].mxu1  ;;  %v5344_v46 = vpop.f32.mrb[2].mxu0 }
 0x472   : > { %v5478_v47 = vpop.f32.mrb[161].mxu1  ;;  %v5345_v1 = vpop.f32.mrb[3].mxu0 }
 0x473   : > { %v6016_v42 = vadd.f32 %v5343_v56, %v8559_v5  ;;  %v5479_v6 = vadd.f32 %v5478_v47, %v5477_v27  ;;  %v5346_v9 = vadd.f32 %v5345_v1, %v5344_v46  ;;  %v5480_v37 = vpop.f32.mrb[162].mxu1 }
 0x474   : > { %v5481_v8 = vpop.f32.mrb[163].mxu1 }
 0x475   : > { %v6022_v11 = vadd.f32 %v5346_v9, %v8561_v59  ;;  %v5482_v62 = vadd.f32 %v5481_v8, %v5480_v37  ;;  %v8650_v22 = vadd.f32 %v6016_v42, %v5479_v6 }
 0x477   : > { %v5347_v60 = vpop.f32.mrb[4].mxu0  ;;  %v8652_v51 = vadd.f32 %v6022_v11, %v5482_v62 }
 0x478   : > { %v5348_v29 = vpop.f32.mrb[5].mxu0 }
 0x479   : > { %v5349_v50 = vadd.f32 %v5348_v29, %v5347_v60  ;;  %v5483_v49 = vpop.f32.mrb[164].mxu1  ;;  %v5350_v40 = vpop.f32.mrb[6].mxu0 }
 0x47a   : > { %v5484_v32 = vpop.f32.mrb[165].mxu1  ;;  %v5351_v38 = vpop.f32.mrb[7].mxu0 }
 0x47b   : > { %v6013_v5 = vadd.f32 %v5349_v50, %v8565_v30  ;;  %v5485_v52 = vadd.f32 %v5484_v32, %v5483_v49  ;;  %v5352_v36 = vadd.f32 %v5351_v38, %v5350_v40  ;;  %v5486_v33 = vpop.f32.mrb[166].mxu1 }
 0x47c   : > { %v5487_v58 = vpop.f32.mrb[167].mxu1 }
 0x47d   : > { %v6019_v59 = vadd.f32 %v5352_v36, %v8567_v63  ;;  %v5488_v18 = vadd.f32 %v5487_v58, %v5486_v33  ;;  %v8656_v54 = vadd.f32 %v6013_v5, %v5485_v52 }
 0x47f   : > { %v5353_v28 = vpop.f32.mrb[8].mxu0  ;;  %v8658_v10 = vadd.f32 %v6019_v59, %v5488_v18 }
 0x480   : > { %v5354_v7 = vpop.f32.mrb[9].mxu0 }
 0x481   : > { %v5355_v23 = vadd.f32 %v5354_v7, %v5353_v28  ;;  %v5489_v43 = vpop.f32.mrb[168].mxu1  ;;  %v5356_v56 = vpop.f32.mrb[10].mxu0 }
 0x482   : > { %v5490_v27 = vpop.f32.mrb[169].mxu1  ;;  %v5357_v46 = vpop.f32.mrb[11].mxu0 }
 0x483   : > { %v6028_v30 = vadd.f32 %v5355_v23, %v8571_v55  ;;  %v5491_v47 = vadd.f32 %v5490_v27, %v5489_v43  ;;  %v5358_v1 = vadd.f32 %v5357_v46, %v5356_v56  ;;  %v5492_v42 = vpop.f32.mrb[170].mxu1 }
 0x484   : > { %v5493_v6 = vpop.f32.mrb[171].mxu1 }
 0x485   : > { %v6034_v63 = vadd.f32 %v5358_v1, %v8573_v19  ;;  %v5494_v9 = vadd.f32 %v5493_v6, %v5492_v42  ;;  %v8662_v37 = vadd.f32 %v6028_v30, %v5491_v47 }
 0x487   : > { %v5359_v8 = vpop.f32.mrb[12].mxu0  ;;  %v8664_v11 = vadd.f32 %v6034_v63, %v5494_v9 }
 0x488   : > { %v5360_v62 = vpop.f32.mrb[13].mxu0 }
 0x489   : > { %v5361_v60 = vadd.f32 %v5360_v62, %v5359_v8  ;;  %v5495_v29 = vpop.f32.mrb[172].mxu1  ;;  %v5362_v50 = vpop.f32.mrb[14].mxu0 }
 0x48a   : > { %v5496_v49 = vpop.f32.mrb[173].mxu1  ;;  %v5363_v40 = vpop.f32.mrb[15].mxu0 }
 0x48b   : > { %v6025_v55 = vadd.f32 %v5361_v60, %v8577_v21  ;;  %v5497_v32 = vadd.f32 %v5496_v49, %v5495_v29  ;;  %v5364_v38 = vadd.f32 %v5363_v40, %v5362_v50  ;;  %v5498_v5 = vpop.f32.mrb[174].mxu1 }
 0x48c   : > { %v5499_v52 = vpop.f32.mrb[175].mxu1 }
 0x48d   : > { %v6031_v19 = vadd.f32 %v5364_v38, %v8579_v2  ;;  %v5500_v36 = vadd.f32 %v5499_v52, %v5498_v5  ;;  %v8668_v33 = vadd.f32 %v6025_v55, %v5497_v32 }
 0x48f   : > { %v5365_v58 = vpop.f32.mrb[16].mxu0  ;;  %v8670_v59 = vadd.f32 %v6031_v19, %v5500_v36 }
 0x490   : > { %v5366_v18 = vpop.f32.mrb[17].mxu0 }
 0x491   : > { %v5367_v28 = vadd.f32 %v5366_v18, %v5365_v58  ;;  %v5501_v7 = vpop.f32.mrb[176].mxu1  ;;  %v5368_v23 = vpop.f32.mrb[18].mxu0 }
 0x492   : > { %v5502_v43 = vpop.f32.mrb[177].mxu1  ;;  %v5369_v56 = vpop.f32.mrb[19].mxu0 }
 0x493   : > { %v6040_v21 = vadd.f32 %v5367_v28, %v8583_v0  ;;  %v5503_v27 = vadd.f32 %v5502_v43, %v5501_v7  ;;  %v5370_v46 = vadd.f32 %v5369_v56, %v5368_v23  ;;  %v5504_v30 = vpop.f32.mrb[178].mxu1 }
 0x494   : > { %v5505_v47 = vpop.f32.mrb[179].mxu1 }
 0x495   : > { %v6046_v2 = vadd.f32 %v5370_v46, %v8585_v48  ;;  %v5506_v1 = vadd.f32 %v5505_v47, %v5504_v30  ;;  %v8674_v42 = vadd.f32 %v6040_v21, %v5503_v27 }
 0x497   : > { %v5371_v6 = vpop.f32.mrb[20].mxu0  ;;  %v8676_v63 = vadd.f32 %v6046_v2, %v5506_v1 }
 0x498   : > { %v5372_v9 = vpop.f32.mrb[21].mxu0 }
 0x499   : > { %v5373_v8 = vadd.f32 %v5372_v9, %v5371_v6  ;;  %v5507_v62 = vpop.f32.mrb[180].mxu1  ;;  %v5374_v60 = vpop.f32.mrb[22].mxu0 }
 0x49a   : > { %v5508_v29 = vpop.f32.mrb[181].mxu1  ;;  %v5375_v50 = vpop.f32.mrb[23].mxu0 }
 0x49b   : > { %v6037_v0 = vadd.f32 %v5373_v8, %v8588_v39  ;;  %v5509_v49 = vadd.f32 %v5508_v29, %v5507_v62  ;;  %v5376_v40 = vadd.f32 %v5375_v50, %v5374_v60  ;;  %v5510_v55 = vpop.f32.mrb[182].mxu1 }
 0x49c   : > { %v5511_v32 = vpop.f32.mrb[183].mxu1 }
 0x49d   : > { %v6043_v48 = vadd.f32 %v5376_v40, %v8590_v25  ;;  %v5512_v38 = vadd.f32 %v5511_v32, %v5510_v55  ;;  %v8680_v5 = vadd.f32 %v6037_v0, %v5509_v49 }
 0x49f   : > { %v5377_v52 = vpop.f32.mrb[24].mxu0  ;;  %v8682_v19 = vadd.f32 %v6043_v48, %v5512_v38 }
 0x4a0   : > { %v5378_v36 = vpop.f32.mrb[25].mxu0 }
 0x4a1   : > { %v5379_v58 = vadd.f32 %v5378_v36, %v5377_v52  ;;  %v5513_v18 = vpop.f32.mrb[184].mxu1  ;;  %v5380_v28 = vpop.f32.mrb[26].mxu0 }
 0x4a2   : > { %v5514_v7 = vpop.f32.mrb[185].mxu1  ;;  %v5381_v23 = vpop.f32.mrb[27].mxu0 }
 0x4a3   : > { %v6052_v39 = vadd.f32 %v5379_v58, %v8592_v34  ;;  %v5515_v43 = vadd.f32 %v5514_v7, %v5513_v18  ;;  %v5382_v56 = vadd.f32 %v5381_v23, %v5380_v28  ;;  %v5516_v21 = vpop.f32.mrb[186].mxu1 }
 0x4a4   : > { %v5517_v27 = vpop.f32.mrb[187].mxu1 }
 0x4a5   : > { %v6058_v25 = vadd.f32 %v5382_v56, %v8594_v41  ;;  %v5518_v46 = vadd.f32 %v5517_v27, %v5516_v21  ;;  %v8686_v30 = vadd.f32 %v6052_v39, %v5515_v43 }
 0x4a7   : > { %v5383_v47 = vpop.f32.mrb[28].mxu0  ;;  %v8688_v2 = vadd.f32 %v6058_v25, %v5518_v46 }
 0x4a8   : > { %v5384_v1 = vpop.f32.mrb[29].mxu0 }
 0x4a9   : > { %v5385_v6 = vadd.f32 %v5384_v1, %v5383_v47  ;;  %v5519_v9 = vpop.f32.mrb[188].mxu1  ;;  %v5386_v8 = vpop.f32.mrb[30].mxu0 }
 0x4aa   : > { %v5520_v62 = vpop.f32.mrb[189].mxu1  ;;  %v5387_v60 = vpop.f32.mrb[31].mxu0 }
 0x4ab   : > { %v6049_v34 = vadd.f32 %v5385_v6, %v8596_v53  ;;  %v5521_v29 = vadd.f32 %v5520_v62, %v5519_v9  ;;  %v5388_v50 = vadd.f32 %v5387_v60, %v5386_v8  ;;  %v5522_v0 = vpop.f32.mrb[190].mxu1 }
 0x4ac   : > { %v5523_v49 = vpop.f32.mrb[191].mxu1 }
 0x4ad   : > { %v6055_v41 = vadd.f32 %v5388_v50, %v8598_v15  ;;  %v5524_v40 = vadd.f32 %v5523_v49, %v5522_v0  ;;  %v8692_v55 = vadd.f32 %v6049_v34, %v5521_v29 }
 0x4af   : > { %v8694_v32 = vadd.f32 %v6055_v41, %v5524_v40 }
 0x4b1   : > { %v5807_v48 = vpop.f32.mrb[96].mxu1 }
 0x4b2   : > { %v8697_v38 = vadd.f32 %v8608_v61, %v5807_v48  ;;  %v4063_v52 = vpop.f32.mrb[97].mxu1 }
 0x4b3   : > { %v8700_v36 = vadd.f32 %v8602_v31, %v4063_v52  ;;  %v5808_v53 = vpop.f32.mrb[98].mxu1 }
 0x4b4   : > { %v8703_v58 = vadd.f32 %v8610_v4, %v5808_v53  ;;  %v4066_v18 = vpop.f32.mrb[99].mxu1  ;;  %v4262_v31 = vmul.f32 %v8697_v38, %v8697_v38 }
 0x4b5   : > { %v8706_v15 = vadd.f32 %v8604_v12, %v4066_v18  ;;  %v4260_v28 = vmul.f32 %v8700_v36, %v8700_v36 }
 0x4b6   : > { %v4263_v56 = vmul.f32 %v8703_v58, %v8703_v58 }
 0x4b7   : > { %v4222_v7 = vadd.f32 %v8706_v15, %v8700_v36  ;;  %v4261_v61 = vmul.f32 %v8706_v15, %v8706_v15 }
 0x4b9   : > { %v4223_v23 = vadd.f32 %v8697_v38, %v4222_v7  ;;  %v4292_v4 = vadd.f32 %v4261_v61, %v4260_v28  ;;  %v5811_v39 = vpop.f32.mrb[100].mxu1 }
 0x4ba   : > { %v8718_v43 = vadd.f32 %v8620_v20, %v5811_v39  ;;  %v4079_v12 = vpop.f32.mrb[101].mxu1 }
 0x4bb   : > { %v4293_v21 = vadd.f32 %v4292_v4, %v4262_v31  ;;  %v8723_v27 = vadd.f32 %v8614_v14, %v4079_v12  ;;  %v4224_v25 = vadd.f32 %v8703_v58, %v4223_v23  ;;  %v5812_v46 = vpop.f32.mrb[102].mxu1 }
 0x4bc   : > { %v8727_v47 = vadd.f32 %v8622_v3, %v5812_v46  ;;  %v4082_v1 = vpop.f32.mrb[103].mxu1  ;;  %v4266_v3 = vmul.f32 %v8718_v43, %v8718_v43 }
 0x4bd   : > { %v4225_v6 = vadd.f32 %v8723_v27, %v4224_v25  ;;  %v4264_v20 = vmul.f32 %v8723_v27, %v8723_v27  ;;  %v4294_v9 = vadd.f32 %v4293_v21, %v4263_v56  ;;  %v8733_v8 = vadd.f32 %v8616_v57, %v4082_v1 }
 0x4be   : > { %v4267_v57 = vmul.f32 %v8727_v47, %v8727_v47 }
 0x4bf   : > { %v4295_v62 = vadd.f32 %v4294_v9, %v4264_v20  ;;  %v4226_v14 = vadd.f32 %v8733_v8, %v4225_v6  ;;  %v4265_v60 = vmul.f32 %v8733_v8, %v8733_v8 }
 0x4c1   : > { %v4227_v34 = vadd.f32 %v8718_v43, %v4226_v14  ;;  %v4296_v29 = vadd.f32 %v4295_v62, %v4265_v60  ;;  %v5815_v50 = vpop.f32.mrb[104].mxu1 }
 0x4c2   : > { %v8742_v0 = vadd.f32 %v8632_v44, %v5815_v50  ;;  %v4095_v49 = vpop.f32.mrb[105].mxu1 }
 0x4c3   : > { %v4297_v41 = vadd.f32 %v4296_v29, %v4266_v3  ;;  %v8747_v40 = vadd.f32 %v8626_v24, %v4095_v49  ;;  %v4228_v48 = vadd.f32 %v8727_v47, %v4227_v34  ;;  %v5816_v52 = vpop.f32.mrb[106].mxu1 }
 0x4c4   : > { %v8751_v53 = vadd.f32 %v8634_v45, %v5816_v52  ;;  %v4098_v18 = vpop.f32.mrb[107].mxu1  ;;  %v4270_v45 = vmul.f32 %v8742_v0, %v8742_v0 }
 0x4c5   : > { %v4229_v28 = vadd.f32 %v8747_v40, %v4228_v48  ;;  %v4268_v44 = vmul.f32 %v8747_v40, %v8747_v40  ;;  %v4298_v7 = vadd.f32 %v4297_v41, %v4267_v57  ;;  %v8757_v61 = vadd.f32 %v8628_v16, %v4098_v18 }
 0x4c6   : > { %v4271_v16 = vmul.f32 %v8751_v53, %v8751_v53 }
 0x4c7   : > { %v4299_v31 = vadd.f32 %v4298_v7, %v4268_v44  ;;  %v4230_v24 = vadd.f32 %v8757_v61, %v4229_v28  ;;  %v4269_v23 = vmul.f32 %v8757_v61, %v8757_v61 }
 0x4c9   : > { %v4231_v4 = vadd.f32 %v8742_v0, %v4230_v24  ;;  %v4300_v39 = vadd.f32 %v4299_v31, %v4269_v23  ;;  %v5819_v12 = vpop.f32.mrb[108].mxu1 }
 0x4ca   : > { %v8766_v56 = vadd.f32 %v8644_v13, %v5819_v12  ;;  %v4111_v21 = vpop.f32.mrb[109].mxu1 }
 0x4cb   : > { %v4301_v25 = vadd.f32 %v4300_v39, %v4270_v45  ;;  %v8771_v46 = vadd.f32 %v8638_v17, %v4111_v21  ;;  %v4232_v1 = vadd.f32 %v8751_v53, %v4231_v4  ;;  %v5820_v6 = vpop.f32.mrb[110].mxu1 }
 0x4cc   : > { %v8775_v20 = vadd.f32 %v8646_v26, %v5820_v6  ;;  %v4114_v9 = vpop.f32.mrb[111].mxu1  ;;  %v4274_v26 = vmul.f32 %v8766_v56, %v8766_v56 }
 0x4cd   : > { %v4233_v62 = vadd.f32 %v8771_v46, %v4232_v1  ;;  %v4272_v13 = vmul.f32 %v8771_v46, %v8771_v46  ;;  %v4302_v14 = vadd.f32 %v4301_v25, %v4271_v16  ;;  %v8781_v60 = vadd.f32 %v8640_v35, %v4114_v9 }
 0x4ce   : > { %v4275_v35 = vmul.f32 %v8775_v20, %v8775_v20 }
 0x4cf   : > { %v4303_v3 = vadd.f32 %v4302_v14, %v4272_v13  ;;  %v4234_v17 = vadd.f32 %v8781_v60, %v4233_v62  ;;  %v4273_v34 = vmul.f32 %v8781_v60, %v8781_v60 }
 0x4d1   : > { %v4235_v29 = vadd.f32 %v8766_v56, %v4234_v17  ;;  %v4304_v50 = vadd.f32 %v4303_v3, %v4273_v34  ;;  %v5823_v49 = vpop.f32.mrb[112].mxu1 }
 0x4d2   : > { %v8790_v57 = vadd.f32 %v8656_v54, %v5823_v49  ;;  %v4127_v41 = vpop.f32.mrb[113].mxu1 }
 0x4d3   : > { %v4305_v48 = vadd.f32 %v4304_v50, %v4274_v26  ;;  %v8795_v52 = vadd.f32 %v8650_v22, %v4127_v41  ;;  %v4236_v18 = vadd.f32 %v8775_v20, %v4235_v29  ;;  %v5824_v28 = vpop.f32.mrb[114].mxu1 }
 0x4d4   : > { %v8799_v44 = vadd.f32 %v8658_v10, %v5824_v28  ;;  %v4130_v7 = vpop.f32.mrb[115].mxu1  ;;  %v4278_v10 = vmul.f32 %v8790_v57, %v8790_v57 }
 0x4d5   : > { %v4237_v31 = vadd.f32 %v8795_v52, %v4236_v18  ;;  %v4276_v54 = vmul.f32 %v8795_v52, %v8795_v52  ;;  %v4306_v24 = vadd.f32 %v4305_v48, %v4275_v35  ;;  %v8805_v23 = vadd.f32 %v8652_v51, %v4130_v7 }
 0x4d6   : > { %v4279_v51 = vmul.f32 %v8799_v44, %v8799_v44 }
 0x4d7   : > { %v4307_v45 = vadd.f32 %v4306_v24, %v4276_v54  ;;  %v4238_v22 = vadd.f32 %v8805_v23, %v4237_v31  ;;  %v4277_v4 = vmul.f32 %v8805_v23, %v8805_v23 }
 0x4d9   : > { %v4239_v39 = vadd.f32 %v8790_v57, %v4238_v22  ;;  %v4308_v12 = vadd.f32 %v4307_v45, %v4277_v4  ;;  %v5827_v21 = vpop.f32.mrb[116].mxu1 }
 0x4da   : > { %v8814_v16 = vadd.f32 %v8668_v33, %v5827_v21  ;;  %v4143_v25 = vpop.f32.mrb[117].mxu1 }
 0x4db   : > { %v4309_v1 = vadd.f32 %v4308_v12, %v4278_v10  ;;  %v8819_v6 = vadd.f32 %v8662_v37, %v4143_v25  ;;  %v4240_v9 = vadd.f32 %v8799_v44, %v4239_v39  ;;  %v5828_v62 = vpop.f32.mrb[118].mxu1 }
 0x4dc   : > { %v8823_v13 = vadd.f32 %v8670_v59, %v5828_v62  ;;  %v4146_v14 = vpop.f32.mrb[119].mxu1  ;;  %v4282_v59 = vmul.f32 %v8814_v16, %v8814_v16 }
 0x4dd   : > { %v4241_v3 = vadd.f32 %v8819_v6, %v4240_v9  ;;  %v4280_v33 = vmul.f32 %v8819_v6, %v8819_v6  ;;  %v4310_v17 = vadd.f32 %v4309_v1, %v4279_v51  ;;  %v8829_v34 = vadd.f32 %v8664_v11, %v4146_v14 }
 0x4de   : > { %v4283_v11 = vmul.f32 %v8823_v13, %v8823_v13 }
 0x4df   : > { %v4311_v26 = vadd.f32 %v4310_v17, %v4280_v33  ;;  %v4242_v37 = vadd.f32 %v8829_v34, %v4241_v3  ;;  %v4281_v29 = vmul.f32 %v8829_v34, %v8829_v34 }
 0x4e1   : > { %v4243_v50 = vadd.f32 %v8814_v16, %v4242_v37  ;;  %v4312_v49 = vadd.f32 %v4311_v26, %v4281_v29  ;;  %v5831_v41 = vpop.f32.mrb[120].mxu1 }
 0x4e2   : > { %v8838_v35 = vadd.f32 %v8680_v5, %v5831_v41  ;;  %v4159_v48 = vpop.f32.mrb[121].mxu1 }
 0x4e3   : > { %v4313_v18 = vadd.f32 %v4312_v49, %v4282_v59  ;;  %v8843_v28 = vadd.f32 %v8674_v42, %v4159_v48  ;;  %v4244_v7 = vadd.f32 %v8823_v13, %v4243_v50  ;;  %v5832_v31 = vpop.f32.mrb[122].mxu1 }
 0x4e4   : > { %v8847_v54 = vadd.f32 %v8682_v19, %v5832_v31  ;;  %v4162_v24 = vpop.f32.mrb[123].mxu1  ;;  %v4286_v19 = vmul.f32 %v8838_v35, %v8838_v35 }
 0x4e5   : > { %v4245_v45 = vadd.f32 %v8843_v28, %v4244_v7  ;;  %v4284_v5 = vmul.f32 %v8843_v28, %v8843_v28  ;;  %v4314_v22 = vadd.f32 %v4313_v18, %v4283_v11  ;;  %v8853_v4 = vadd.f32 %v8676_v63, %v4162_v24 }
 0x4e6   : > { %v4287_v63 = vmul.f32 %v8847_v54, %v8847_v54 }
 0x4e7   : > { %v4315_v10 = vadd.f32 %v4314_v22, %v4284_v5  ;;  %v4246_v42 = vadd.f32 %v8853_v4, %v4245_v45  ;;  %v4285_v39 = vmul.f32 %v8853_v4, %v8853_v4 }
 0x4e9   : > { %v4247_v12 = vadd.f32 %v8838_v35, %v4246_v42  ;;  %v4316_v21 = vadd.f32 %v4315_v10, %v4285_v39  ;;  %v5835_v25 = vpop.f32.mrb[124].mxu1 }
 0x4ea   : > { %v8862_v51 = vadd.f32 %v8692_v55, %v5835_v25  ;;  %v4175_v1 = vpop.f32.mrb[125].mxu1 }
 0x4eb   : > { %v4317_v9 = vadd.f32 %v4316_v21, %v4286_v19  ;;  %v8867_v62 = vadd.f32 %v8686_v30, %v4175_v1  ;;  %v4248_v14 = vadd.f32 %v8847_v54, %v4247_v12  ;;  %v5836_v3 = vpop.f32.mrb[126].mxu1 }
 0x4ec   : > { %v8871_v33 = vadd.f32 %v8694_v32, %v5836_v3  ;;  %v4178_v17 = vpop.f32.mrb[127].mxu1  ;;  %v4290_v32 = vmul.f32 %v8862_v51, %v8862_v51 }
 0x4ed   : > { %v4249_v26 = vadd.f32 %v8867_v62, %v4248_v14  ;;  %v4288_v55 = vmul.f32 %v8867_v62, %v8867_v62  ;;  %v4318_v37 = vadd.f32 %v4317_v9, %v4287_v63  ;;  %v8877_v29 = vadd.f32 %v8688_v2, %v4178_v17 }
 0x4ee   : > { %v4291_v48 = vmul.f32 %v8871_v33, %v8871_v33 }
 0x4ef   : > { %v4319_v59 = vadd.f32 %v4318_v37, %v4288_v55  ;;  %v4250_v30 = vadd.f32 %v8877_v29, %v4249_v26  ;;  %v4289_v50 = vmul.f32 %v8877_v29, %v8877_v29 }
 0x4f1   : > { %v4251_v49 = vadd.f32 %v8862_v51, %v4250_v30  ;;  %v4320_v41 = vadd.f32 %v4319_v59, %v4289_v50 }
 0x4f3   : > { %v4252_v11 = vadd.f32 %v8871_v33, %v4251_v49  ;;  %v4321_v18 = vadd.f32 %v4320_v41, %v4290_v32 }
 0x4f5   : > { %v4253_v2 = vrot.slane %v4252_v11, 4  ;;  %v4322_v7 = vadd.f32 %v4321_v18, %v4291_v48 }
 0x4f7   : > { %v4254_v31 = vadd.f32 %v4253_v2, %v4252_v11  ;;  %v4323_v24 = vrot.slane %v4322_v7, 4  ;;  %v6378_v2 = vld [vmem:[%s6776_s30 + $0xe8] sm:$0xff] }
 0x4f9   : > { %v4255_v45 = vrot.slane %v4254_v31, 2  ;;  %v4324_v5 = vadd.f32 %v4323_v24, %v4322_v7 }
 0x4fb   : > { %v4256_v22 = vadd.f32 %v4255_v45, %v4254_v31  ;;  %v4325_v10 = vrot.slane %v4324_v5, 2 }
 0x4fd   : > { %v4257_v42 = vrot.slane %v4256_v22, 1  ;;  %v4326_v39 = vadd.f32 %v4325_v10, %v4324_v5 }
 0x4ff   : > { %v4258_v19 = vadd.f32 %v4257_v42, %v4256_v22  ;;  %v4327_v12 = vrot.slane %v4326_v39, 1 }
 0x501   : > { %v8888_v21 = vmul.f32 0.00390625, %v4258_v19  ;;  %v4328_v25 = vadd.f32 %v4327_v12, %v4326_v39 }
 0x503   : > { %v4329_v1 = vmul.f32 0.00390625, %v4328_v25  ;;  %v4330_v63 = vmul.f32 %v8888_v21, %v8888_v21  ;;  %v4362_v9 = vsub.f32 %v8877_v29, %v8888_v21  ;;  %v4342_v3 = vsub.f32 %v8757_v61, %v8888_v21 }
 0x504   : > { %v4344_v17 = vsub.f32 %v8751_v53, %v8888_v21  ;;  %v4345_v55 = vsub.f32 %v8771_v46, %v8888_v21  ;;  %v4346_v37 = vsub.f32 %v8781_v60, %v8888_v21  ;;  %v4347_v59 = vsub.f32 %v8766_v56, %v8888_v21 }
 0x505   : > { %v4331_v14 = vsub.f32 %v4329_v1, %v4330_v63  ;;  %v4348_v29 = vsub.f32 %v8775_v20, %v8888_v21  ;;  %v4349_v30 = vsub.f32 %v8795_v52, %v8888_v21  ;;  %v4350_v61 = vsub.f32 %v8805_v23, %v8888_v21 }
 0x506   : > { %v4351_v53 = vsub.f32 %v8790_v57, %v8888_v21  ;;  %v4352_v46 = vsub.f32 %v8799_v44, %v8888_v21  ;;  %v4353_v60 = vsub.f32 %v8819_v6, %v8888_v21  ;;  %v4354_v56 = vsub.f32 %v8829_v34, %v8888_v21 }
 0x507   : > { %v4332_v26 = vmax.f32 %v4331_v14, 0.0  ;;  %v4355_v20 = vsub.f32 %v8814_v16, %v8888_v21  ;;  %v4356_v52 = vsub.f32 %v8823_v13, %v8888_v21  ;;  %v4357_v23 = vsub.f32 %v8843_v28, %v8888_v21 }
 0x508   : > { %v4358_v57 = vsub.f32 %v8853_v4, %v8888_v21  ;;  %v4359_v44 = vsub.f32 %v8838_v35, %v8888_v21  ;;  %v4360_v6 = vsub.f32 %v8847_v54, %v8888_v21  ;;  %v4361_v34 = vsub.f32 %v8867_v62, %v8888_v21 }
 0x509   : > { %v4365_v50 = vadd.f32 1e-05, %v4332_v26  ;;  %v4363_v16 = vsub.f32 %v8862_v51, %v8888_v21  ;;  %v4364_v13 = vsub.f32 %v8871_v33, %v8888_v21  ;;  %v4333_v28 = vsub.f32 %v8700_v36, %v8888_v21 }
 0x50a   : > { %v4334_v4 = vsub.f32 %v8706_v15, %v8888_v21  ;;  %v4335_v35 = vsub.f32 %v8697_v38, %v8888_v21  ;;  %v4336_v54 = vsub.f32 %v8703_v58, %v8888_v21  ;;  %v4337_v62 = vsub.f32 %v8723_v27, %v8888_v21 }
 0x50b   : > { %6376 = vrsqrt.f32 %v4365_v50  ;;  %v4338_v51 = vsub.f32 %v8733_v8, %v8888_v21  ;;  %v4339_v36 = vsub.f32 %v8718_v43, %v8888_v21  ;;  %v4340_v15 = vsub.f32 %v8727_v47, %v8888_v21  ;;  %v6382_v50 = vld [vmem:[%s6776_s30 + $0x18] sm:$0xff] }
 0x50c   : > { %v4341_v38 = vsub.f32 %v8747_v40, %v8888_v21  ;;  %v4343_v58 = vsub.f32 %v8742_v0, %v8888_v21 }
 0x515   : > { %v6377_v33 = vpop.eup %6376 }
 0x516   : > { %v4396_v32 = vmul.f32 %v6377_v33, %v4362_v9  ;;  %v4367_v49 = vmul.f32 %v6377_v33, %v4333_v28  ;;  %v4368_v27 = vmul.f32 %v6377_v33, %v4334_v4  ;;  %v4369_v41 = vmul.f32 %v6377_v33, %v4335_v35  ;;  %v6389_v4 = vld [vmem:[%s6776_s30 + $0x50] sm:$0xff] }
 0x517   : > { %v4370_v48 = vmul.f32 %v6377_v33, %v4336_v54  ;;  %v4371_v8 = vmul.f32 %v6377_v33, %v4337_v62  ;;  %v4372_v11 = vmul.f32 %v6377_v33, %v4338_v51  ;;  %v4373_v18 = vmul.f32 %v6377_v33, %v4339_v36  ;;  %v6390_v54 = vld [vmem:[%s6776_s30 + $0x58] sm:$0xff]  ;;  %v6391_v51 = vld [vmem:[%s6776_s30 + $0x60] sm:$0xff]  ;;  %v6392_v36 = vld [vmem:[%s6776_s30 + $0x68] sm:$0xff] }
 0x518   : > { %v4428_v43 = vadd.f32 %v6378_v2, %v4396_v32  ;;  %v4374_v7 = vmul.f32 %v6377_v33, %v4340_v15  ;;  %v4375_v31 = vmul.f32 %v6377_v33, %v4341_v38  ;;  %v4376_v47 = vmul.f32 %v6377_v33, %v4342_v3  ;;  %v6393_v38 = vld [vmem:[%s6776_s30 + $0x70] sm:$0xff]  ;;  %v6394_v32 = vld [vmem:[%s6776_s30 + $0x78] sm:$0xff] }
 0x519   : > { %v4377_v24 = vmul.f32 %v6377_v33, %v4343_v58  ;;  %v4378_v45 = vmul.f32 %v6377_v33, %v4344_v17  ;;  %v4379_v40 = vmul.f32 %v6377_v33, %v4345_v55  ;;  %v4380_v5 = vmul.f32 %v6377_v33, %v4346_v37  ;;  %v6379_v37 = vld [vmem:[%s6776_s30] sm:$0xff]  ;;  %v6398_v2 = vld [vmem:[%s6776_s30 + $0x98] sm:$0xff] }
 0x51a   : > { %4460 = vst [vmem:[%s8959_s18 + $0xe8] sm:$0xff] %v4428_v43  ;;  %v4381_v0 = vmul.f32 %v6377_v33, %v4347_v59  ;;  %v4382_v22 = vmul.f32 %v6377_v33, %v4348_v29  ;;  %v4383_v10 = vmul.f32 %v6377_v33, %v4349_v30  ;;  %v4384_v42 = vmul.f32 %v6377_v33, %v4350_v61  ;;  %v6380_v29 = vld [vmem:[%s6776_s30 + $0x8] sm:$0xff]  ;;  %v6381_v61 = vld [vmem:[%s6776_s30 + $0x10] sm:$0xff] }
 0x51b   : > { %v4385_v39 = vmul.f32 %v6377_v33, %v4351_v53  ;;  %v8962_v19 = vmul.f32 %v6377_v33, %v4352_v46  ;;  %v8964_v12 = vmul.f32 %v6377_v33, %v4353_v60  ;;  %v8966_v21 = vmul.f32 %v6377_v33, %v4354_v56  ;;  %v6383_v60 = vld [vmem:[%s6776_s30 + $0x20] sm:$0xff] }
 0x51c   : > { %v8968_v25 = vmul.f32 %v6377_v33, %v4355_v20  ;;  %v8970_v1 = vmul.f32 %v6377_v33, %v4356_v52  ;;  %v8972_v63 = vmul.f32 %v6377_v33, %v4357_v23  ;;  %v8974_v9 = vmul.f32 %v6377_v33, %v4358_v57  ;;  %v6384_v20 = vld [vmem:[%s6776_s30 + $0x28] sm:$0xff]  ;;  %v6385_v23 = vld [vmem:[%s6776_s30 + $0x30] sm:$0xff] }
 0x51d   : > { %v8976_v14 = vmul.f32 %v6377_v33, %v4359_v44  ;;  %v8978_v3 = vmul.f32 %v6377_v33, %v4360_v6  ;;  %v8980_v17 = vmul.f32 %v6377_v33, %v4361_v34  ;;  %v8982_v26 = vmul.f32 %v6377_v33, %v4363_v16  ;;  %v6386_v44 = vld [vmem:[%s6776_s30 + $0x38] sm:$0xff]  ;;  %v6387_v34 = vld [vmem:[%s6776_s30 + $0x40] sm:$0xff] }
 0x51e   : > { %v8984_v55 = vmul.f32 %v6377_v33, %v4364_v13  ;;  %v4399_v59 = vadd.f32 %v6379_v37, %v4367_v49  ;;  %v4400_v30 = vadd.f32 %v6380_v29, %v4368_v27  ;;  %v4401_v53 = vadd.f32 %v6381_v61, %v4369_v41  ;;  %v6388_v13 = vld [vmem:[%s6776_s30 + $0x48] sm:$0xff]  ;;  %v6395_v27 = vld [vmem:[%s6776_s30 + $0x80] sm:$0xff]  ;;  %v6409_v37 = vld [vmem:[%s6776_s30 + $0xf8] sm:$0xff] }
 0x51f   : > { %v4402_v46 = vadd.f32 %v6382_v50, %v4370_v48  ;;  %v4403_v56 = vadd.f32 %v6383_v60, %v4371_v8  ;;  %v4404_v52 = vadd.f32 %v6384_v20, %v4372_v11  ;;  %v4405_v57 = vadd.f32 %v6385_v23, %v4373_v18  ;;  %v6396_v48 = vld [vmem:[%s6776_s30 + $0x88] sm:$0xff]  ;;  %v6397_v11 = vld [vmem:[%s6776_s30 + $0x90] sm:$0xff] }
 0x520   : > { %v4406_v6 = vadd.f32 %v6386_v44, %v4374_v7  ;;  %v4407_v16 = vadd.f32 %v6387_v34, %v4375_v31  ;;  %v4408_v28 = vadd.f32 %v6388_v13, %v4376_v47  ;;  %v4409_v35 = vadd.f32 %v6389_v4, %v4377_v24  ;;  %4431 = vst [vmem:[%s8959_s18] sm:$0xff] %v4399_v59  ;;  %v6399_v7 = vld [vmem:[%s6776_s30 + $0xa0] sm:$0xff]  ;;  %v6400_v47 = vld [vmem:[%s6776_s30 + $0xa8] sm:$0xff] }
 0x521   : > { %4432 = vst [vmem:[%s8959_s18 + $0x8] sm:$0xff] %v4400_v30  ;;  %4433 = vst [vmem:[%s8959_s18 + $0x10] sm:$0xff] %v4401_v53  ;;  %v4410_v62 = vadd.f32 %v6390_v54, %v4378_v45  ;;  %v4411_v33 = vadd.f32 %v6391_v51, %v4379_v40  ;;  %v4412_v15 = vadd.f32 %v6392_v36, %v4380_v5  ;;  %v6401_v45 = vld [vmem:[%s6776_s30 + $0xb0] sm:$0xff]  ;;  %v6402_v5 = vld [vmem:[%s6776_s30 + $0xb8] sm:$0xff] }
 0x522   : > { %v4413_v58 = vadd.f32 %v6393_v38, %v4381_v0  ;;  %4434 = vst [vmem:[%s8959_s18 + $0x18] sm:$0xff] %v4402_v46  ;;  %4435 = vst [vmem:[%s8959_s18 + $0x20] sm:$0xff] %v4403_v56  ;;  %v4414_v49 = vadd.f32 %v6394_v32, %v4382_v22  ;;  %v4415_v41 = vadd.f32 %v6395_v27, %v4383_v10  ;;  %v6403_v22 = vld [vmem:[%s6776_s30 + $0xc0] sm:$0xff] }
 0x523   : > { %4436 = vst [vmem:[%s8959_s18 + $0x28] sm:$0xff] %v4404_v52  ;;  %4437 = vst [vmem:[%s8959_s18 + $0x30] sm:$0xff] %v4405_v57  ;;  %v4416_v8 = vadd.f32 %v6396_v48, %v4384_v42  ;;  %v4417_v18 = vadd.f32 %v6397_v11, %v4385_v39  ;;  %v4418_v43 = vadd.f32 %v6398_v2, %v8962_v19  ;;  %v6404_v42 = vld [vmem:[%s6776_s30 + $0xc8] sm:$0xff]  ;;  %v6405_v19 = vld [vmem:[%s6776_s30 + $0xd0] sm:$0xff] }
 0x524   : > { %4438 = vst [vmem:[%s8959_s18 + $0x38] sm:$0xff] %v4406_v6  ;;  %4439 = vst [vmem:[%s8959_s18 + $0x40] sm:$0xff] %v4407_v16  ;;  %v4419_v31 = vadd.f32 %v6399_v7, %v8964_v12  ;;  %v4420_v24 = vadd.f32 %v6400_v47, %v8966_v21  ;;  %v4421_v40 = vadd.f32 %v6401_v45, %v8968_v25  ;;  %v6406_v21 = vld [vmem:[%s6776_s30 + $0xd8] sm:$0xff] }
 0x525   : > { %4440 = vst [vmem:[%s8959_s18 + $0x48] sm:$0xff] %v4408_v28  ;;  %4441 = vst [vmem:[%s8959_s18 + $0x50] sm:$0xff] %v4409_v35  ;;  %v4422_v0 = vadd.f32 %v6402_v5, %v8970_v1  ;;  %v4423_v10 = vadd.f32 %v6403_v22, %v8972_v63  ;;  %v4424_v39 = vadd.f32 %v6404_v42, %v8974_v9  ;;  %v6407_v1 = vld [vmem:[%s6776_s30 + $0xe0] sm:$0xff]  ;;  %v6408_v9 = vld [vmem:[%s6776_s30 + $0xf0] sm:$0xff] }
 0x526   : > { %4442 = vst [vmem:[%s8959_s18 + $0x58] sm:$0xff] %v4410_v62  ;;  %4443 = vst [vmem:[%s8959_s18 + $0x60] sm:$0xff] %v4411_v33  ;;  %v4425_v12 = vadd.f32 %v6405_v19, %v8976_v14  ;;  %v4426_v25 = vadd.f32 %v6406_v21, %v8978_v3  ;;  %v4427_v63 = vadd.f32 %v6407_v1, %v8980_v17 }
 0x527   : > { %4444 = vst [vmem:[%s8959_s18 + $0x68] sm:$0xff] %v4412_v15  ;;  %4445 = vst [vmem:[%s8959_s18 + $0x70] sm:$0xff] %v4413_v58  ;;  %v4429_v14 = vadd.f32 %v6408_v9, %v8982_v26  ;;  %v4430_v59 = vadd.f32 %v6409_v37, %v8984_v55 }
 0x528   : > { %4446 = vst [vmem:[%s8959_s18 + $0x78] sm:$0xff] %v4414_v49  ;;  %4447 = vst [vmem:[%s8959_s18 + $0x80] sm:$0xff] %v4415_v41 }
 0x529   : > { %4448 = vst [vmem:[%s8959_s18 + $0x88] sm:$0xff] %v4416_v8  ;;  %4449 = vst [vmem:[%s8959_s18 + $0x90] sm:$0xff] %v4417_v18 }
 0x52a   : > { %4450 = vst [vmem:[%s8959_s18 + $0x98] sm:$0xff] %v4418_v43  ;;  %4451 = vst [vmem:[%s8959_s18 + $0xa0] sm:$0xff] %v4419_v31 }
 0x52b   : > { %4452 = vst [vmem:[%s8959_s18 + $0xa8] sm:$0xff] %v4420_v24  ;;  %4453 = vst [vmem:[%s8959_s18 + $0xb0] sm:$0xff] %v4421_v40 }
 0x52c   : > { %4454 = vst [vmem:[%s8959_s18 + $0xb8] sm:$0xff] %v4422_v0  ;;  %4455 = vst [vmem:[%s8959_s18 + $0xc0] sm:$0xff] %v4423_v10 }
 0x52d   : > { %4456 = vst [vmem:[%s8959_s18 + $0xc8] sm:$0xff] %v4424_v39  ;;  %4457 = vst [vmem:[%s8959_s18 + $0xd0] sm:$0xff] %v4425_v12 }
 0x52e   : > { %4458 = vst [vmem:[%s8959_s18 + $0xd8] sm:$0xff] %v4426_v25  ;;  %4459 = vst [vmem:[%s8959_s18 + $0xe0] sm:$0xff] %v4427_v63 }
 0x52f   : > { %4461 = vst [vmem:[%s8959_s18 + $0xf0] sm:$0xff] %v4429_v14  ;;  %4462 = vst [vmem:[%s8959_s18 + $0xf8] sm:$0xff] %v4430_v59 }
 0x530   : > { %6509 = shalt.err (!%p6506_p2)
}
 0x531   : > { %s6510_s25 = scalar_lea.hbm %s9047_s27, 4096  ;;  %s6514_s21 = scalar_lea.hbm %s9118_s3, 8192 }
 0x532   : > { %p6511_p13 = scmp.ne.s32.totalorder %s9047_s27, %s6510_s25  ;;  %p6515_p4 = scmp.lt.u32.totalorder %s9047_s27, %s9118_s3 }
 0x533   : > { %p6516_p5 = scmp.lt.u32.totalorder %s6514_s21, %s6510_s25  ;;  %p6518_p11 = scmp.lt.u32.totalorder %s6510_s25, %s9047_s27 }
 0x534   : > { %p6512_p6 = pnand %p6511_p13, %p9246_p0 }
 0x535   : > { %p6517_p8 = por %p6516_p5, %p6515_p4 }
 0x536   : > { %p6513_p10 = pneg %p6512_p6 }
 0x537   : > { %p6519_p1 = por %p6518_p11, %p6517_p8 }
 0x539   : > { %p6520_p3 = pnand %p6519_p1, %p6513_p10 }
 0x53b   : > { %6523 = shalt.err (!%p6520_p3)
}
 0x53c   : > { %s6576_s30 = smov 128   ;;  %s6577_s18 = smov 8  }
 0x53d   : > { %6167 = dma.vmem_to_hbm [thread:$0]  (%p9246_p0), %s9051_s17, 4096, %s9047_s27, %s4464_s16, %s6576_s30, %s6576_s30, %s6577_s18  }
 0x53e PF: > { %s4492_s20 = sand.u32 1, %s6554_s12   ;;  %p9247_p7 = scmp.ne.s32.totalorder %s9165_s19, 0 }
 0x53f   : > { %p9248_p9 = scmp.ge.s32.totalorder %s6566_s15, 2  ;;  %s4493_s24 = scalar_lea.sflag [#allocation4], %s4492_s20 }
 0x541   : > { %p6181_p12 = pnand %p9248_p9, %p9247_p7 }
 0x543   : > { %6549 = dma.done.wait (!%p6181_p12), %s4493_s24, 4096  }
 0x544   : > { %6551 = vsyncadd (!%p6181_p12), %s4493_s24, 4294963200  ;;  %p17_p2 = scmp.ge.s32.totalorder %s6708_s4, 4   ;;  %s9249_s12 = smov %s6558_s13 }
 0x545   : > { %s9250_s13 = smov %s6562_s14  ;;  %s9251_s14 = smov %s6724_s9 }
 0x546   : > { %s9252_s15 = smov %s6708_s4  ;;  %19 = sbr.rel (!%p17_p2) target bundleno = 6 (0x6), region = 89 }
 0x54d   :  { %4498 = vsyncpa [#allocation3], 1 }
 0x54e   :  { %4500 = vsyncpa [#allocation3 + $0x1], 1 }
 0x54f   :  { %4501 = vsyncpa [#allocation6], 1 }
 0x550   :  { %4502 = vsyncpa [#allocation4], 1 }
 0x551   :  { %4504 = vsyncpa [#allocation4 + $0x1], 1 }

</bundles_post_ra>
